<compile_context>
chip_gen: v7x
topology: tpu7x:2x2x1
jax: 0.10.0
libtpu: 0.0.40
codegen_flags: <defaults>
</compile_context>

<pallas_src>
import jax
import jax.numpy as jnp
from jax.experimental import pallas as pl
from jax.experimental.pallas import tpu as pltpu


# ----------------------------- Pallas conv kernel ---------------------------

def _row_block(n, cap=48, need_even=False):
    """Largest divisor of n that is <= cap (optionally even)."""
    best = 0
    for d in range(1, min(n, cap) + 1):
        if n % d == 0 and (not need_even or d % 2 == 0):
            best = d
    return best if best > 0 else n


def _make_convT_kernel(K, Cin, Cout, B, Wp, Wo, RB, phase_khs):
    """ConvTranspose2d(+bias+ReLU), expressed as a stride-1 conv over the
    dilated+padded input, with in-kernel patch assembly and a transposed
    (lane-dense) GEMM.  phase_khs: per output-row parity, the statically valid
    kh taps (taps reading provably-zero dilated rows are dropped)."""
    P = len(phase_khs)

    def kernel(x_ref, w_ref, b_ref, o_ref):
        # x_ref: (Hp, Cin, B*Wp)   whole dilated+padded input, VMEM resident
        # w_ref: (Cout, K*K*Cin)   flipped / channel-swapped / flattened weight
        # b_ref: (Cout, 1)
        # o_ref: (RB, Cout, B*Wo)  block of output rows (lane axis = B*Wo)
        row0 = pl.program_id(0) * RB
        bias = b_ref[...]
        w_all = w_ref[...]

        # Static per-phase weight slices (hoisted out of the row loop).
        w_ph = []
        for khs in phase_khs:
            if len(khs) == K:
                w_ph.append(w_all)
            else:
                w_ph.append(jnp.concatenate(
                    [w_all[:, kh * K * Cin:(kh + 1) * K * Cin] for kh in khs],
                    axis=1))

        def one_row(local, oh, w_q, khs):
            pieces = []
            for kh in khs:
                row = x_ref[oh + kh]                       # (Cin, B*Wp)
                for kw in range(K):
                    segs = [row[:, bb * Wp + kw: bb * Wp + kw + Wo]
                            for bb in range(B)]
                    pieces.append(segs[0] if B == 1 else
                                  jnp.concatenate(segs, axis=1))
            patch = jnp.concatenate(pieces, axis=0)        # (len(khs)*K*Cin, B*Wo)
            acc = jnp.dot(w_q, patch, preferred_element_type=jnp.float32)
            acc = jnp.maximum(acc + bias, 0.0)             # (Cout, B*Wo)
            o_ref[local] = acc.astype(o_ref.dtype)

        def body(g, carry):
            for q in range(P):                             # static unroll over parity
                local = g * P + q
                one_row(local, row0 + local, w_ph[q], phase_khs[q])
            return carry

        jax.lax.fori_loop(0, RB // P, body, 0)

    return kernel


def conv_transpose2d_relu(act, weight, bias, stride, padding):
    """PyTorch ConvTranspose2d(+ReLU).
    act: (H, Cin, B, W); weight: (Cin, Cout, K, K) (PyTorch layout); bias: (Cout,).
    Returns (Ho, Cout, B*Wo)."""
    H, Cin, B, W = act.shape
    _, Cout, K, _ = weight.shape
    s, p = stride, padding
    pe = K - 1 - p
    Ho = (H - 1) * s - 2 * p + K
    Wo = (W - 1) * s - 2 * p + K
    Hd, Wd = (H - 1) * s + 1, (W - 1) * s + 1
    Hp, Wp = Hd + 2 * pe, Wd + 2 * pe

    # dilate-by-stride + pad-by-(K-1-p): one cheap pass over a small activation
    xp = jnp.zeros((Hp, Cin, B, Wp), act.dtype)
    xp = xp.at[pe:pe + Hd:s, :, :, pe:pe + Wd:s].set(act)
    xp = xp.reshape(Hp, Cin, B * Wp)

    # flipped kernel, in/out channels swapped, flattened with (kh, kw, ci) ordering
    wf = jnp.flip(weight, axis=(2, 3)).transpose(2, 3, 0, 1)      # (K, K, Cin, Cout)
    w2 = wf.reshape(K * K * Cin, Cout).T                          # (Cout, K*K*Cin)
    b2 = bias.reshape(Cout, 1)

    # Static tap pruning by output-row parity (stride-2, even Ho only -> layer 4).
    use_parity = (s == 2 and Ho % 2 == 0)
    RB = _row_block(Ho, need_even=use_parity)
    if use_parity and RB % 2 == 0:
        phase_khs = tuple(
            tuple(kh for kh in range(K) if (q + kh - pe) % 2 == 0)
            for q in range(2))
    else:
        phase_khs = (tuple(range(K)),)

    kernel = _make_convT_kernel(K, Cin, Cout, B, Wp, Wo, RB, phase_khs)
    out = pl.pallas_call(
        kernel,
        out_shape=jax.ShapeDtypeStruct((Ho, Cout, B * Wo), act.dtype),
        grid_spec=pltpu.PrefetchScalarGridSpec(
            num_scalar_prefetch=0,
            grid=(Ho // RB,),
            in_specs=[
                pl.BlockSpec((Hp, Cin, B * Wp), lambda r: (0, 0, 0)),   # resident
                pl.BlockSpec((Cout, K * K * Cin), lambda r: (0, 0)),
                pl.BlockSpec((Cout, 1), lambda r: (0, 0)),
            ],
            out_specs=pl.BlockSpec((RB, Cout, B * Wo), lambda r: (r, 0, 0)),
        ),
        compiler_params=pltpu.CompilerParams(
            dimension_semantics=("parallel",)),
    )(xp, w2, b2)
    return out


# ------------------------------- Decoder ------------------------------------

_CONV_CFG = [  # (cin, cout, k, stride, padding) for the first 4 layers
    (4, 4, 5, 2, 2),
    (4, 8, 5, 2, 1),
    (8, 16, 5, 2, 1),
    (16, 32, 4, 2, 1),
]
_STRIDE_PAD = [(2, 2), (2, 1), (2, 1), (2, 1), (1, 0)]   # static per layer


def init_decoder_params(key, out_channels, features):
    def uinit(k, shape, fan_in):
        bound = 1.0 / (fan_in ** 0.5)
        return jax.random.uniform(k, shape, jnp.float32, -bound, bound)

    cfg = _CONV_CFG + [(32, out_channels, 3, 1, 0)]
    keys = jax.random.split(key, 2 + 2 * len(cfg))
    params = {
        "lin_w": uinit(keys[0], (4 * 8 * 8, features), features),   # torch Linear weight
        "lin_b": uinit(keys[1], (4 * 8 * 8,), features),
        "convs": [],
    }
    for i, (cin, cout, k, _s, _p) in enumerate(cfg):
        fan = cout * k * k          # PyTorch ConvTranspose2d fan_in = weight.size(1)*K*K
        w = uinit(keys[2 + 2 * i], (cin, cout, k, k), fan)   # torch ConvTranspose2d layout
        b = uinit(keys[3 + 2 * i], (cout,), fan)
        params["convs"].append((w, b))
    return params


def decoder_forward(params, x):
    """x: (B, features) -> (B, out_channels, 128, 128) (NCHW, matching PyTorch)."""
    B = x.shape[0]
    # Linear + ReLU: ~0.03 MFLOP -> plain jnp (a kernel launch costs more).
    y = jnp.maximum(x @ params["lin_w"].T + params["lin_b"], 0.0)      # (B, 256)
    # Unflatten(dim=1, (4,8,8)) then to the kernels' (H, C, B, W) layout.
    act = y.reshape(B, 4, 8, 8).transpose(2, 1, 0, 3)                  # (8, 4, B, 8)
    for (w, b), (s, p) in zip(params["convs"], _STRIDE_PAD):
        out = conv_transpose2d_relu(act, w, b, s, p)                   # (Ho, Cout, B*Wo)
        act = out.reshape(out.shape[0], out.shape[1], B, -1)           # (H, C, B, W)
    return act.transpose(2, 1, 0, 3)                                   # (B, C, H, W)


# ------------------------- pure-JAX reference (check) -----------------------

def decoder_forward_ref(params, x):
    B = x.shape[0]
    y = jnp.maximum(x @ params["lin_w"].T + params["lin_b"], 0.0)
    y = y.reshape(B, 4, 8, 8).transpose(0, 2, 3, 1)
    for (w, b), (s, p) in zip(params["convs"], _STRIDE_PAD):
        K = w.shape[2]
        wc = jnp.flip(w, axis=(2, 3)).transpose(2, 3, 0, 1)   # HWIO
        y = jax.lax.conv_general_dilated(
            y, wc, window_strides=(1, 1),
            padding=[(K - 1 - p, K - 1 - p)] * 2,
            lhs_dilation=(s, s),
            dimension_numbers=("NHWC", "HWIO", "NHWC"))
        y = jnp.maximum(y + b, 0.0)
    return y.transpose(0, 3, 1, 2)


if __name__ == "__main__":
    key = jax.random.PRNGKey(0)
    kp, kx = jax.random.split(key)
    B, features, out_channels = 2, 32, 3

    params = init_decoder_params(kp, out_channels, features)
    x = jax.random.normal(kx, (B, features), jnp.float32)

    fwd = jax.jit(decoder_forward)
    out = jax.block_until_ready(fwd(params, x))
    assert out.shape == (B, out_channels, 128, 128), out.shape

    ref = decoder_forward_ref(params, x)
    err = float(jnp.max(jnp.abs(out - ref)))
    scale = float(jnp.max(jnp.abs(ref))) + 1e-6
    assert err <= 1e-3 * scale + 1e-4, f"mismatch: err={err}, scale={scale}"

    print("KERNEL_OK")
</pallas_src>

<mosaic_0001>
module attributes {stable_mosaic.version = 11 : i64} {
  func.func @kernel(%arg0: i32, %arg1: memref<19x4x38xf32, #tpu.memory_space<vmem>>, %arg2: memref<4x100xf32, #tpu.memory_space<vmem>>, %arg3: memref<4x1xf32, #tpu.memory_space<vmem>>, %arg4: memref<15x4x30xf32, #tpu.memory_space<vmem>>) attributes {dimension_semantics = [#tpu.dimension_semantics<parallel>], iteration_bounds = array<i64: 1>, scalar_prefetch = 0 : i64, scratch_operands = 0 : i64, tpu.core_type = #tpu.core_type<tc>, window_params = [{pipeline_mode = #tpu.pipeline_mode<synchronous>, transform_indices = @transform_0, window_bounds = array<i64: 19, 4, 38>}, {pipeline_mode = #tpu.pipeline_mode<synchronous>, transform_indices = @transform_1, window_bounds = array<i64: 4, 100>}, {pipeline_mode = #tpu.pipeline_mode<synchronous>, transform_indices = @transform_2, window_bounds = array<i64: 4, 1>}, {transform_indices = @transform_3, window_bounds = array<i64: 15, 4, 30>}]} {
    %c15_i32 = arith.constant 15 : i32
    %0 = arith.muli %arg0, %c15_i32 : i32
    %c0 = arith.constant 0 : index
    %c0_0 = arith.constant 0 : index
    %1 = vector.load %arg3[%c0, %c0_0] : memref<4x1xf32, #tpu.memory_space<vmem>>, vector<4x1xf32>
    %c0_1 = arith.constant 0 : index
    %c0_2 = arith.constant 0 : index
    %2 = vector.load %arg2[%c0_1, %c0_2] : memref<4x100xf32, #tpu.memory_space<vmem>>, vector<4x100xf32>
    %c0_i32 = arith.constant 0 : i32
    %c15_i32_3 = arith.constant 15 : i32
    %3 = arith.addi %c0_i32, %c15_i32_3 : i32
    %c1_i32 = arith.constant 1 : i32
    scf.for %arg5 = %c0_i32 to %3 step %c1_i32  : i32 {
      %c1_i32_5 = arith.constant 1 : i32
      %4 = arith.muli %arg5, %c1_i32_5 : i32
      %c0_i32_6 = arith.constant 0 : i32
      %5 = arith.addi %4, %c0_i32_6 : i32
      %6 = arith.addi %0, %5 : i32
      %c0_i32_7 = arith.constant 0 : i32
      %7 = arith.addi %6, %c0_i32_7 : i32
      %8 = arith.index_cast %7 : i32 to index
      %c0_8 = arith.constant 0 : index
      %c0_9 = arith.constant 0 : index
      %9 = vector.load %arg1[%8, %c0_8, %c0_9] : memref<19x4x38xf32, #tpu.memory_space<vmem>>, vector<1x4x38xf32>
      %10 = vector.shape_cast %9 : vector<1x4x38xf32> to vector<4x38xf32>
      %11 = vector.extract_strided_slice %10 {offsets = [0, 0], sizes = [4, 15], strides = [1, 1]} : vector<4x38xf32> to vector<4x15xf32>
      %12 = vector.extract_strided_slice %10 {offsets = [0, 19], sizes = [4, 15], strides = [1, 1]} : vector<4x38xf32> to vector<4x15xf32>
      %13 = tpu.concatenate %11, %12 in 1 : vector<4x15xf32>, vector<4x15xf32> -> vector<4x30xf32>
      %14 = vector.extract_strided_slice %10 {offsets = [0, 1], sizes = [4, 15], strides = [1, 1]} : vector<4x38xf32> to vector<4x15xf32>
      %15 = vector.extract_strided_slice %10 {offsets = [0, 20], sizes = [4, 15], strides = [1, 1]} : vector<4x38xf32> to vector<4x15xf32>
      %16 = tpu.concatenate %14, %15 in 1 : vector<4x15xf32>, vector<4x15xf32> -> vector<4x30xf32>
      %17 = vector.extract_strided_slice %10 {offsets = [0, 2], sizes = [4, 15], strides = [1, 1]} : vector<4x38xf32> to vector<4x15xf32>
      %18 = vector.extract_strided_slice %10 {offsets = [0, 21], sizes = [4, 15], strides = [1, 1]} : vector<4x38xf32> to vector<4x15xf32>
      %19 = tpu.concatenate %17, %18 in 1 : vector<4x15xf32>, vector<4x15xf32> -> vector<4x30xf32>
      %20 = vector.extract_strided_slice %10 {offsets = [0, 3], sizes = [4, 15], strides = [1, 1]} : vector<4x38xf32> to vector<4x15xf32>
      %21 = vector.extract_strided_slice %10 {offsets = [0, 22], sizes = [4, 15], strides = [1, 1]} : vector<4x38xf32> to vector<4x15xf32>
      %22 = tpu.concatenate %20, %21 in 1 : vector<4x15xf32>, vector<4x15xf32> -> vector<4x30xf32>
      %23 = vector.extract_strided_slice %10 {offsets = [0, 4], sizes = [4, 15], strides = [1, 1]} : vector<4x38xf32> to vector<4x15xf32>
      %24 = vector.extract_strided_slice %10 {offsets = [0, 23], sizes = [4, 15], strides = [1, 1]} : vector<4x38xf32> to vector<4x15xf32>
      %25 = tpu.concatenate %23, %24 in 1 : vector<4x15xf32>, vector<4x15xf32> -> vector<4x30xf32>
      %c1_i32_10 = arith.constant 1 : i32
      %26 = arith.addi %6, %c1_i32_10 : i32
      %27 = arith.index_cast %26 : i32 to index
      %c0_11 = arith.constant 0 : index
      %c0_12 = arith.constant 0 : index
      %28 = vector.load %arg1[%27, %c0_11, %c0_12] : memref<19x4x38xf32, #tpu.memory_space<vmem>>, vector<1x4x38xf32>
      %29 = vector.shape_cast %28 : vector<1x4x38xf32> to vector<4x38xf32>
      %30 = vector.extract_strided_slice %29 {offsets = [0, 0], sizes = [4, 15], strides = [1, 1]} : vector<4x38xf32> to vector<4x15xf32>
      %31 = vector.extract_strided_slice %29 {offsets = [0, 19], sizes = [4, 15], strides = [1, 1]} : vector<4x38xf32> to vector<4x15xf32>
      %32 = tpu.concatenate %30, %31 in 1 : vector<4x15xf32>, vector<4x15xf32> -> vector<4x30xf32>
      %33 = vector.extract_strided_slice %29 {offsets = [0, 1], sizes = [4, 15], strides = [1, 1]} : vector<4x38xf32> to vector<4x15xf32>
      %34 = vector.extract_strided_slice %29 {offsets = [0, 20], sizes = [4, 15], strides = [1, 1]} : vector<4x38xf32> to vector<4x15xf32>
      %35 = tpu.concatenate %33, %34 in 1 : vector<4x15xf32>, vector<4x15xf32> -> vector<4x30xf32>
      %36 = vector.extract_strided_slice %29 {offsets = [0, 2], sizes = [4, 15], strides = [1, 1]} : vector<4x38xf32> to vector<4x15xf32>
      %37 = vector.extract_strided_slice %29 {offsets = [0, 21], sizes = [4, 15], strides = [1, 1]} : vector<4x38xf32> to vector<4x15xf32>
      %38 = tpu.concatenate %36, %37 in 1 : vector<4x15xf32>, vector<4x15xf32> -> vector<4x30xf32>
      %39 = vector.extract_strided_slice %29 {offsets = [0, 3], sizes = [4, 15], strides = [1, 1]} : vector<4x38xf32> to vector<4x15xf32>
      %40 = vector.extract_strided_slice %29 {offsets = [0, 22], sizes = [4, 15], strides = [1, 1]} : vector<4x38xf32> to vector<4x15xf32>
      %41 = tpu.concatenate %39, %40 in 1 : vector<4x15xf32>, vector<4x15xf32> -> vector<4x30xf32>
      %42 = vector.extract_strided_slice %29 {offsets = [0, 4], sizes = [4, 15], strides = [1, 1]} : vector<4x38xf32> to vector<4x15xf32>
      %43 = vector.extract_strided_slice %29 {offsets = [0, 23], sizes = [4, 15], strides = [1, 1]} : vector<4x38xf32> to vector<4x15xf32>
      %44 = tpu.concatenate %42, %43 in 1 : vector<4x15xf32>, vector<4x15xf32> -> vector<4x30xf32>
      %c2_i32 = arith.constant 2 : i32
      %45 = arith.addi %6, %c2_i32 : i32
      %46 = arith.index_cast %45 : i32 to index
      %c0_13 = arith.constant 0 : index
      %c0_14 = arith.constant 0 : index
      %47 = vector.load %arg1[%46, %c0_13, %c0_14] : memref<19x4x38xf32, #tpu.memory_space<vmem>>, vector<1x4x38xf32>
      %48 = vector.shape_cast %47 : vector<1x4x38xf32> to vector<4x38xf32>
      %49 = vector.extract_strided_slice %48 {offsets = [0, 0], sizes = [4, 15], strides = [1, 1]} : vector<4x38xf32> to vector<4x15xf32>
      %50 = vector.extract_strided_slice %48 {offsets = [0, 19], sizes = [4, 15], strides = [1, 1]} : vector<4x38xf32> to vector<4x15xf32>
      %51 = tpu.concatenate %49, %50 in 1 : vector<4x15xf32>, vector<4x15xf32> -> vector<4x30xf32>
      %52 = vector.extract_strided_slice %48 {offsets = [0, 1], sizes = [4, 15], strides = [1, 1]} : vector<4x38xf32> to vector<4x15xf32>
      %53 = vector.extract_strided_slice %48 {offsets = [0, 20], sizes = [4, 15], strides = [1, 1]} : vector<4x38xf32> to vector<4x15xf32>
      %54 = tpu.concatenate %52, %53 in 1 : vector<4x15xf32>, vector<4x15xf32> -> vector<4x30xf32>
      %55 = vector.extract_strided_slice %48 {offsets = [0, 2], sizes = [4, 15], strides = [1, 1]} : vector<4x38xf32> to vector<4x15xf32>
      %56 = vector.extract_strided_slice %48 {offsets = [0, 21], sizes = [4, 15], strides = [1, 1]} : vector<4x38xf32> to vector<4x15xf32>
      %57 = tpu.concatenate %55, %56 in 1 : vector<4x15xf32>, vector<4x15xf32> -> vector<4x30xf32>
      %58 = vector.extract_strided_slice %48 {offsets = [0, 3], sizes = [4, 15], strides = [1, 1]} : vector<4x38xf32> to vector<4x15xf32>
      %59 = vector.extract_strided_slice %48 {offsets = [0, 22], sizes = [4, 15], strides = [1, 1]} : vector<4x38xf32> to vector<4x15xf32>
      %60 = tpu.concatenate %58, %59 in 1 : vector<4x15xf32>, vector<4x15xf32> -> vector<4x30xf32>
      %61 = vector.extract_strided_slice %48 {offsets = [0, 4], sizes = [4, 15], strides = [1, 1]} : vector<4x38xf32> to vector<4x15xf32>
      %62 = vector.extract_strided_slice %48 {offsets = [0, 23], sizes = [4, 15], strides = [1, 1]} : vector<4x38xf32> to vector<4x15xf32>
      %63 = tpu.concatenate %61, %62 in 1 : vector<4x15xf32>, vector<4x15xf32> -> vector<4x30xf32>
      %c3_i32 = arith.constant 3 : i32
      %64 = arith.addi %6, %c3_i32 : i32
      %65 = arith.index_cast %64 : i32 to index
      %c0_15 = arith.constant 0 : index
      %c0_16 = arith.constant 0 : index
      %66 = vector.load %arg1[%65, %c0_15, %c0_16] : memref<19x4x38xf32, #tpu.memory_space<vmem>>, vector<1x4x38xf32>
      %67 = vector.shape_cast %66 : vector<1x4x38xf32> to vector<4x38xf32>
      %68 = vector.extract_strided_slice %67 {offsets = [0, 0], sizes = [4, 15], strides = [1, 1]} : vector<4x38xf32> to vector<4x15xf32>
      %69 = vector.extract_strided_slice %67 {offsets = [0, 19], sizes = [4, 15], strides = [1, 1]} : vector<4x38xf32> to vector<4x15xf32>
      %70 = tpu.concatenate %68, %69 in 1 : vector<4x15xf32>, vector<4x15xf32> -> vector<4x30xf32>
      %71 = vector.extract_strided_slice %67 {offsets = [0, 1], sizes = [4, 15], strides = [1, 1]} : vector<4x38xf32> to vector<4x15xf32>
      %72 = vector.extract_strided_slice %67 {offsets = [0, 20], sizes = [4, 15], strides = [1, 1]} : vector<4x38xf32> to vector<4x15xf32>
      %73 = tpu.concatenate %71, %72 in 1 : vector<4x15xf32>, vector<4x15xf32> -> vector<4x30xf32>
      %74 = vector.extract_strided_slice %67 {offsets = [0, 2], sizes = [4, 15], strides = [1, 1]} : vector<4x38xf32> to vector<4x15xf32>
      %75 = vector.extract_strided_slice %67 {offsets = [0, 21], sizes = [4, 15], strides = [1, 1]} : vector<4x38xf32> to vector<4x15xf32>
      %76 = tpu.concatenate %74, %75 in 1 : vector<4x15xf32>, vector<4x15xf32> -> vector<4x30xf32>
      %77 = vector.extract_strided_slice %67 {offsets = [0, 3], sizes = [4, 15], strides = [1, 1]} : vector<4x38xf32> to vector<4x15xf32>
      %78 = vector.extract_strided_slice %67 {offsets = [0, 22], sizes = [4, 15], strides = [1, 1]} : vector<4x38xf32> to vector<4x15xf32>
      %79 = tpu.concatenate %77, %78 in 1 : vector<4x15xf32>, vector<4x15xf32> -> vector<4x30xf32>
      %80 = vector.extract_strided_slice %67 {offsets = [0, 4], sizes = [4, 15], strides = [1, 1]} : vector<4x38xf32> to vector<4x15xf32>
      %81 = vector.extract_strided_slice %67 {offsets = [0, 23], sizes = [4, 15], strides = [1, 1]} : vector<4x38xf32> to vector<4x15xf32>
      %82 = tpu.concatenate %80, %81 in 1 : vector<4x15xf32>, vector<4x15xf32> -> vector<4x30xf32>
      %c4_i32 = arith.constant 4 : i32
      %83 = arith.addi %6, %c4_i32 : i32
      %84 = arith.index_cast %83 : i32 to index
      %c0_17 = arith.constant 0 : index
      %c0_18 = arith.constant 0 : index
      %85 = vector.load %arg1[%84, %c0_17, %c0_18] : memref<19x4x38xf32, #tpu.memory_space<vmem>>, vector<1x4x38xf32>
      %86 = vector.shape_cast %85 : vector<1x4x38xf32> to vector<4x38xf32>
      %87 = vector.extract_strided_slice %86 {offsets = [0, 0], sizes = [4, 15], strides = [1, 1]} : vector<4x38xf32> to vector<4x15xf32>
      %88 = vector.extract_strided_slice %86 {offsets = [0, 19], sizes = [4, 15], strides = [1, 1]} : vector<4x38xf32> to vector<4x15xf32>
      %89 = tpu.concatenate %87, %88 in 1 : vector<4x15xf32>, vector<4x15xf32> -> vector<4x30xf32>
      %90 = vector.extract_strided_slice %86 {offsets = [0, 1], sizes = [4, 15], strides = [1, 1]} : vector<4x38xf32> to vector<4x15xf32>
      %91 = vector.extract_strided_slice %86 {offsets = [0, 20], sizes = [4, 15], strides = [1, 1]} : vector<4x38xf32> to vector<4x15xf32>
      %92 = tpu.concatenate %90, %91 in 1 : vector<4x15xf32>, vector<4x15xf32> -> vector<4x30xf32>
      %93 = vector.extract_strided_slice %86 {offsets = [0, 2], sizes = [4, 15], strides = [1, 1]} : vector<4x38xf32> to vector<4x15xf32>
      %94 = vector.extract_strided_slice %86 {offsets = [0, 21], sizes = [4, 15], strides = [1, 1]} : vector<4x38xf32> to vector<4x15xf32>
      %95 = tpu.concatenate %93, %94 in 1 : vector<4x15xf32>, vector<4x15xf32> -> vector<4x30xf32>
      %96 = vector.extract_strided_slice %86 {offsets = [0, 3], sizes = [4, 15], strides = [1, 1]} : vector<4x38xf32> to vector<4x15xf32>
      %97 = vector.extract_strided_slice %86 {offsets = [0, 22], sizes = [4, 15], strides = [1, 1]} : vector<4x38xf32> to vector<4x15xf32>
      %98 = tpu.concatenate %96, %97 in 1 : vector<4x15xf32>, vector<4x15xf32> -> vector<4x30xf32>
      %99 = vector.extract_strided_slice %86 {offsets = [0, 4], sizes = [4, 15], strides = [1, 1]} : vector<4x38xf32> to vector<4x15xf32>
      %100 = vector.extract_strided_slice %86 {offsets = [0, 23], sizes = [4, 15], strides = [1, 1]} : vector<4x38xf32> to vector<4x15xf32>
      %101 = tpu.concatenate %99, %100 in 1 : vector<4x15xf32>, vector<4x15xf32> -> vector<4x30xf32>
      %102 = tpu.concatenate %13, %16, %19, %22, %25, %32, %35, %38, %41, %44, %51, %54, %57, %60, %63, %70 in 0 : vector<4x30xf32>, vector<4x30xf32>, vector<4x30xf32>, vector<4x30xf32>, vector<4x30xf32>, vector<4x30xf32>, vector<4x30xf32>, vector<4x30xf32>, vector<4x30xf32>, vector<4x30xf32>, vector<4x30xf32>, vector<4x30xf32>, vector<4x30xf32>, vector<4x30xf32>, vector<4x30xf32>, vector<4x30xf32> -> vector<64x30xf32>
      %103 = tpu.concatenate %73, %76, %79, %82, %89, %92, %95, %98, %101 in 0 : vector<4x30xf32>, vector<4x30xf32>, vector<4x30xf32>, vector<4x30xf32>, vector<4x30xf32>, vector<4x30xf32>, vector<4x30xf32>, vector<4x30xf32>, vector<4x30xf32> -> vector<36x30xf32>
      %104 = tpu.concatenate %102, %103 in 0 : vector<64x30xf32>, vector<36x30xf32> -> vector<100x30xf32>
      %cst = arith.constant dense<0.000000e+00> : vector<4x30xf32>
      %105 = tpu.matmul %2, %104, %cst {dimension_numbers = #tpu.dot_dimension_numbers<[1], [0], [0], [1], [0, 0, 1, 1], [], []>} : vector<4x100xf32>, vector<100x30xf32>, vector<4x30xf32> -> vector<4x30xf32>
      %106 = vector.broadcast %1 : vector<4x1xf32> to vector<4x30xf32>
      %107 = arith.addf %105, %106 : vector<4x30xf32>
      %cst_19 = arith.constant 0.000000e+00 : f32
      %108 = vector.broadcast %cst_19 : f32 to vector<4x30xf32>
      %109 = arith.maximumf %107, %108 : vector<4x30xf32>
      %110 = arith.index_cast %5 : i32 to index
      %c0_20 = arith.constant 0 : index
      %c0_21 = arith.constant 0 : index
      %111 = vector.load %arg4[%110, %c0_20, %c0_21] : memref<15x4x30xf32, #tpu.memory_space<vmem>>, vector<1x4x30xf32>
      %112 = vector.shape_cast %111 : vector<1x4x30xf32> to vector<4x30xf32>
      %113 = vector.shape_cast %109 : vector<4x30xf32> to vector<1x4x30xf32>
      tpu.vector_store %arg4[%110, %c0_20, %c0_21], %113 {strides = array<i32>} : memref<15x4x30xf32, #tpu.memory_space<vmem>>, vector<1x4x30xf32>,
    }
    %c15_i32_4 = arith.constant 15 : i32
    return
  }
  func.func @transform_0(%arg0: i32) -> (i32, i32, i32) {
    %c0_i32 = arith.constant 0 : i32
    %c0_i32_0 = arith.constant 0 : i32
    %c0_i32_1 = arith.constant 0 : i32
    %c0_i32_2 = arith.constant 0 : i32
    return %c0_i32, %c0_i32_0, %c0_i32_1 : i32, i32, i32
  }
  func.func @transform_1(%arg0: i32) -> (i32, i32) {
    %c0_i32 = arith.constant 0 : i32
    %c0_i32_0 = arith.constant 0 : i32
    %c0_i32_1 = arith.constant 0 : i32
    return %c0_i32, %c0_i32_0 : i32, i32
  }
  func.func @transform_2(%arg0: i32) -> (i32, i32) {
    %c0_i32 = arith.constant 0 : i32
    %c0_i32_0 = arith.constant 0 : i32
    %c0_i32_1 = arith.constant 0 : i32
    return %c0_i32, %c0_i32_0 : i32, i32
  }
  func.func @transform_3(%arg0: i32) -> (i32, i32, i32) {
    %c0_i32 = arith.constant 0 : i32
    %c0_i32_0 = arith.constant 0 : i32
    %c0_i32_1 = arith.constant 0 : i32
    return %arg0, %c0_i32, %c0_i32_0 : i32, i32, i32
  }
}

module attributes {stable_mosaic.version = 11 : i64} {
  func.func @kernel(%arg0: i32, %arg1: memref<35x4x70xf32, #tpu.memory_space<vmem>>, %arg2: memref<8x100xf32, #tpu.memory_space<vmem>>, %arg3: memref<8x1xf32, #tpu.memory_space<vmem>>, %arg4: memref<31x8x62xf32, #tpu.memory_space<vmem>>) attributes {dimension_semantics = [#tpu.dimension_semantics<parallel>], iteration_bounds = array<i64: 1>, scalar_prefetch = 0 : i64, scratch_operands = 0 : i64, tpu.core_type = #tpu.core_type<tc>, window_params = [{pipeline_mode = #tpu.pipeline_mode<synchronous>, transform_indices = @transform_0, window_bounds = array<i64: 35, 4, 70>}, {pipeline_mode = #tpu.pipeline_mode<synchronous>, transform_indices = @transform_1, window_bounds = array<i64: 8, 100>}, {pipeline_mode = #tpu.pipeline_mode<synchronous>, transform_indices = @transform_2, window_bounds = array<i64: 8, 1>}, {transform_indices = @transform_3, window_bounds = array<i64: 31, 8, 62>}]} {
    %c31_i32 = arith.constant 31 : i32
    %0 = arith.muli %arg0, %c31_i32 : i32
    %c0 = arith.constant 0 : index
    %c0_0 = arith.constant 0 : index
    %1 = vector.load %arg3[%c0, %c0_0] : memref<8x1xf32, #tpu.memory_space<vmem>>, vector<8x1xf32>
    %c0_1 = arith.constant 0 : index
    %c0_2 = arith.constant 0 : index
    %2 = vector.load %arg2[%c0_1, %c0_2] : memref<8x100xf32, #tpu.memory_space<vmem>>, vector<8x100xf32>
    %c0_i32 = arith.constant 0 : i32
    %c31_i32_3 = arith.constant 31 : i32
    %3 = arith.addi %c0_i32, %c31_i32_3 : i32
    %c1_i32 = arith.constant 1 : i32
    scf.for %arg5 = %c0_i32 to %3 step %c1_i32  : i32 {
      %c1_i32_5 = arith.constant 1 : i32
      %4 = arith.muli %arg5, %c1_i32_5 : i32
      %c0_i32_6 = arith.constant 0 : i32
      %5 = arith.addi %4, %c0_i32_6 : i32
      %6 = arith.addi %0, %5 : i32
      %c0_i32_7 = arith.constant 0 : i32
      %7 = arith.addi %6, %c0_i32_7 : i32
      %8 = arith.index_cast %7 : i32 to index
      %c0_8 = arith.constant 0 : index
      %c0_9 = arith.constant 0 : index
      %9 = vector.load %arg1[%8, %c0_8, %c0_9] : memref<35x4x70xf32, #tpu.memory_space<vmem>>, vector<1x4x70xf32>
      %10 = vector.shape_cast %9 : vector<1x4x70xf32> to vector<4x70xf32>
      %11 = vector.extract_strided_slice %10 {offsets = [0, 0], sizes = [4, 31], strides = [1, 1]} : vector<4x70xf32> to vector<4x31xf32>
      %12 = vector.extract_strided_slice %10 {offsets = [0, 35], sizes = [4, 31], strides = [1, 1]} : vector<4x70xf32> to vector<4x31xf32>
      %13 = tpu.concatenate %11, %12 in 1 : vector<4x31xf32>, vector<4x31xf32> -> vector<4x62xf32>
      %14 = vector.extract_strided_slice %10 {offsets = [0, 1], sizes = [4, 31], strides = [1, 1]} : vector<4x70xf32> to vector<4x31xf32>
      %15 = vector.extract_strided_slice %10 {offsets = [0, 36], sizes = [4, 31], strides = [1, 1]} : vector<4x70xf32> to vector<4x31xf32>
      %16 = tpu.concatenate %14, %15 in 1 : vector<4x31xf32>, vector<4x31xf32> -> vector<4x62xf32>
      %17 = vector.extract_strided_slice %10 {offsets = [0, 2], sizes = [4, 31], strides = [1, 1]} : vector<4x70xf32> to vector<4x31xf32>
      %18 = vector.extract_strided_slice %10 {offsets = [0, 37], sizes = [4, 31], strides = [1, 1]} : vector<4x70xf32> to vector<4x31xf32>
      %19 = tpu.concatenate %17, %18 in 1 : vector<4x31xf32>, vector<4x31xf32> -> vector<4x62xf32>
      %20 = vector.extract_strided_slice %10 {offsets = [0, 3], sizes = [4, 31], strides = [1, 1]} : vector<4x70xf32> to vector<4x31xf32>
      %21 = vector.extract_strided_slice %10 {offsets = [0, 38], sizes = [4, 31], strides = [1, 1]} : vector<4x70xf32> to vector<4x31xf32>
      %22 = tpu.concatenate %20, %21 in 1 : vector<4x31xf32>, vector<4x31xf32> -> vector<4x62xf32>
      %23 = vector.extract_strided_slice %10 {offsets = [0, 4], sizes = [4, 31], strides = [1, 1]} : vector<4x70xf32> to vector<4x31xf32>
      %24 = vector.extract_strided_slice %10 {offsets = [0, 39], sizes = [4, 31], strides = [1, 1]} : vector<4x70xf32> to vector<4x31xf32>
      %25 = tpu.concatenate %23, %24 in 1 : vector<4x31xf32>, vector<4x31xf32> -> vector<4x62xf32>
      %c1_i32_10 = arith.constant 1 : i32
      %26 = arith.addi %6, %c1_i32_10 : i32
      %27 = arith.index_cast %26 : i32 to index
      %c0_11 = arith.constant 0 : index
      %c0_12 = arith.constant 0 : index
      %28 = vector.load %arg1[%27, %c0_11, %c0_12] : memref<35x4x70xf32, #tpu.memory_space<vmem>>, vector<1x4x70xf32>
      %29 = vector.shape_cast %28 : vector<1x4x70xf32> to vector<4x70xf32>
      %30 = vector.extract_strided_slice %29 {offsets = [0, 0], sizes = [4, 31], strides = [1, 1]} : vector<4x70xf32> to vector<4x31xf32>
      %31 = vector.extract_strided_slice %29 {offsets = [0, 35], sizes = [4, 31], strides = [1, 1]} : vector<4x70xf32> to vector<4x31xf32>
      %32 = tpu.concatenate %30, %31 in 1 : vector<4x31xf32>, vector<4x31xf32> -> vector<4x62xf32>
      %33 = vector.extract_strided_slice %29 {offsets = [0, 1], sizes = [4, 31], strides = [1, 1]} : vector<4x70xf32> to vector<4x31xf32>
      %34 = vector.extract_strided_slice %29 {offsets = [0, 36], sizes = [4, 31], strides = [1, 1]} : vector<4x70xf32> to vector<4x31xf32>
      %35 = tpu.concatenate %33, %34 in 1 : vector<4x31xf32>, vector<4x31xf32> -> vector<4x62xf32>
      %36 = vector.extract_strided_slice %29 {offsets = [0, 2], sizes = [4, 31], strides = [1, 1]} : vector<4x70xf32> to vector<4x31xf32>
      %37 = vector.extract_strided_slice %29 {offsets = [0, 37], sizes = [4, 31], strides = [1, 1]} : vector<4x70xf32> to vector<4x31xf32>
      %38 = tpu.concatenate %36, %37 in 1 : vector<4x31xf32>, vector<4x31xf32> -> vector<4x62xf32>
      %39 = vector.extract_strided_slice %29 {offsets = [0, 3], sizes = [4, 31], strides = [1, 1]} : vector<4x70xf32> to vector<4x31xf32>
      %40 = vector.extract_strided_slice %29 {offsets = [0, 38], sizes = [4, 31], strides = [1, 1]} : vector<4x70xf32> to vector<4x31xf32>
      %41 = tpu.concatenate %39, %40 in 1 : vector<4x31xf32>, vector<4x31xf32> -> vector<4x62xf32>
      %42 = vector.extract_strided_slice %29 {offsets = [0, 4], sizes = [4, 31], strides = [1, 1]} : vector<4x70xf32> to vector<4x31xf32>
      %43 = vector.extract_strided_slice %29 {offsets = [0, 39], sizes = [4, 31], strides = [1, 1]} : vector<4x70xf32> to vector<4x31xf32>
      %44 = tpu.concatenate %42, %43 in 1 : vector<4x31xf32>, vector<4x31xf32> -> vector<4x62xf32>
      %c2_i32 = arith.constant 2 : i32
      %45 = arith.addi %6, %c2_i32 : i32
      %46 = arith.index_cast %45 : i32 to index
      %c0_13 = arith.constant 0 : index
      %c0_14 = arith.constant 0 : index
      %47 = vector.load %arg1[%46, %c0_13, %c0_14] : memref<35x4x70xf32, #tpu.memory_space<vmem>>, vector<1x4x70xf32>
      %48 = vector.shape_cast %47 : vector<1x4x70xf32> to vector<4x70xf32>
      %49 = vector.extract_strided_slice %48 {offsets = [0, 0], sizes = [4, 31], strides = [1, 1]} : vector<4x70xf32> to vector<4x31xf32>
      %50 = vector.extract_strided_slice %48 {offsets = [0, 35], sizes = [4, 31], strides = [1, 1]} : vector<4x70xf32> to vector<4x31xf32>
      %51 = tpu.concatenate %49, %50 in 1 : vector<4x31xf32>, vector<4x31xf32> -> vector<4x62xf32>
      %52 = vector.extract_strided_slice %48 {offsets = [0, 1], sizes = [4, 31], strides = [1, 1]} : vector<4x70xf32> to vector<4x31xf32>
      %53 = vector.extract_strided_slice %48 {offsets = [0, 36], sizes = [4, 31], strides = [1, 1]} : vector<4x70xf32> to vector<4x31xf32>
      %54 = tpu.concatenate %52, %53 in 1 : vector<4x31xf32>, vector<4x31xf32> -> vector<4x62xf32>
      %55 = vector.extract_strided_slice %48 {offsets = [0, 2], sizes = [4, 31], strides = [1, 1]} : vector<4x70xf32> to vector<4x31xf32>
      %56 = vector.extract_strided_slice %48 {offsets = [0, 37], sizes = [4, 31], strides = [1, 1]} : vector<4x70xf32> to vector<4x31xf32>
      %57 = tpu.concatenate %55, %56 in 1 : vector<4x31xf32>, vector<4x31xf32> -> vector<4x62xf32>
      %58 = vector.extract_strided_slice %48 {offsets = [0, 3], sizes = [4, 31], strides = [1, 1]} : vector<4x70xf32> to vector<4x31xf32>
      %59 = vector.extract_strided_slice %48 {offsets = [0, 38], sizes = [4, 31], strides = [1, 1]} : vector<4x70xf32> to vector<4x31xf32>
      %60 = tpu.concatenate %58, %59 in 1 : vector<4x31xf32>, vector<4x31xf32> -> vector<4x62xf32>
      %61 = vector.extract_strided_slice %48 {offsets = [0, 4], sizes = [4, 31], strides = [1, 1]} : vector<4x70xf32> to vector<4x31xf32>
      %62 = vector.extract_strided_slice %48 {offsets = [0, 39], sizes = [4, 31], strides = [1, 1]} : vector<4x70xf32> to vector<4x31xf32>
      %63 = tpu.concatenate %61, %62 in 1 : vector<4x31xf32>, vector<4x31xf32> -> vector<4x62xf32>
      %c3_i32 = arith.constant 3 : i32
      %64 = arith.addi %6, %c3_i32 : i32
      %65 = arith.index_cast %64 : i32 to index
      %c0_15 = arith.constant 0 : index
      %c0_16 = arith.constant 0 : index
      %66 = vector.load %arg1[%65, %c0_15, %c0_16] : memref<35x4x70xf32, #tpu.memory_space<vmem>>, vector<1x4x70xf32>
      %67 = vector.shape_cast %66 : vector<1x4x70xf32> to vector<4x70xf32>
      %68 = vector.extract_strided_slice %67 {offsets = [0, 0], sizes = [4, 31], strides = [1, 1]} : vector<4x70xf32> to vector<4x31xf32>
      %69 = vector.extract_strided_slice %67 {offsets = [0, 35], sizes = [4, 31], strides = [1, 1]} : vector<4x70xf32> to vector<4x31xf32>
      %70 = tpu.concatenate %68, %69 in 1 : vector<4x31xf32>, vector<4x31xf32> -> vector<4x62xf32>
      %71 = vector.extract_strided_slice %67 {offsets = [0, 1], sizes = [4, 31], strides = [1, 1]} : vector<4x70xf32> to vector<4x31xf32>
      %72 = vector.extract_strided_slice %67 {offsets = [0, 36], sizes = [4, 31], strides = [1, 1]} : vector<4x70xf32> to vector<4x31xf32>
      %73 = tpu.concatenate %71, %72 in 1 : vector<4x31xf32>, vector<4x31xf32> -> vector<4x62xf32>
      %74 = vector.extract_strided_slice %67 {offsets = [0, 2], sizes = [4, 31], strides = [1, 1]} : vector<4x70xf32> to vector<4x31xf32>
      %75 = vector.extract_strided_slice %67 {offsets = [0, 37], sizes = [4, 31], strides = [1, 1]} : vector<4x70xf32> to vector<4x31xf32>
      %76 = tpu.concatenate %74, %75 in 1 : vector<4x31xf32>, vector<4x31xf32> -> vector<4x62xf32>
      %77 = vector.extract_strided_slice %67 {offsets = [0, 3], sizes = [4, 31], strides = [1, 1]} : vector<4x70xf32> to vector<4x31xf32>
      %78 = vector.extract_strided_slice %67 {offsets = [0, 38], sizes = [4, 31], strides = [1, 1]} : vector<4x70xf32> to vector<4x31xf32>
      %79 = tpu.concatenate %77, %78 in 1 : vector<4x31xf32>, vector<4x31xf32> -> vector<4x62xf32>
      %80 = vector.extract_strided_slice %67 {offsets = [0, 4], sizes = [4, 31], strides = [1, 1]} : vector<4x70xf32> to vector<4x31xf32>
      %81 = vector.extract_strided_slice %67 {offsets = [0, 39], sizes = [4, 31], strides = [1, 1]} : vector<4x70xf32> to vector<4x31xf32>
      %82 = tpu.concatenate %80, %81 in 1 : vector<4x31xf32>, vector<4x31xf32> -> vector<4x62xf32>
      %c4_i32 = arith.constant 4 : i32
      %83 = arith.addi %6, %c4_i32 : i32
      %84 = arith.index_cast %83 : i32 to index
      %c0_17 = arith.constant 0 : index
      %c0_18 = arith.constant 0 : index
      %85 = vector.load %arg1[%84, %c0_17, %c0_18] : memref<35x4x70xf32, #tpu.memory_space<vmem>>, vector<1x4x70xf32>
      %86 = vector.shape_cast %85 : vector<1x4x70xf32> to vector<4x70xf32>
      %87 = vector.extract_strided_slice %86 {offsets = [0, 0], sizes = [4, 31], strides = [1, 1]} : vector<4x70xf32> to vector<4x31xf32>
      %88 = vector.extract_strided_slice %86 {offsets = [0, 35], sizes = [4, 31], strides = [1, 1]} : vector<4x70xf32> to vector<4x31xf32>
      %89 = tpu.concatenate %87, %88 in 1 : vector<4x31xf32>, vector<4x31xf32> -> vector<4x62xf32>
      %90 = vector.extract_strided_slice %86 {offsets = [0, 1], sizes = [4, 31], strides = [1, 1]} : vector<4x70xf32> to vector<4x31xf32>
      %91 = vector.extract_strided_slice %86 {offsets = [0, 36], sizes = [4, 31], strides = [1, 1]} : vector<4x70xf32> to vector<4x31xf32>
      %92 = tpu.concatenate %90, %91 in 1 : vector<4x31xf32>, vector<4x31xf32> -> vector<4x62xf32>
      %93 = vector.extract_strided_slice %86 {offsets = [0, 2], sizes = [4, 31], strides = [1, 1]} : vector<4x70xf32> to vector<4x31xf32>
      %94 = vector.extract_strided_slice %86 {offsets = [0, 37], sizes = [4, 31], strides = [1, 1]} : vector<4x70xf32> to vector<4x31xf32>
      %95 = tpu.concatenate %93, %94 in 1 : vector<4x31xf32>, vector<4x31xf32> -> vector<4x62xf32>
      %96 = vector.extract_strided_slice %86 {offsets = [0, 3], sizes = [4, 31], strides = [1, 1]} : vector<4x70xf32> to vector<4x31xf32>
      %97 = vector.extract_strided_slice %86 {offsets = [0, 38], sizes = [4, 31], strides = [1, 1]} : vector<4x70xf32> to vector<4x31xf32>
      %98 = tpu.concatenate %96, %97 in 1 : vector<4x31xf32>, vector<4x31xf32> -> vector<4x62xf32>
      %99 = vector.extract_strided_slice %86 {offsets = [0, 4], sizes = [4, 31], strides = [1, 1]} : vector<4x70xf32> to vector<4x31xf32>
      %100 = vector.extract_strided_slice %86 {offsets = [0, 39], sizes = [4, 31], strides = [1, 1]} : vector<4x70xf32> to vector<4x31xf32>
      %101 = tpu.concatenate %99, %100 in 1 : vector<4x31xf32>, vector<4x31xf32> -> vector<4x62xf32>
      %102 = tpu.concatenate %13, %16, %19, %22, %25, %32, %35, %38, %41, %44, %51, %54, %57, %60, %63, %70 in 0 : vector<4x62xf32>, vector<4x62xf32>, vector<4x62xf32>, vector<4x62xf32>, vector<4x62xf32>, vector<4x62xf32>, vector<4x62xf32>, vector<4x62xf32>, vector<4x62xf32>, vector<4x62xf32>, vector<4x62xf32>, vector<4x62xf32>, vector<4x62xf32>, vector<4x62xf32>, vector<4x62xf32>, vector<4x62xf32> -> vector<64x62xf32>
      %103 = tpu.concatenate %73, %76, %79, %82, %89, %92, %95, %98, %101 in 0 : vector<4x62xf32>, vector<4x62xf32>, vector<4x62xf32>, vector<4x62xf32>, vector<4x62xf32>, vector<4x62xf32>, vector<4x62xf32>, vector<4x62xf32>, vector<4x62xf32> -> vector<36x62xf32>
      %104 = tpu.concatenate %102, %103 in 0 : vector<64x62xf32>, vector<36x62xf32> -> vector<100x62xf32>
      %cst = arith.constant dense<0.000000e+00> : vector<8x62xf32>
      %105 = tpu.matmul %2, %104, %cst {dimension_numbers = #tpu.dot_dimension_numbers<[1], [0], [0], [1], [0, 0, 1, 1], [], []>} : vector<8x100xf32>, vector<100x62xf32>, vector<8x62xf32> -> vector<8x62xf32>
      %106 = vector.broadcast %1 : vector<8x1xf32> to vector<8x62xf32>
      %107 = arith.addf %105, %106 : vector<8x62xf32>
      %cst_19 = arith.constant 0.000000e+00 : f32
      %108 = vector.broadcast %cst_19 : f32 to vector<8x62xf32>
      %109 = arith.maximumf %107, %108 : vector<8x62xf32>
      %110 = arith.index_cast %5 : i32 to index
      %c0_20 = arith.constant 0 : index
      %c0_21 = arith.constant 0 : index
      %111 = vector.load %arg4[%110, %c0_20, %c0_21] : memref<31x8x62xf32, #tpu.memory_space<vmem>>, vector<1x8x62xf32>
      %112 = vector.shape_cast %111 : vector<1x8x62xf32> to vector<8x62xf32>
      %113 = vector.shape_cast %109 : vector<8x62xf32> to vector<1x8x62xf32>
      tpu.vector_store %arg4[%110, %c0_20, %c0_21], %113 {strides = array<i32>} : memref<31x8x62xf32, #tpu.memory_space<vmem>>, vector<1x8x62xf32>,
    }
    %c31_i32_4 = arith.constant 31 : i32
    return
  }
  func.func @transform_0(%arg0: i32) -> (i32, i32, i32) {
    %c0_i32 = arith.constant 0 : i32
    %c0_i32_0 = arith.constant 0 : i32
    %c0_i32_1 = arith.constant 0 : i32
    %c0_i32_2 = arith.constant 0 : i32
    return %c0_i32, %c0_i32_0, %c0_i32_1 : i32, i32, i32
  }
  func.func @transform_1(%arg0: i32) -> (i32, i32) {
    %c0_i32 = arith.constant 0 : i32
    %c0_i32_0 = arith.constant 0 : i32
    %c0_i32_1 = arith.constant 0 : i32
    return %c0_i32, %c0_i32_0 : i32, i32
  }
  func.func @transform_2(%arg0: i32) -> (i32, i32) {
    %c0_i32 = arith.constant 0 : i32
    %c0_i32_0 = arith.constant 0 : i32
    %c0_i32_1 = arith.constant 0 : i32
    return %c0_i32, %c0_i32_0 : i32, i32
  }
  func.func @transform_3(%arg0: i32) -> (i32, i32, i32) {
    %c0_i32 = arith.constant 0 : i32
    %c0_i32_0 = arith.constant 0 : i32
    %c0_i32_1 = arith.constant 0 : i32
    return %arg0, %c0_i32, %c0_i32_0 : i32, i32, i32
  }
}

module attributes {stable_mosaic.version = 11 : i64} {
  func.func @kernel(%arg0: i32, %arg1: memref<67x8x134xf32, #tpu.memory_space<vmem>>, %arg2: memref<16x200xf32, #tpu.memory_space<vmem>>, %arg3: memref<16x1xf32, #tpu.memory_space<vmem>>, %arg4: memref<21x16x126xf32, #tpu.memory_space<vmem>>) attributes {dimension_semantics = [#tpu.dimension_semantics<parallel>], iteration_bounds = array<i64: 3>, scalar_prefetch = 0 : i64, scratch_operands = 0 : i64, tpu.core_type = #tpu.core_type<tc>, window_params = [{pipeline_mode = #tpu.pipeline_mode<synchronous>, transform_indices = @transform_0, window_bounds = array<i64: 67, 8, 134>}, {pipeline_mode = #tpu.pipeline_mode<synchronous>, transform_indices = @transform_1, window_bounds = array<i64: 16, 200>}, {pipeline_mode = #tpu.pipeline_mode<synchronous>, transform_indices = @transform_2, window_bounds = array<i64: 16, 1>}, {transform_indices = @transform_3, window_bounds = array<i64: 21, 16, 126>}]} {
    %c21_i32 = arith.constant 21 : i32
    %0 = arith.muli %arg0, %c21_i32 : i32
    %c0 = arith.constant 0 : index
    %c0_0 = arith.constant 0 : index
    %1 = vector.load %arg3[%c0, %c0_0] : memref<16x1xf32, #tpu.memory_space<vmem>>, vector<16x1xf32>
    %c0_1 = arith.constant 0 : index
    %c0_2 = arith.constant 0 : index
    %2 = vector.load %arg2[%c0_1, %c0_2] : memref<16x200xf32, #tpu.memory_space<vmem>>, vector<16x200xf32>
    %c0_i32 = arith.constant 0 : i32
    %c21_i32_3 = arith.constant 21 : i32
    %3 = arith.addi %c0_i32, %c21_i32_3 : i32
    %c1_i32 = arith.constant 1 : i32
    scf.for %arg5 = %c0_i32 to %3 step %c1_i32  : i32 {
      %c1_i32_5 = arith.constant 1 : i32
      %4 = arith.muli %arg5, %c1_i32_5 : i32
      %c0_i32_6 = arith.constant 0 : i32
      %5 = arith.addi %4, %c0_i32_6 : i32
      %6 = arith.addi %0, %5 : i32
      %c0_i32_7 = arith.constant 0 : i32
      %7 = arith.addi %6, %c0_i32_7 : i32
      %8 = arith.index_cast %7 : i32 to index
      %c0_8 = arith.constant 0 : index
      %c0_9 = arith.constant 0 : index
      %9 = vector.load %arg1[%8, %c0_8, %c0_9] : memref<67x8x134xf32, #tpu.memory_space<vmem>>, vector<1x8x134xf32>
      %10 = vector.shape_cast %9 : vector<1x8x134xf32> to vector<8x134xf32>
      %11 = vector.extract_strided_slice %10 {offsets = [0, 0], sizes = [8, 63], strides = [1, 1]} : vector<8x134xf32> to vector<8x63xf32>
      %12 = vector.extract_strided_slice %10 {offsets = [0, 67], sizes = [8, 63], strides = [1, 1]} : vector<8x134xf32> to vector<8x63xf32>
      %13 = tpu.concatenate %11, %12 in 1 : vector<8x63xf32>, vector<8x63xf32> -> vector<8x126xf32>
      %14 = vector.extract_strided_slice %10 {offsets = [0, 1], sizes = [8, 63], strides = [1, 1]} : vector<8x134xf32> to vector<8x63xf32>
      %15 = vector.extract_strided_slice %10 {offsets = [0, 68], sizes = [8, 63], strides = [1, 1]} : vector<8x134xf32> to vector<8x63xf32>
      %16 = tpu.concatenate %14, %15 in 1 : vector<8x63xf32>, vector<8x63xf32> -> vector<8x126xf32>
      %17 = vector.extract_strided_slice %10 {offsets = [0, 2], sizes = [8, 63], strides = [1, 1]} : vector<8x134xf32> to vector<8x63xf32>
      %18 = vector.extract_strided_slice %10 {offsets = [0, 69], sizes = [8, 63], strides = [1, 1]} : vector<8x134xf32> to vector<8x63xf32>
      %19 = tpu.concatenate %17, %18 in 1 : vector<8x63xf32>, vector<8x63xf32> -> vector<8x126xf32>
      %20 = vector.extract_strided_slice %10 {offsets = [0, 3], sizes = [8, 63], strides = [1, 1]} : vector<8x134xf32> to vector<8x63xf32>
      %21 = vector.extract_strided_slice %10 {offsets = [0, 70], sizes = [8, 63], strides = [1, 1]} : vector<8x134xf32> to vector<8x63xf32>
      %22 = tpu.concatenate %20, %21 in 1 : vector<8x63xf32>, vector<8x63xf32> -> vector<8x126xf32>
      %23 = vector.extract_strided_slice %10 {offsets = [0, 4], sizes = [8, 63], strides = [1, 1]} : vector<8x134xf32> to vector<8x63xf32>
      %24 = vector.extract_strided_slice %10 {offsets = [0, 71], sizes = [8, 63], strides = [1, 1]} : vector<8x134xf32> to vector<8x63xf32>
      %25 = tpu.concatenate %23, %24 in 1 : vector<8x63xf32>, vector<8x63xf32> -> vector<8x126xf32>
      %c1_i32_10 = arith.constant 1 : i32
      %26 = arith.addi %6, %c1_i32_10 : i32
      %27 = arith.index_cast %26 : i32 to index
      %c0_11 = arith.constant 0 : index
      %c0_12 = arith.constant 0 : index
      %28 = vector.load %arg1[%27, %c0_11, %c0_12] : memref<67x8x134xf32, #tpu.memory_space<vmem>>, vector<1x8x134xf32>
      %29 = vector.shape_cast %28 : vector<1x8x134xf32> to vector<8x134xf32>
      %30 = vector.extract_strided_slice %29 {offsets = [0, 0], sizes = [8, 63], strides = [1, 1]} : vector<8x134xf32> to vector<8x63xf32>
      %31 = vector.extract_strided_slice %29 {offsets = [0, 67], sizes = [8, 63], strides = [1, 1]} : vector<8x134xf32> to vector<8x63xf32>
      %32 = tpu.concatenate %30, %31 in 1 : vector<8x63xf32>, vector<8x63xf32> -> vector<8x126xf32>
      %33 = vector.extract_strided_slice %29 {offsets = [0, 1], sizes = [8, 63], strides = [1, 1]} : vector<8x134xf32> to vector<8x63xf32>
      %34 = vector.extract_strided_slice %29 {offsets = [0, 68], sizes = [8, 63], strides = [1, 1]} : vector<8x134xf32> to vector<8x63xf32>
      %35 = tpu.concatenate %33, %34 in 1 : vector<8x63xf32>, vector<8x63xf32> -> vector<8x126xf32>
      %36 = vector.extract_strided_slice %29 {offsets = [0, 2], sizes = [8, 63], strides = [1, 1]} : vector<8x134xf32> to vector<8x63xf32>
      %37 = vector.extract_strided_slice %29 {offsets = [0, 69], sizes = [8, 63], strides = [1, 1]} : vector<8x134xf32> to vector<8x63xf32>
      %38 = tpu.concatenate %36, %37 in 1 : vector<8x63xf32>, vector<8x63xf32> -> vector<8x126xf32>
      %39 = vector.extract_strided_slice %29 {offsets = [0, 3], sizes = [8, 63], strides = [1, 1]} : vector<8x134xf32> to vector<8x63xf32>
      %40 = vector.extract_strided_slice %29 {offsets = [0, 70], sizes = [8, 63], strides = [1, 1]} : vector<8x134xf32> to vector<8x63xf32>
      %41 = tpu.concatenate %39, %40 in 1 : vector<8x63xf32>, vector<8x63xf32> -> vector<8x126xf32>
      %42 = vector.extract_strided_slice %29 {offsets = [0, 4], sizes = [8, 63], strides = [1, 1]} : vector<8x134xf32> to vector<8x63xf32>
      %43 = vector.extract_strided_slice %29 {offsets = [0, 71], sizes = [8, 63], strides = [1, 1]} : vector<8x134xf32> to vector<8x63xf32>
      %44 = tpu.concatenate %42, %43 in 1 : vector<8x63xf32>, vector<8x63xf32> -> vector<8x126xf32>
      %c2_i32 = arith.constant 2 : i32
      %45 = arith.addi %6, %c2_i32 : i32
      %46 = arith.index_cast %45 : i32 to index
      %c0_13 = arith.constant 0 : index
      %c0_14 = arith.constant 0 : index
      %47 = vector.load %arg1[%46, %c0_13, %c0_14] : memref<67x8x134xf32, #tpu.memory_space<vmem>>, vector<1x8x134xf32>
      %48 = vector.shape_cast %47 : vector<1x8x134xf32> to vector<8x134xf32>
      %49 = vector.extract_strided_slice %48 {offsets = [0, 0], sizes = [8, 63], strides = [1, 1]} : vector<8x134xf32> to vector<8x63xf32>
      %50 = vector.extract_strided_slice %48 {offsets = [0, 67], sizes = [8, 63], strides = [1, 1]} : vector<8x134xf32> to vector<8x63xf32>
      %51 = tpu.concatenate %49, %50 in 1 : vector<8x63xf32>, vector<8x63xf32> -> vector<8x126xf32>
      %52 = vector.extract_strided_slice %48 {offsets = [0, 1], sizes = [8, 63], strides = [1, 1]} : vector<8x134xf32> to vector<8x63xf32>
      %53 = vector.extract_strided_slice %48 {offsets = [0, 68], sizes = [8, 63], strides = [1, 1]} : vector<8x134xf32> to vector<8x63xf32>
      %54 = tpu.concatenate %52, %53 in 1 : vector<8x63xf32>, vector<8x63xf32> -> vector<8x126xf32>
      %55 = vector.extract_strided_slice %48 {offsets = [0, 2], sizes = [8, 63], strides = [1, 1]} : vector<8x134xf32> to vector<8x63xf32>
      %56 = vector.extract_strided_slice %48 {offsets = [0, 69], sizes = [8, 63], strides = [1, 1]} : vector<8x134xf32> to vector<8x63xf32>
      %57 = tpu.concatenate %55, %56 in 1 : vector<8x63xf32>, vector<8x63xf32> -> vector<8x126xf32>
      %58 = vector.extract_strided_slice %48 {offsets = [0, 3], sizes = [8, 63], strides = [1, 1]} : vector<8x134xf32> to vector<8x63xf32>
      %59 = vector.extract_strided_slice %48 {offsets = [0, 70], sizes = [8, 63], strides = [1, 1]} : vector<8x134xf32> to vector<8x63xf32>
      %60 = tpu.concatenate %58, %59 in 1 : vector<8x63xf32>, vector<8x63xf32> -> vector<8x126xf32>
      %61 = vector.extract_strided_slice %48 {offsets = [0, 4], sizes = [8, 63], strides = [1, 1]} : vector<8x134xf32> to vector<8x63xf32>
      %62 = vector.extract_strided_slice %48 {offsets = [0, 71], sizes = [8, 63], strides = [1, 1]} : vector<8x134xf32> to vector<8x63xf32>
      %63 = tpu.concatenate %61, %62 in 1 : vector<8x63xf32>, vector<8x63xf32> -> vector<8x126xf32>
      %c3_i32 = arith.constant 3 : i32
      %64 = arith.addi %6, %c3_i32 : i32
      %65 = arith.index_cast %64 : i32 to index
      %c0_15 = arith.constant 0 : index
      %c0_16 = arith.constant 0 : index
      %66 = vector.load %arg1[%65, %c0_15, %c0_16] : memref<67x8x134xf32, #tpu.memory_space<vmem>>, vector<1x8x134xf32>
      %67 = vector.shape_cast %66 : vector<1x8x134xf32> to vector<8x134xf32>
      %68 = vector.extract_strided_slice %67 {offsets = [0, 0], sizes = [8, 63], strides = [1, 1]} : vector<8x134xf32> to vector<8x63xf32>
      %69 = vector.extract_strided_slice %67 {offsets = [0, 67], sizes = [8, 63], strides = [1, 1]} : vector<8x134xf32> to vector<8x63xf32>
      %70 = tpu.concatenate %68, %69 in 1 : vector<8x63xf32>, vector<8x63xf32> -> vector<8x126xf32>
      %71 = vector.extract_strided_slice %67 {offsets = [0, 1], sizes = [8, 63], strides = [1, 1]} : vector<8x134xf32> to vector<8x63xf32>
      %72 = vector.extract_strided_slice %67 {offsets = [0, 68], sizes = [8, 63], strides = [1, 1]} : vector<8x134xf32> to vector<8x63xf32>
      %73 = tpu.concatenate %71, %72 in 1 : vector<8x63xf32>, vector<8x63xf32> -> vector<8x126xf32>
      %74 = vector.extract_strided_slice %67 {offsets = [0, 2], sizes = [8, 63], strides = [1, 1]} : vector<8x134xf32> to vector<8x63xf32>
      %75 = vector.extract_strided_slice %67 {offsets = [0, 69], sizes = [8, 63], strides = [1, 1]} : vector<8x134xf32> to vector<8x63xf32>
      %76 = tpu.concatenate %74, %75 in 1 : vector<8x63xf32>, vector<8x63xf32> -> vector<8x126xf32>
      %77 = vector.extract_strided_slice %67 {offsets = [0, 3], sizes = [8, 63], strides = [1, 1]} : vector<8x134xf32> to vector<8x63xf32>
      %78 = vector.extract_strided_slice %67 {offsets = [0, 70], sizes = [8, 63], strides = [1, 1]} : vector<8x134xf32> to vector<8x63xf32>
      %79 = tpu.concatenate %77, %78 in 1 : vector<8x63xf32>, vector<8x63xf32> -> vector<8x126xf32>
      %80 = vector.extract_strided_slice %67 {offsets = [0, 4], sizes = [8, 63], strides = [1, 1]} : vector<8x134xf32> to vector<8x63xf32>
      %81 = vector.extract_strided_slice %67 {offsets = [0, 71], sizes = [8, 63], strides = [1, 1]} : vector<8x134xf32> to vector<8x63xf32>
      %82 = tpu.concatenate %80, %81 in 1 : vector<8x63xf32>, vector<8x63xf32> -> vector<8x126xf32>
      %c4_i32 = arith.constant 4 : i32
      %83 = arith.addi %6, %c4_i32 : i32
      %84 = arith.index_cast %83 : i32 to index
      %c0_17 = arith.constant 0 : index
      %c0_18 = arith.constant 0 : index
      %85 = vector.load %arg1[%84, %c0_17, %c0_18] : memref<67x8x134xf32, #tpu.memory_space<vmem>>, vector<1x8x134xf32>
      %86 = vector.shape_cast %85 : vector<1x8x134xf32> to vector<8x134xf32>
      %87 = vector.extract_strided_slice %86 {offsets = [0, 0], sizes = [8, 63], strides = [1, 1]} : vector<8x134xf32> to vector<8x63xf32>
      %88 = vector.extract_strided_slice %86 {offsets = [0, 67], sizes = [8, 63], strides = [1, 1]} : vector<8x134xf32> to vector<8x63xf32>
      %89 = tpu.concatenate %87, %88 in 1 : vector<8x63xf32>, vector<8x63xf32> -> vector<8x126xf32>
      %90 = vector.extract_strided_slice %86 {offsets = [0, 1], sizes = [8, 63], strides = [1, 1]} : vector<8x134xf32> to vector<8x63xf32>
      %91 = vector.extract_strided_slice %86 {offsets = [0, 68], sizes = [8, 63], strides = [1, 1]} : vector<8x134xf32> to vector<8x63xf32>
      %92 = tpu.concatenate %90, %91 in 1 : vector<8x63xf32>, vector<8x63xf32> -> vector<8x126xf32>
      %93 = vector.extract_strided_slice %86 {offsets = [0, 2], sizes = [8, 63], strides = [1, 1]} : vector<8x134xf32> to vector<8x63xf32>
      %94 = vector.extract_strided_slice %86 {offsets = [0, 69], sizes = [8, 63], strides = [1, 1]} : vector<8x134xf32> to vector<8x63xf32>
      %95 = tpu.concatenate %93, %94 in 1 : vector<8x63xf32>, vector<8x63xf32> -> vector<8x126xf32>
      %96 = vector.extract_strided_slice %86 {offsets = [0, 3], sizes = [8, 63], strides = [1, 1]} : vector<8x134xf32> to vector<8x63xf32>
      %97 = vector.extract_strided_slice %86 {offsets = [0, 70], sizes = [8, 63], strides = [1, 1]} : vector<8x134xf32> to vector<8x63xf32>
      %98 = tpu.concatenate %96, %97 in 1 : vector<8x63xf32>, vector<8x63xf32> -> vector<8x126xf32>
      %99 = vector.extract_strided_slice %86 {offsets = [0, 4], sizes = [8, 63], strides = [1, 1]} : vector<8x134xf32> to vector<8x63xf32>
      %100 = vector.extract_strided_slice %86 {offsets = [0, 71], sizes = [8, 63], strides = [1, 1]} : vector<8x134xf32> to vector<8x63xf32>
      %101 = tpu.concatenate %99, %100 in 1 : vector<8x63xf32>, vector<8x63xf32> -> vector<8x126xf32>
      %102 = tpu.concatenate %13, %16, %19, %22, %25, %32, %35, %38, %41, %44, %51, %54, %57, %60, %63, %70 in 0 : vector<8x126xf32>, vector<8x126xf32>, vector<8x126xf32>, vector<8x126xf32>, vector<8x126xf32>, vector<8x126xf32>, vector<8x126xf32>, vector<8x126xf32>, vector<8x126xf32>, vector<8x126xf32>, vector<8x126xf32>, vector<8x126xf32>, vector<8x126xf32>, vector<8x126xf32>, vector<8x126xf32>, vector<8x126xf32> -> vector<128x126xf32>
      %103 = tpu.concatenate %73, %76, %79, %82, %89, %92, %95, %98, %101 in 0 : vector<8x126xf32>, vector<8x126xf32>, vector<8x126xf32>, vector<8x126xf32>, vector<8x126xf32>, vector<8x126xf32>, vector<8x126xf32>, vector<8x126xf32>, vector<8x126xf32> -> vector<72x126xf32>
      %104 = tpu.concatenate %102, %103 in 0 : vector<128x126xf32>, vector<72x126xf32> -> vector<200x126xf32>
      %cst = arith.constant dense<0.000000e+00> : vector<16x126xf32>
      %105 = tpu.matmul %2, %104, %cst {dimension_numbers = #tpu.dot_dimension_numbers<[1], [0], [0], [1], [0, 0, 1, 1], [], []>} : vector<16x200xf32>, vector<200x126xf32>, vector<16x126xf32> -> vector<16x126xf32>
      %106 = vector.broadcast %1 : vector<16x1xf32> to vector<16x126xf32>
      %107 = arith.addf %105, %106 : vector<16x126xf32>
      %cst_19 = arith.constant 0.000000e+00 : f32
      %108 = vector.broadcast %cst_19 : f32 to vector<16x126xf32>
      %109 = arith.maximumf %107, %108 : vector<16x126xf32>
      %110 = arith.index_cast %5 : i32 to index
      %c0_20 = arith.constant 0 : index
      %c0_21 = arith.constant 0 : index
      %111 = vector.load %arg4[%110, %c0_20, %c0_21] : memref<21x16x126xf32, #tpu.memory_space<vmem>>, vector<1x16x126xf32>
      %112 = vector.shape_cast %111 : vector<1x16x126xf32> to vector<16x126xf32>
      %113 = vector.shape_cast %109 : vector<16x126xf32> to vector<1x16x126xf32>
      tpu.vector_store %arg4[%110, %c0_20, %c0_21], %113 {strides = array<i32>} : memref<21x16x126xf32, #tpu.memory_space<vmem>>, vector<1x16x126xf32>,
    }
    %c21_i32_4 = arith.constant 21 : i32
    return
  }
  func.func @transform_0(%arg0: i32) -> (i32, i32, i32) {
    %c0_i32 = arith.constant 0 : i32
    %c0_i32_0 = arith.constant 0 : i32
    %c0_i32_1 = arith.constant 0 : i32
    %c0_i32_2 = arith.constant 0 : i32
    return %c0_i32, %c0_i32_0, %c0_i32_1 : i32, i32, i32
  }
  func.func @transform_1(%arg0: i32) -> (i32, i32) {
    %c0_i32 = arith.constant 0 : i32
    %c0_i32_0 = arith.constant 0 : i32
    %c0_i32_1 = arith.constant 0 : i32
    return %c0_i32, %c0_i32_0 : i32, i32
  }
  func.func @transform_2(%arg0: i32) -> (i32, i32) {
    %c0_i32 = arith.constant 0 : i32
    %c0_i32_0 = arith.constant 0 : i32
    %c0_i32_1 = arith.constant 0 : i32
    return %c0_i32, %c0_i32_0 : i32, i32
  }
  func.func @transform_3(%arg0: i32) -> (i32, i32, i32) {
    %c0_i32 = arith.constant 0 : i32
    %c0_i32_0 = arith.constant 0 : i32
    %c0_i32_1 = arith.constant 0 : i32
    return %arg0, %c0_i32, %c0_i32_0 : i32, i32, i32
  }
}

module attributes {stable_mosaic.version = 11 : i64} {
  func.func @kernel(%arg0: i32, %arg1: memref<129x16x258xf32, #tpu.memory_space<vmem>>, %arg2: memref<32x256xf32, #tpu.memory_space<vmem>>, %arg3: memref<32x1xf32, #tpu.memory_space<vmem>>, %arg4: memref<42x32x252xf32, #tpu.memory_space<vmem>>) attributes {dimension_semantics = [#tpu.dimension_semantics<parallel>], iteration_bounds = array<i64: 3>, scalar_prefetch = 0 : i64, scratch_operands = 0 : i64, tpu.core_type = #tpu.core_type<tc>, window_params = [{pipeline_mode = #tpu.pipeline_mode<synchronous>, transform_indices = @transform_0, window_bounds = array<i64: 129, 16, 258>}, {pipeline_mode = #tpu.pipeline_mode<synchronous>, transform_indices = @transform_1, window_bounds = array<i64: 32, 256>}, {pipeline_mode = #tpu.pipeline_mode<synchronous>, transform_indices = @transform_2, window_bounds = array<i64: 32, 1>}, {transform_indices = @transform_3, window_bounds = array<i64: 42, 32, 252>}]} {
    %c42_i32 = arith.constant 42 : i32
    %0 = arith.muli %arg0, %c42_i32 : i32
    %c0 = arith.constant 0 : index
    %c0_0 = arith.constant 0 : index
    %1 = vector.load %arg3[%c0, %c0_0] : memref<32x1xf32, #tpu.memory_space<vmem>>, vector<32x1xf32>
    %c0_1 = arith.constant 0 : index
    %c0_2 = arith.constant 0 : index
    %2 = vector.load %arg2[%c0_1, %c0_2] : memref<32x256xf32, #tpu.memory_space<vmem>>, vector<32x256xf32>
    %3 = vector.extract_strided_slice %2 {offsets = [0, 0], sizes = [32, 64], strides = [1, 1]} : vector<32x256xf32> to vector<32x64xf32>
    %4 = vector.extract_strided_slice %2 {offsets = [0, 128], sizes = [32, 64], strides = [1, 1]} : vector<32x256xf32> to vector<32x64xf32>
    %5 = tpu.concatenate %3, %4 in 1 : vector<32x64xf32>, vector<32x64xf32> -> vector<32x128xf32>
    %6 = vector.extract_strided_slice %2 {offsets = [0, 64], sizes = [32, 64], strides = [1, 1]} : vector<32x256xf32> to vector<32x64xf32>
    %7 = vector.extract_strided_slice %2 {offsets = [0, 192], sizes = [32, 64], strides = [1, 1]} : vector<32x256xf32> to vector<32x64xf32>
    %8 = tpu.concatenate %6, %7 in 1 : vector<32x64xf32>, vector<32x64xf32> -> vector<32x128xf32>
    %c0_i32 = arith.constant 0 : i32
    %c21_i32 = arith.constant 21 : i32
    %9 = arith.addi %c0_i32, %c21_i32 : i32
    %c1_i32 = arith.constant 1 : i32
    scf.for %arg5 = %c0_i32 to %9 step %c1_i32  : i32 {
      %c2_i32 = arith.constant 2 : i32
      %10 = arith.muli %arg5, %c2_i32 : i32
      %c0_i32_4 = arith.constant 0 : i32
      %11 = arith.addi %10, %c0_i32_4 : i32
      %12 = arith.addi %0, %11 : i32
      %c0_i32_5 = arith.constant 0 : i32
      %13 = arith.addi %12, %c0_i32_5 : i32
      %14 = arith.index_cast %13 : i32 to index
      %c0_6 = arith.constant 0 : index
      %c0_7 = arith.constant 0 : index
      %15 = vector.load %arg1[%14, %c0_6, %c0_7] : memref<129x16x258xf32, #tpu.memory_space<vmem>>, vector<1x16x258xf32>
      %16 = vector.shape_cast %15 : vector<1x16x258xf32> to vector<16x258xf32>
      %17 = vector.extract_strided_slice %16 {offsets = [0, 0], sizes = [16, 126], strides = [1, 1]} : vector<16x258xf32> to vector<16x126xf32>
      %18 = vector.extract_strided_slice %16 {offsets = [0, 129], sizes = [16, 126], strides = [1, 1]} : vector<16x258xf32> to vector<16x126xf32>
      %19 = tpu.concatenate %17, %18 in 1 : vector<16x126xf32>, vector<16x126xf32> -> vector<16x252xf32>
      %20 = vector.extract_strided_slice %16 {offsets = [0, 1], sizes = [16, 126], strides = [1, 1]} : vector<16x258xf32> to vector<16x126xf32>
      %21 = vector.extract_strided_slice %16 {offsets = [0, 130], sizes = [16, 126], strides = [1, 1]} : vector<16x258xf32> to vector<16x126xf32>
      %22 = tpu.concatenate %20, %21 in 1 : vector<16x126xf32>, vector<16x126xf32> -> vector<16x252xf32>
      %23 = vector.extract_strided_slice %16 {offsets = [0, 2], sizes = [16, 126], strides = [1, 1]} : vector<16x258xf32> to vector<16x126xf32>
      %24 = vector.extract_strided_slice %16 {offsets = [0, 131], sizes = [16, 126], strides = [1, 1]} : vector<16x258xf32> to vector<16x126xf32>
      %25 = tpu.concatenate %23, %24 in 1 : vector<16x126xf32>, vector<16x126xf32> -> vector<16x252xf32>
      %26 = vector.extract_strided_slice %16 {offsets = [0, 3], sizes = [16, 126], strides = [1, 1]} : vector<16x258xf32> to vector<16x126xf32>
      %27 = vector.extract_strided_slice %16 {offsets = [0, 132], sizes = [16, 126], strides = [1, 1]} : vector<16x258xf32> to vector<16x126xf32>
      %28 = tpu.concatenate %26, %27 in 1 : vector<16x126xf32>, vector<16x126xf32> -> vector<16x252xf32>
      %c2_i32_8 = arith.constant 2 : i32
      %29 = arith.addi %12, %c2_i32_8 : i32
      %30 = arith.index_cast %29 : i32 to index
      %c0_9 = arith.constant 0 : index
      %c0_10 = arith.constant 0 : index
      %31 = vector.load %arg1[%30, %c0_9, %c0_10] : memref<129x16x258xf32, #tpu.memory_space<vmem>>, vector<1x16x258xf32>
      %32 = vector.shape_cast %31 : vector<1x16x258xf32> to vector<16x258xf32>
      %33 = vector.extract_strided_slice %32 {offsets = [0, 0], sizes = [16, 126], strides = [1, 1]} : vector<16x258xf32> to vector<16x126xf32>
      %34 = vector.extract_strided_slice %32 {offsets = [0, 129], sizes = [16, 126], strides = [1, 1]} : vector<16x258xf32> to vector<16x126xf32>
      %35 = tpu.concatenate %33, %34 in 1 : vector<16x126xf32>, vector<16x126xf32> -> vector<16x252xf32>
      %36 = vector.extract_strided_slice %32 {offsets = [0, 1], sizes = [16, 126], strides = [1, 1]} : vector<16x258xf32> to vector<16x126xf32>
      %37 = vector.extract_strided_slice %32 {offsets = [0, 130], sizes = [16, 126], strides = [1, 1]} : vector<16x258xf32> to vector<16x126xf32>
      %38 = tpu.concatenate %36, %37 in 1 : vector<16x126xf32>, vector<16x126xf32> -> vector<16x252xf32>
      %39 = vector.extract_strided_slice %32 {offsets = [0, 2], sizes = [16, 126], strides = [1, 1]} : vector<16x258xf32> to vector<16x126xf32>
      %40 = vector.extract_strided_slice %32 {offsets = [0, 131], sizes = [16, 126], strides = [1, 1]} : vector<16x258xf32> to vector<16x126xf32>
      %41 = tpu.concatenate %39, %40 in 1 : vector<16x126xf32>, vector<16x126xf32> -> vector<16x252xf32>
      %42 = vector.extract_strided_slice %32 {offsets = [0, 3], sizes = [16, 126], strides = [1, 1]} : vector<16x258xf32> to vector<16x126xf32>
      %43 = vector.extract_strided_slice %32 {offsets = [0, 132], sizes = [16, 126], strides = [1, 1]} : vector<16x258xf32> to vector<16x126xf32>
      %44 = tpu.concatenate %42, %43 in 1 : vector<16x126xf32>, vector<16x126xf32> -> vector<16x252xf32>
      %45 = tpu.concatenate %19, %22, %25, %28, %35, %38, %41, %44 in 0 : vector<16x252xf32>, vector<16x252xf32>, vector<16x252xf32>, vector<16x252xf32>, vector<16x252xf32>, vector<16x252xf32>, vector<16x252xf32>, vector<16x252xf32> -> vector<128x252xf32>
      %cst = arith.constant dense<0.000000e+00> : vector<32x252xf32>
      %46 = tpu.matmul %5, %45, %cst {dimension_numbers = #tpu.dot_dimension_numbers<[1], [0], [0], [1], [0, 0, 1, 1], [], []>} : vector<32x128xf32>, vector<128x252xf32>, vector<32x252xf32> -> vector<32x252xf32>
      %47 = vector.broadcast %1 : vector<32x1xf32> to vector<32x252xf32>
      %48 = arith.addf %46, %47 : vector<32x252xf32>
      %cst_11 = arith.constant 0.000000e+00 : f32
      %49 = vector.broadcast %cst_11 : f32 to vector<32x252xf32>
      %50 = arith.maximumf %48, %49 : vector<32x252xf32>
      %51 = arith.index_cast %11 : i32 to index
      %c0_12 = arith.constant 0 : index
      %c0_13 = arith.constant 0 : index
      %52 = vector.load %arg4[%51, %c0_12, %c0_13] : memref<42x32x252xf32, #tpu.memory_space<vmem>>, vector<1x32x252xf32>
      %53 = vector.shape_cast %52 : vector<1x32x252xf32> to vector<32x252xf32>
      %54 = vector.shape_cast %50 : vector<32x252xf32> to vector<1x32x252xf32>
      tpu.vector_store %arg4[%51, %c0_12, %c0_13], %54 {strides = array<i32>} : memref<42x32x252xf32, #tpu.memory_space<vmem>>, vector<1x32x252xf32>,
      %c2_i32_14 = arith.constant 2 : i32
      %55 = arith.muli %arg5, %c2_i32_14 : i32
      %c1_i32_15 = arith.constant 1 : i32
      %56 = arith.addi %55, %c1_i32_15 : i32
      %57 = arith.addi %0, %56 : i32
      %c1_i32_16 = arith.constant 1 : i32
      %58 = arith.addi %57, %c1_i32_16 : i32
      %59 = arith.index_cast %58 : i32 to index
      %c0_17 = arith.constant 0 : index
      %c0_18 = arith.constant 0 : index
      %60 = vector.load %arg1[%59, %c0_17, %c0_18] : memref<129x16x258xf32, #tpu.memory_space<vmem>>, vector<1x16x258xf32>
      %61 = vector.shape_cast %60 : vector<1x16x258xf32> to vector<16x258xf32>
      %62 = vector.extract_strided_slice %61 {offsets = [0, 0], sizes = [16, 126], strides = [1, 1]} : vector<16x258xf32> to vector<16x126xf32>
      %63 = vector.extract_strided_slice %61 {offsets = [0, 129], sizes = [16, 126], strides = [1, 1]} : vector<16x258xf32> to vector<16x126xf32>
      %64 = tpu.concatenate %62, %63 in 1 : vector<16x126xf32>, vector<16x126xf32> -> vector<16x252xf32>
      %65 = vector.extract_strided_slice %61 {offsets = [0, 1], sizes = [16, 126], strides = [1, 1]} : vector<16x258xf32> to vector<16x126xf32>
      %66 = vector.extract_strided_slice %61 {offsets = [0, 130], sizes = [16, 126], strides = [1, 1]} : vector<16x258xf32> to vector<16x126xf32>
      %67 = tpu.concatenate %65, %66 in 1 : vector<16x126xf32>, vector<16x126xf32> -> vector<16x252xf32>
      %68 = vector.extract_strided_slice %61 {offsets = [0, 2], sizes = [16, 126], strides = [1, 1]} : vector<16x258xf32> to vector<16x126xf32>
      %69 = vector.extract_strided_slice %61 {offsets = [0, 131], sizes = [16, 126], strides = [1, 1]} : vector<16x258xf32> to vector<16x126xf32>
      %70 = tpu.concatenate %68, %69 in 1 : vector<16x126xf32>, vector<16x126xf32> -> vector<16x252xf32>
      %71 = vector.extract_strided_slice %61 {offsets = [0, 3], sizes = [16, 126], strides = [1, 1]} : vector<16x258xf32> to vector<16x126xf32>
      %72 = vector.extract_strided_slice %61 {offsets = [0, 132], sizes = [16, 126], strides = [1, 1]} : vector<16x258xf32> to vector<16x126xf32>
      %73 = tpu.concatenate %71, %72 in 1 : vector<16x126xf32>, vector<16x126xf32> -> vector<16x252xf32>
      %c3_i32 = arith.constant 3 : i32
      %74 = arith.addi %57, %c3_i32 : i32
      %75 = arith.index_cast %74 : i32 to index
      %c0_19 = arith.constant 0 : index
      %c0_20 = arith.constant 0 : index
      %76 = vector.load %arg1[%75, %c0_19, %c0_20] : memref<129x16x258xf32, #tpu.memory_space<vmem>>, vector<1x16x258xf32>
      %77 = vector.shape_cast %76 : vector<1x16x258xf32> to vector<16x258xf32>
      %78 = vector.extract_strided_slice %77 {offsets = [0, 0], sizes = [16, 126], strides = [1, 1]} : vector<16x258xf32> to vector<16x126xf32>
      %79 = vector.extract_strided_slice %77 {offsets = [0, 129], sizes = [16, 126], strides = [1, 1]} : vector<16x258xf32> to vector<16x126xf32>
      %80 = tpu.concatenate %78, %79 in 1 : vector<16x126xf32>, vector<16x126xf32> -> vector<16x252xf32>
      %81 = vector.extract_strided_slice %77 {offsets = [0, 1], sizes = [16, 126], strides = [1, 1]} : vector<16x258xf32> to vector<16x126xf32>
      %82 = vector.extract_strided_slice %77 {offsets = [0, 130], sizes = [16, 126], strides = [1, 1]} : vector<16x258xf32> to vector<16x126xf32>
      %83 = tpu.concatenate %81, %82 in 1 : vector<16x126xf32>, vector<16x126xf32> -> vector<16x252xf32>
      %84 = vector.extract_strided_slice %77 {offsets = [0, 2], sizes = [16, 126], strides = [1, 1]} : vector<16x258xf32> to vector<16x126xf32>
      %85 = vector.extract_strided_slice %77 {offsets = [0, 131], sizes = [16, 126], strides = [1, 1]} : vector<16x258xf32> to vector<16x126xf32>
      %86 = tpu.concatenate %84, %85 in 1 : vector<16x126xf32>, vector<16x126xf32> -> vector<16x252xf32>
      %87 = vector.extract_strided_slice %77 {offsets = [0, 3], sizes = [16, 126], strides = [1, 1]} : vector<16x258xf32> to vector<16x126xf32>
      %88 = vector.extract_strided_slice %77 {offsets = [0, 132], sizes = [16, 126], strides = [1, 1]} : vector<16x258xf32> to vector<16x126xf32>
      %89 = tpu.concatenate %87, %88 in 1 : vector<16x126xf32>, vector<16x126xf32> -> vector<16x252xf32>
      %90 = tpu.concatenate %64, %67, %70, %73, %80, %83, %86, %89 in 0 : vector<16x252xf32>, vector<16x252xf32>, vector<16x252xf32>, vector<16x252xf32>, vector<16x252xf32>, vector<16x252xf32>, vector<16x252xf32>, vector<16x252xf32> -> vector<128x252xf32>
      %cst_21 = arith.constant dense<0.000000e+00> : vector<32x252xf32>
      %91 = tpu.matmul %8, %90, %cst_21 {dimension_numbers = #tpu.dot_dimension_numbers<[1], [0], [0], [1], [0, 0, 1, 1], [], []>} : vector<32x128xf32>, vector<128x252xf32>, vector<32x252xf32> -> vector<32x252xf32>
      %92 = vector.broadcast %1 : vector<32x1xf32> to vector<32x252xf32>
      %93 = arith.addf %91, %92 : vector<32x252xf32>
      %cst_22 = arith.constant 0.000000e+00 : f32
      %94 = vector.broadcast %cst_22 : f32 to vector<32x252xf32>
      %95 = arith.maximumf %93, %94 : vector<32x252xf32>
      %96 = arith.index_cast %56 : i32 to index
      %c0_23 = arith.constant 0 : index
      %c0_24 = arith.constant 0 : index
      %97 = vector.load %arg4[%96, %c0_23, %c0_24] : memref<42x32x252xf32, #tpu.memory_space<vmem>>, vector<1x32x252xf32>
      %98 = vector.shape_cast %97 : vector<1x32x252xf32> to vector<32x252xf32>
      %99 = vector.shape_cast %95 : vector<32x252xf32> to vector<1x32x252xf32>
      tpu.vector_store %arg4[%96, %c0_23, %c0_24], %99 {strides = array<i32>} : memref<42x32x252xf32, #tpu.memory_space<vmem>>, vector<1x32x252xf32>,
    }
    %c21_i32_3 = arith.constant 21 : i32
    return
  }
  func.func @transform_0(%arg0: i32) -> (i32, i32, i32) {
    %c0_i32 = arith.constant 0 : i32
    %c0_i32_0 = arith.constant 0 : i32
    %c0_i32_1 = arith.constant 0 : i32
    %c0_i32_2 = arith.constant 0 : i32
    return %c0_i32, %c0_i32_0, %c0_i32_1 : i32, i32, i32
  }
  func.func @transform_1(%arg0: i32) -> (i32, i32) {
    %c0_i32 = arith.constant 0 : i32
    %c0_i32_0 = arith.constant 0 : i32
    %c0_i32_1 = arith.constant 0 : i32
    return %c0_i32, %c0_i32_0 : i32, i32
  }
  func.func @transform_2(%arg0: i32) -> (i32, i32) {
    %c0_i32 = arith.constant 0 : i32
    %c0_i32_0 = arith.constant 0 : i32
    %c0_i32_1 = arith.constant 0 : i32
    return %c0_i32, %c0_i32_0 : i32, i32
  }
  func.func @transform_3(%arg0: i32) -> (i32, i32, i32) {
    %c0_i32 = arith.constant 0 : i32
    %c0_i32_0 = arith.constant 0 : i32
    %c0_i32_1 = arith.constant 0 : i32
    return %arg0, %c0_i32, %c0_i32_0 : i32, i32, i32
  }
}

module attributes {stable_mosaic.version = 11 : i64} {
  func.func @kernel(%arg0: i32, %arg1: memref<130x32x260xf32, #tpu.memory_space<vmem>>, %arg2: memref<3x288xf32, #tpu.memory_space<vmem>>, %arg3: memref<3x1xf32, #tpu.memory_space<vmem>>, %arg4: memref<32x3x256xf32, #tpu.memory_space<vmem>>) attributes {dimension_semantics = [#tpu.dimension_semantics<parallel>], iteration_bounds = array<i64: 4>, scalar_prefetch = 0 : i64, scratch_operands = 0 : i64, tpu.core_type = #tpu.core_type<tc>, window_params = [{pipeline_mode = #tpu.pipeline_mode<synchronous>, transform_indices = @transform_0, window_bounds = array<i64: 130, 32, 260>}, {pipeline_mode = #tpu.pipeline_mode<synchronous>, transform_indices = @transform_1, window_bounds = array<i64: 3, 288>}, {pipeline_mode = #tpu.pipeline_mode<synchronous>, transform_indices = @transform_2, window_bounds = array<i64: 3, 1>}, {transform_indices = @transform_3, window_bounds = array<i64: 32, 3, 256>}]} {
    %c32_i32 = arith.constant 32 : i32
    %0 = arith.muli %arg0, %c32_i32 : i32
    %c0 = arith.constant 0 : index
    %c0_0 = arith.constant 0 : index
    %1 = vector.load %arg3[%c0, %c0_0] : memref<3x1xf32, #tpu.memory_space<vmem>>, vector<3x1xf32>
    %c0_1 = arith.constant 0 : index
    %c0_2 = arith.constant 0 : index
    %2 = vector.load %arg2[%c0_1, %c0_2] : memref<3x288xf32, #tpu.memory_space<vmem>>, vector<3x288xf32>
    %c0_i32 = arith.constant 0 : i32
    %c32_i32_3 = arith.constant 32 : i32
    %3 = arith.addi %c0_i32, %c32_i32_3 : i32
    %c1_i32 = arith.constant 1 : i32
    scf.for %arg5 = %c0_i32 to %3 step %c1_i32  : i32 {
      %c1_i32_5 = arith.constant 1 : i32
      %4 = arith.muli %arg5, %c1_i32_5 : i32
      %c0_i32_6 = arith.constant 0 : i32
      %5 = arith.addi %4, %c0_i32_6 : i32
      %6 = arith.addi %0, %5 : i32
      %c0_i32_7 = arith.constant 0 : i32
      %7 = arith.addi %6, %c0_i32_7 : i32
      %8 = arith.index_cast %7 : i32 to index
      %c0_8 = arith.constant 0 : index
      %c0_9 = arith.constant 0 : index
      %9 = vector.load %arg1[%8, %c0_8, %c0_9] : memref<130x32x260xf32, #tpu.memory_space<vmem>>, vector<1x32x260xf32>
      %10 = vector.shape_cast %9 : vector<1x32x260xf32> to vector<32x260xf32>
      %11 = vector.extract_strided_slice %10 {offsets = [0, 0], sizes = [32, 128], strides = [1, 1]} : vector<32x260xf32> to vector<32x128xf32>
      %12 = vector.extract_strided_slice %10 {offsets = [0, 130], sizes = [32, 128], strides = [1, 1]} : vector<32x260xf32> to vector<32x128xf32>
      %13 = tpu.concatenate %11, %12 in 1 : vector<32x128xf32>, vector<32x128xf32> -> vector<32x256xf32>
      %14 = vector.extract_strided_slice %10 {offsets = [0, 1], sizes = [32, 128], strides = [1, 1]} : vector<32x260xf32> to vector<32x128xf32>
      %15 = vector.extract_strided_slice %10 {offsets = [0, 131], sizes = [32, 128], strides = [1, 1]} : vector<32x260xf32> to vector<32x128xf32>
      %16 = tpu.concatenate %14, %15 in 1 : vector<32x128xf32>, vector<32x128xf32> -> vector<32x256xf32>
      %17 = vector.extract_strided_slice %10 {offsets = [0, 2], sizes = [32, 128], strides = [1, 1]} : vector<32x260xf32> to vector<32x128xf32>
      %18 = vector.extract_strided_slice %10 {offsets = [0, 132], sizes = [32, 128], strides = [1, 1]} : vector<32x260xf32> to vector<32x128xf32>
      %19 = tpu.concatenate %17, %18 in 1 : vector<32x128xf32>, vector<32x128xf32> -> vector<32x256xf32>
      %c1_i32_10 = arith.constant 1 : i32
      %20 = arith.addi %6, %c1_i32_10 : i32
      %21 = arith.index_cast %20 : i32 to index
      %c0_11 = arith.constant 0 : index
      %c0_12 = arith.constant 0 : index
      %22 = vector.load %arg1[%21, %c0_11, %c0_12] : memref<130x32x260xf32, #tpu.memory_space<vmem>>, vector<1x32x260xf32>
      %23 = vector.shape_cast %22 : vector<1x32x260xf32> to vector<32x260xf32>
      %24 = vector.extract_strided_slice %23 {offsets = [0, 0], sizes = [32, 128], strides = [1, 1]} : vector<32x260xf32> to vector<32x128xf32>
      %25 = vector.extract_strided_slice %23 {offsets = [0, 130], sizes = [32, 128], strides = [1, 1]} : vector<32x260xf32> to vector<32x128xf32>
      %26 = tpu.concatenate %24, %25 in 1 : vector<32x128xf32>, vector<32x128xf32> -> vector<32x256xf32>
      %27 = vector.extract_strided_slice %23 {offsets = [0, 1], sizes = [32, 128], strides = [1, 1]} : vector<32x260xf32> to vector<32x128xf32>
      %28 = vector.extract_strided_slice %23 {offsets = [0, 131], sizes = [32, 128], strides = [1, 1]} : vector<32x260xf32> to vector<32x128xf32>
      %29 = tpu.concatenate %27, %28 in 1 : vector<32x128xf32>, vector<32x128xf32> -> vector<32x256xf32>
      %30 = vector.extract_strided_slice %23 {offsets = [0, 2], sizes = [32, 128], strides = [1, 1]} : vector<32x260xf32> to vector<32x128xf32>
      %31 = vector.extract_strided_slice %23 {offsets = [0, 132], sizes = [32, 128], strides = [1, 1]} : vector<32x260xf32> to vector<32x128xf32>
      %32 = tpu.concatenate %30, %31 in 1 : vector<32x128xf32>, vector<32x128xf32> -> vector<32x256xf32>
      %c2_i32 = arith.constant 2 : i32
      %33 = arith.addi %6, %c2_i32 : i32
      %34 = arith.index_cast %33 : i32 to index
      %c0_13 = arith.constant 0 : index
      %c0_14 = arith.constant 0 : index
      %35 = vector.load %arg1[%34, %c0_13, %c0_14] : memref<130x32x260xf32, #tpu.memory_space<vmem>>, vector<1x32x260xf32>
      %36 = vector.shape_cast %35 : vector<1x32x260xf32> to vector<32x260xf32>
      %37 = vector.extract_strided_slice %36 {offsets = [0, 0], sizes = [32, 128], strides = [1, 1]} : vector<32x260xf32> to vector<32x128xf32>
      %38 = vector.extract_strided_slice %36 {offsets = [0, 130], sizes = [32, 128], strides = [1, 1]} : vector<32x260xf32> to vector<32x128xf32>
      %39 = tpu.concatenate %37, %38 in 1 : vector<32x128xf32>, vector<32x128xf32> -> vector<32x256xf32>
      %40 = vector.extract_strided_slice %36 {offsets = [0, 1], sizes = [32, 128], strides = [1, 1]} : vector<32x260xf32> to vector<32x128xf32>
      %41 = vector.extract_strided_slice %36 {offsets = [0, 131], sizes = [32, 128], strides = [1, 1]} : vector<32x260xf32> to vector<32x128xf32>
      %42 = tpu.concatenate %40, %41 in 1 : vector<32x128xf32>, vector<32x128xf32> -> vector<32x256xf32>
      %43 = vector.extract_strided_slice %36 {offsets = [0, 2], sizes = [32, 128], strides = [1, 1]} : vector<32x260xf32> to vector<32x128xf32>
      %44 = vector.extract_strided_slice %36 {offsets = [0, 132], sizes = [32, 128], strides = [1, 1]} : vector<32x260xf32> to vector<32x128xf32>
      %45 = tpu.concatenate %43, %44 in 1 : vector<32x128xf32>, vector<32x128xf32> -> vector<32x256xf32>
      %46 = tpu.concatenate %13, %16, %19, %26, %29, %32, %39, %42, %45 in 0 : vector<32x256xf32>, vector<32x256xf32>, vector<32x256xf32>, vector<32x256xf32>, vector<32x256xf32>, vector<32x256xf32>, vector<32x256xf32>, vector<32x256xf32>, vector<32x256xf32> -> vector<288x256xf32>
      %cst = arith.constant dense<0.000000e+00> : vector<3x256xf32>
      %47 = tpu.matmul %2, %46, %cst {dimension_numbers = #tpu.dot_dimension_numbers<[1], [0], [0], [1], [0, 0, 1, 1], [], []>} : vector<3x288xf32>, vector<288x256xf32>, vector<3x256xf32> -> vector<3x256xf32>
      %48 = vector.broadcast %1 : vector<3x1xf32> to vector<3x256xf32>
      %49 = arith.addf %47, %48 : vector<3x256xf32>
      %cst_15 = arith.constant 0.000000e+00 : f32
      %50 = vector.broadcast %cst_15 : f32 to vector<3x256xf32>
      %51 = arith.maximumf %49, %50 : vector<3x256xf32>
      %52 = arith.index_cast %5 : i32 to index
      %c0_16 = arith.constant 0 : index
      %c0_17 = arith.constant 0 : index
      %53 = vector.load %arg4[%52, %c0_16, %c0_17] : memref<32x3x256xf32, #tpu.memory_space<vmem>>, vector<1x3x256xf32>
      %54 = vector.shape_cast %53 : vector<1x3x256xf32> to vector<3x256xf32>
      %55 = vector.shape_cast %51 : vector<3x256xf32> to vector<1x3x256xf32>
      tpu.vector_store %arg4[%52, %c0_16, %c0_17], %55 {strides = array<i32>} : memref<32x3x256xf32, #tpu.memory_space<vmem>>, vector<1x3x256xf32>,
    }
    %c32_i32_4 = arith.constant 32 : i32
    return
  }
  func.func @transform_0(%arg0: i32) -> (i32, i32, i32) {
    %c0_i32 = arith.constant 0 : i32
    %c0_i32_0 = arith.constant 0 : i32
    %c0_i32_1 = arith.constant 0 : i32
    %c0_i32_2 = arith.constant 0 : i32
    return %c0_i32, %c0_i32_0, %c0_i32_1 : i32, i32, i32
  }
  func.func @transform_1(%arg0: i32) -> (i32, i32) {
    %c0_i32 = arith.constant 0 : i32
    %c0_i32_0 = arith.constant 0 : i32
    %c0_i32_1 = arith.constant 0 : i32
    return %c0_i32, %c0_i32_0 : i32, i32
  }
  func.func @transform_2(%arg0: i32) -> (i32, i32) {
    %c0_i32 = arith.constant 0 : i32
    %c0_i32_0 = arith.constant 0 : i32
    %c0_i32_1 = arith.constant 0 : i32
    return %c0_i32, %c0_i32_0 : i32, i32
  }
  func.func @transform_3(%arg0: i32) -> (i32, i32, i32) {
    %c0_i32 = arith.constant 0 : i32
    %c0_i32_0 = arith.constant 0 : i32
    %c0_i32_1 = arith.constant 0 : i32
    return %arg0, %c0_i32, %c0_i32_0 : i32, i32, i32
  }
}

</mosaic_0001>

<bundles_post_ra>
// kernel: decoder_forward.5
= control target key start
LH: loop header
LB: loop body
LE: loop exit
PB: predicated region body
PF: predicated region fallthrough
CT: control target
= control target key end

     0   :  { %s579_s16 = smov 0   ;;  %s691_s0 = inlined_call_operand.vmem [shape: f32[19,4,38], index: 0, kind: input, shape index: {}]   ;;  %s692_s1 = inlined_call_operand.vmem [shape: f32[4,100], index: 1, kind: input, shape index: {}]   ;;  %s693_s2 = inlined_call_operand.vmem [shape: f32[4,1], index: 2, kind: input, shape index: {}]   ;;  %s694_s3 = inlined_call_operand.vmem [shape: f32[15,4,30], index: 3, kind: output, shape index: {}]  }
   0x1   :  { %v572_v0 = vld [vmem:[%s693_s2] sm:$0xf] }
   0x2   :  { %v577_v1 = vld [vmem:[%s692_s1] sm:$0xf] }
   0x3 LB: > { %s355_s17 = sshll.u32 %s535_s16, 2  ;;  %s537_s1 = smov 125   ;;  %v541_v5 = vmov 0.0|0.0   ;;  %vm546_vm0 = vmmov 0   ;;  %v547_v10 = vmov 0.0   ;;  %v548_v11 = vmov 0   ;;  %s535_s16 = sphi %s579_s16, %s22_s16  }
   0x4   : > { %s590_s2 = scalar_lea.vmem %s691_s0, %s355_s17  ;;  %s538_s20 = smov 127   ;;  %410 = vmatprep.subr.bf16.mxu0 %v541_v5  ;;  %407 = vmatprep.mubr.msk.f32.mxu0 %vm546_vm0, %v547_v10  ;;  %vm31_vm1 = vcmask 121856   ;;  %vm218_vm2 = vcmask 1043456   ;;  %vm248_vm3 = vcmask 818176   ;;  %vm328_vm4 = vcmask 240640  }
   0x5   : > { %v593_v2 = vld [vmem:[%s590_s2] sm:$0xf]  ;;  %v596_v3 = vld [vmem:[%s590_s2 + $0x4] sm:$0xf]  ;;  %s539_s21 = smov 121   ;;  %s540_s22 = smov 123   ;;  %528 = vset.pattern.permute.xlu0 %v548_v11 }
   0x6   : > { %v458_v4 = vpack.i.bf16 %v596_v3, %v593_v2  ;;  %s542_s23 = smov 126   ;;  %s543_s24 = smov 124   ;;  %v603_v6 = vld [vmem:[%s590_s2 + $0x8] sm:$0xf]  ;;  %v606_v7 = vld [vmem:[%s590_s2 + $0xc] sm:$0xf] }
   0x7   : > { %s544_s25 = smov 120   ;;  %s545_s26 = smov 122   ;;  %v493_v8 = vpack.i.bf16 %v606_v7, %v603_v6  ;;  %v612_v9 = vld [vmem:[%s590_s2 + $0x10] sm:$0xf] }
   0x8   : > { %459 = vrot.lane.b32.xlu1 %v458_v4, %s537_s1  ;;  %449 = vrot.lane.b32.xlu0 %v458_v4, %s538_s20  ;;  %s327_s29 = scalar_lea.vmem %s694_s3, %s355_s17  ;;  %s22_s16 = sadd.s32 1, %s535_s16  }
   0x9   : > { %p19_p0 = scmp.ge.s32.totalorder %s22_s16, 15  }
   0xc   : > { %464 = vrot.lane.b32.xlu1 %v458_v4, %s539_s21  ;;  %454 = vrot.lane.b32.xlu0 %v458_v4, %s540_s22 }
  0x10   : > { %474 = vrot.lane.b32.xlu1 %v458_v4, %s542_s23  ;;  %469 = vrot.lane.b32.xlu0 %v458_v4, %s543_s24 }
  0x14   : > { %484 = vrot.lane.b32.xlu1 %v458_v4, %s544_s25  ;;  %479 = vrot.lane.b32.xlu0 %v458_v4, %s545_s26 }
  0x18   : > { %494 = vrot.lane.b32.xlu1 %v493_v8, %s540_s22  ;;  %489 = vrot.lane.b32.xlu0 %v493_v8, %s538_s20 }
  0x1c   : > { %504 = vrot.lane.b32.xlu1 %v493_v8, %s537_s1  ;;  %499 = vrot.lane.b32.xlu0 %v493_v8, %s543_s24 }
  0x20   : > { %514 = vrot.lane.b32.xlu1 %v493_v8, %s542_s23  ;;  %509 = vrot.lane.b32.xlu0 %v493_v8, %s539_s21 }
  0x24   : > { %524 = vrot.lane.b32.xlu1 %v493_v8, %s544_s25  ;;  %519 = vrot.lane.b32.xlu0 %v493_v8, %s545_s26 }
  0x28   : > { %172 = vrot.lane.b32.xlu1 %v612_v9, %s540_s22  ;;  %169 = vrot.lane.b32.xlu0 %v612_v9, %s538_s20 }
  0x2c   : > { %186 = vrot.lane.b32.xlu1 %v612_v9, %s539_s21  ;;  %183 = vrot.lane.b32.xlu0 %v612_v9, %s537_s1 }
  0x30   : > { %176 = vrot.lane.b32.xlu1 %v612_v9, %s542_s23  ;;  %165 = vrot.lane.b32.xlu0 %v612_v9, %s543_s24 }
  0x34   : > { %190 = vrot.lane.b32.xlu1 %v612_v9, %s544_s25  ;;  %179 = vrot.lane.b32.xlu0 %v612_v9, %s545_s26 }
  0x38   : > { %245 = vperm.xlu0 %528, %v572_v0  }
  0x7a   : > { %v460_v12 = vpop.permute.xlu1 %459  ;;  %v450_v13 = vpop.permute.xlu0 %449 }
  0x7b   : > { %v461_v16 = vunpack.i.l.bf16 %v460_v12  ;;  %v451_v21 = vunpack.i.l.bf16 %v450_v13  ;;  %v452_v40 = vunpack.i.h.bf16 %v450_v13  ;;  %v462_v56 = vunpack.i.h.bf16 %v460_v12 }
  0x7e   : > { %v465_v14 = vpop.permute.xlu1 %464  ;;  %v455_v15 = vpop.permute.xlu0 %454 }
  0x7f   : > { %v466_v17 = vunpack.i.l.bf16 %v465_v14  ;;  %v456_v18 = vunpack.i.l.bf16 %v455_v15  ;;  %v457_v30 = vunpack.i.h.bf16 %v455_v15  ;;  %v467_v57 = vunpack.i.h.bf16 %v465_v14 }
  0x81   : > { %v53_v23 = vsel %vm31_vm1, %v461_v16, %v466_v17  ;;  %v39_v26 = vsel %vm31_vm1, %v451_v21, %v456_v18  ;;  %v73_v49 = vsel %vm31_vm1, %v452_v40, %v457_v30  ;;  %v87_v11 = vsel %vm31_vm1, %v462_v56, %v467_v57 }
  0x82   : > { %v475_v19 = vpop.permute.xlu1 %474  ;;  %v470_v20 = vpop.permute.xlu0 %469  ;;  %v198_v33 = vrot.slane %v53_v23, 4  ;;  %v195_v37 = vrot.slane %v39_v26, 4 }
  0x83   : > { %v471_v22 = vunpack.i.l.bf16 %v470_v20  ;;  %v477_v24 = vunpack.i.h.bf16 %v475_v19  ;;  %v476_v25 = vunpack.i.l.bf16 %v475_v19  ;;  %v472_v27 = vunpack.i.h.bf16 %v470_v20 }
  0x85   : > { %v32_v36 = vsel %vm31_vm1, %v593_v2, %v471_v22  ;;  %v66_v41 = vsel %vm31_vm1, %v596_v3, %v472_v27 }
  0x86   : > { %v485_v28 = vpop.permute.xlu1 %484  ;;  %v480_v29 = vpop.permute.xlu0 %479  ;;  %v219_v48 = vsel %vm218_vm2, %v32_v36, %v195_v37  ;;  %v201_v53 = vrot.slane %v66_v41, 4 }
  0x87   : > { %v482_v31 = vunpack.i.h.bf16 %v480_v29  ;;  %v481_v32 = vunpack.i.l.bf16 %v480_v29  ;;  %v487_v34 = vunpack.i.h.bf16 %v485_v28  ;;  %v486_v35 = vunpack.i.l.bf16 %v485_v28 }
  0x89   : > { %v80_v38 = vsel %vm31_vm1, %v477_v24, %v482_v31  ;;  %v46_v39 = vsel %vm31_vm1, %v476_v25, %v481_v32  ;;  %v57_v50 = vsel %vm31_vm1, %v471_v22, %v486_v35  ;;  %v91_v51 = vsel %vm31_vm1, %v472_v27, %v487_v34 }
  0x8a   : > { %v204_v42 = vrot.slane %v80_v38, 4  ;;  %v633_v43 = vpop.permute.xlu1 %494  ;;  %v635_v44 = vpop.permute.xlu0 %489  ;;  %v220_v45 = vsel %vm218_vm2, %v46_v39, %v198_v33  ;;  %v207_v60 = vrot.slane %v91_v51, 4  ;;  %v221_v62 = vsel %vm218_vm2, %v57_v50, %v201_v53 }
  0x8b   : > { %v496_v46 = vunpack.i.l.bf16 %v633_v43  ;;  %v491_v47 = vunpack.i.l.bf16 %v635_v44  ;;  %v411_v52 = vpack.c.bf16 %v220_v45, %v219_v48  ;;  %v497_v21 = vunpack.i.h.bf16 %v633_v43 }
  0x8c   : > { %v222_v55 = vsel %vm218_vm2, %v73_v49, %v204_v42  ;;  %v223_v16 = vsel %vm218_vm2, %v87_v11, %v207_v60  ;;  %v492_v22 = vunpack.i.h.bf16 %v635_v44 }
  0x8d   : > { %v107_v54 = vsel %vm31_vm1, %v491_v47, %v496_v46  ;;  %412 = vmatpush3.bf16.msra.mxu0 %v411_v52  ;;  %v414_v2 = vpack.c.bf16 %v222_v55, %v221_v62 }
  0x8e   : > { %v505_v58 = vpop.permute.xlu1 %504  ;;  %v500_v59 = vpop.permute.xlu0 %499  ;;  %413 = vmatprep.subr.bf16.mxu0 %v541_v5  ;;  %v210_v63 = vrot.slane %v107_v54, 4  ;;  %v141_v42 = vsel %vm31_vm1, %v492_v22, %v497_v21 }
  0x8f   : > { %v501_v61 = vunpack.i.l.bf16 %v500_v59  ;;  %v506_v3 = vunpack.i.l.bf16 %v505_v58  ;;  %v502_v4 = vunpack.i.h.bf16 %v500_v59  ;;  %v507_v23 = vunpack.i.h.bf16 %v505_v58 }
  0x91   : > { %v100_v8 = vsel %vm31_vm1, %v603_v6, %v501_v61  ;;  %415 = vmatpush3.bf16.msra.mxu0 %v414_v2  ;;  %v134_v18 = vsel %vm31_vm1, %v606_v7, %v502_v4 }
  0x92   : > { %v515_v12 = vpop.permute.xlu1 %514  ;;  %v510_v13 = vpop.permute.xlu0 %509  ;;  %v224_v14 = vsel %vm218_vm2, %v100_v8, %v210_v63  ;;  %416 = vmatprep.subr.bf16.mxu0 %v541_v5  ;;  %v216_v7 = vrot.slane %v134_v18, 4 }
  0x93   : > { %v511_v15 = vunpack.i.l.bf16 %v510_v13  ;;  %v417_v17 = vpack.c.bf16 %v224_v14, %v223_v16  ;;  %v517_v19 = vunpack.i.h.bf16 %v515_v12  ;;  %v516_v20 = vunpack.i.l.bf16 %v515_v12 }
  0x94   : > { %v512_v24 = vunpack.i.h.bf16 %v510_v13 }
  0x95   : > { %v121_v6 = vsel %vm31_vm1, %v506_v3, %v511_v15  ;;  %418 = vmatpush3.bf16.msra.mxu0 %v417_v17 }
  0x96   : > { %v525_v25 = vpop.permute.xlu1 %524  ;;  %v520_v26 = vpop.permute.xlu0 %519  ;;  %419 = vmatprep.subr.bf16.mxu0 %v541_v5  ;;  %v213_v31 = vrot.slane %v121_v6, 4  ;;  %v155_v43 = vsel %vm31_vm1, %v507_v23, %v512_v24 }
  0x97   : > { %v527_v27 = vunpack.i.h.bf16 %v525_v25  ;;  %v526_v28 = vunpack.i.l.bf16 %v525_v25  ;;  %v522_v29 = vunpack.i.h.bf16 %v520_v26  ;;  %v521_v30 = vunpack.i.l.bf16 %v520_v26 }
  0x99   : > { %v125_v32 = vsel %vm31_vm1, %v501_v61, %v526_v28  ;;  %v159_v33 = vsel %vm31_vm1, %v502_v4, %v527_v27  ;;  %v148_v34 = vsel %vm31_vm1, %v517_v19, %v522_v29  ;;  %v114_v35 = vsel %vm31_vm1, %v516_v20, %v521_v30 }
  0x9a   : > { %v231_v36 = vrot.slane %v159_v33, 4  ;;  %v228_v37 = vrot.slane %v148_v34, 4  ;;  %v173_v38 = vpop.permute.xlu1 %172  ;;  %v170_v39 = vpop.permute.xlu0 %169  ;;  %v225_v40 = vsel %vm218_vm2, %v114_v35, %v213_v31  ;;  %v226_v41 = vsel %vm218_vm2, %v125_v32, %v216_v7 }
  0x9b   : > { %v420_v44 = vpack.c.bf16 %v226_v41, %v225_v40  ;;  %v175_v51 = vsel %vm31_vm1, %v170_v39, %v173_v38 }
  0x9c   : > { %v239_v45 = vsel %vm218_vm2, %v141_v42, %v228_v37  ;;  %v240_v46 = vsel %vm218_vm2, %v155_v43, %v231_v36  ;;  %v234_v55 = vrot.slane %v175_v51, 4 }
  0x9d   : > { %421 = vmatpush3.bf16.msra.mxu0 %v420_v44  ;;  %v423_v49 = vpack.c.bf16 %v240_v46, %v239_v45 }
  0x9e   : > { %v184_v47 = vpop.permute.xlu0 %183  ;;  %422 = vmatprep.subr.bf16.mxu0 %v541_v5  ;;  %v187_v48 = vpop.permute.xlu1 %186 }
  0x9f   : > { %v189_v52 = vsel %vm31_vm1, %v184_v47, %v187_v48 }
  0xa0   : > { %v237_v56 = vrot.slane %v189_v52, 4 }
  0xa1   : > { %424 = vmatpush3.bf16.msra.mxu0 %v423_v49 }
  0xa2   : > { %v166_v50 = vpop.permute.xlu0 %165  ;;  %425 = vmatprep.subr.bf16.mxu0 %v541_v5  ;;  %v177_v53 = vpop.permute.xlu1 %176 }
  0xa3   : > { %v168_v54 = vsel %vm31_vm1, %v612_v9, %v166_v50 }
  0xa4   : > { %v241_v59 = vsel %vm218_vm2, %v168_v54, %v234_v55 }
  0xa6   : > { %v180_v57 = vpop.permute.xlu0 %179  ;;  %v191_v5 = vpop.permute.xlu1 %190 }
  0xa7   : > { %v182_v58 = vsel %vm31_vm1, %v177_v53, %v180_v57  ;;  %v193_v62 = vsel %vm31_vm1, %v166_v50, %v191_v5 }
  0xa8   : > { %v242_v60 = vsel %vm218_vm2, %v182_v58, %v237_v56 }
  0xa9   : > { %v426_v61 = vpack.c.bf16 %v242_v60, %v241_v59 }
  0xab   : > { %427 = vmatpush3.bf16.msra.mxu0 %v426_v61 }
  0xac   : > { %405 = vmatprep.subr.mxu0 %v547_v10 }
  0xaf   : > { %406 = vmatpush3.msk.msra.mxu0 %vm218_vm2, %v193_v62 }
  0xb0   : > { %408 = vmatmul.mubr.msk.f32.vlgmr.msra.gmra.mrb[0].mxu0 %vm248_vm3, %v577_v1 }
  0xb7   : > { %v246_v9 = vpop.permute.xlu0 %245 }
 0x182   :  { %21 = sbr.rel (!%p19_p0) target bundleno = 3 (0x3), region = 45 }
 0x183   : > { %v321_v63 = vpop.f32.mrb[0].mxu0 }
 0x184   : > { %v322_v2 = vadd.f32 %v321_v63, %v246_v9  ;;  %v409_v3 = vpop.f32.mrb[1].mxu0 }
 0x186   : > { %v325_v4 = vmax.f32 %v322_v2, 0.0 }
 0x188   : > { %329 = vst.msk [vmem:[%s327_s29] sm:$0xf] %vm328_vm4, %v325_v4 }

// kernel: decoder_forward.6
= control target key start
LH: loop header
LB: loop body
LE: loop exit
PB: predicated region body
PF: predicated region fallthrough
CT: control target
= control target key end

     0   :  { %s579_s16 = smov 0   ;;  %s688_s0 = inlined_call_operand.vmem [shape: f32[35,4,70], index: 0, kind: input, shape index: {}]   ;;  %s689_s1 = inlined_call_operand.vmem [shape: f32[8,100], index: 1, kind: input, shape index: {}]   ;;  %s690_s2 = inlined_call_operand.vmem [shape: f32[8,1], index: 2, kind: input, shape index: {}]   ;;  %s691_s3 = inlined_call_operand.vmem [shape: f32[31,8,62], index: 3, kind: output, shape index: {}]  }
   0x1   :  { %v572_v0 = vld [vmem:[%s690_s2] sm:$0xff] }
   0x2   :  { %v577_v1 = vld [vmem:[%s689_s1] sm:$0xff] }
   0x3 LB: > { %s355_s17 = sshll.u32 %s535_s16, 2  ;;  %s537_s1 = smov 125   ;;  %v541_v5 = vmov 0.0|0.0   ;;  %vm546_vm0 = vmmov 0   ;;  %v547_v10 = vmov 0.0   ;;  %v548_v11 = vmov 0   ;;  %s535_s16 = sphi %s579_s16, %s22_s16  }
   0x4   : > { %s588_s20 = scalar_lea.vmem %s688_s0, %s355_s17  ;;  %s538_s2 = smov 127   ;;  %410 = vmatprep.subr.bf16.mxu0 %v541_v5  ;;  %407 = vmatprep.mubr.msk.f32.mxu0 %vm546_vm0, %v547_v10  ;;  %vm31_vm1 = vcmask 252928   ;;  %vm218_vm2 = vcmask 1043456   ;;  %vm248_vm3 = vcmask 818176   ;;  %vm328_vm4 = vcmask 506880  }
   0x5   : > { %v591_v2 = vld [vmem:[%s588_s20] sm:$0xf]  ;;  %v594_v3 = vld [vmem:[%s588_s20 + $0x4] sm:$0xf]  ;;  %s539_s21 = smov 121   ;;  %s540_s22 = smov 123   ;;  %528 = vset.pattern.permute.xlu0 %v548_v11 }
   0x6   : > { %v458_v4 = vpack.i.bf16 %v594_v3, %v591_v2  ;;  %s542_s23 = smov 126   ;;  %s543_s24 = smov 124   ;;  %v601_v6 = vld [vmem:[%s588_s20 + $0x8] sm:$0xf]  ;;  %v604_v7 = vld [vmem:[%s588_s20 + $0xc] sm:$0xf] }
   0x7   : > { %s544_s25 = smov 120   ;;  %s545_s26 = smov 122   ;;  %v493_v8 = vpack.i.bf16 %v604_v7, %v601_v6  ;;  %v610_v9 = vld [vmem:[%s588_s20 + $0x10] sm:$0xf] }
   0x8   : > { %459 = vrot.lane.b32.xlu1 %v458_v4, %s537_s1  ;;  %449 = vrot.lane.b32.xlu0 %v458_v4, %s538_s2  ;;  %s366_s27 = sshll.u32 %s535_s16, 3  ;;  %s22_s16 = sadd.s32 1, %s535_s16  }
   0x9   : > { %s327_s30 = scalar_lea.vmem %s691_s3, %s366_s27  ;;  %p19_p0 = scmp.ge.s32.totalorder %s22_s16, 31  }
   0xc   : > { %464 = vrot.lane.b32.xlu1 %v458_v4, %s539_s21  ;;  %454 = vrot.lane.b32.xlu0 %v458_v4, %s540_s22 }
  0x10   : > { %474 = vrot.lane.b32.xlu1 %v458_v4, %s542_s23  ;;  %469 = vrot.lane.b32.xlu0 %v458_v4, %s543_s24 }
  0x14   : > { %484 = vrot.lane.b32.xlu1 %v458_v4, %s544_s25  ;;  %479 = vrot.lane.b32.xlu0 %v458_v4, %s545_s26 }
  0x18   : > { %494 = vrot.lane.b32.xlu1 %v493_v8, %s540_s22  ;;  %489 = vrot.lane.b32.xlu0 %v493_v8, %s538_s2 }
  0x1c   : > { %504 = vrot.lane.b32.xlu1 %v493_v8, %s537_s1  ;;  %499 = vrot.lane.b32.xlu0 %v493_v8, %s543_s24 }
  0x20   : > { %514 = vrot.lane.b32.xlu1 %v493_v8, %s542_s23  ;;  %509 = vrot.lane.b32.xlu0 %v493_v8, %s539_s21 }
  0x24   : > { %524 = vrot.lane.b32.xlu1 %v493_v8, %s544_s25  ;;  %519 = vrot.lane.b32.xlu0 %v493_v8, %s545_s26 }
  0x28   : > { %172 = vrot.lane.b32.xlu1 %v610_v9, %s540_s22  ;;  %169 = vrot.lane.b32.xlu0 %v610_v9, %s538_s2 }
  0x2c   : > { %186 = vrot.lane.b32.xlu1 %v610_v9, %s539_s21  ;;  %183 = vrot.lane.b32.xlu0 %v610_v9, %s537_s1 }
  0x30   : > { %176 = vrot.lane.b32.xlu1 %v610_v9, %s542_s23  ;;  %165 = vrot.lane.b32.xlu0 %v610_v9, %s543_s24 }
  0x34   : > { %190 = vrot.lane.b32.xlu1 %v610_v9, %s544_s25  ;;  %179 = vrot.lane.b32.xlu0 %v610_v9, %s545_s26 }
  0x38   : > { %245 = vperm.xlu0 %528, %v572_v0  }
  0x7a   : > { %v460_v12 = vpop.permute.xlu1 %459  ;;  %v450_v13 = vpop.permute.xlu0 %449 }
  0x7b   : > { %v461_v16 = vunpack.i.l.bf16 %v460_v12  ;;  %v451_v21 = vunpack.i.l.bf16 %v450_v13  ;;  %v452_v40 = vunpack.i.h.bf16 %v450_v13  ;;  %v462_v56 = vunpack.i.h.bf16 %v460_v12 }
  0x7e   : > { %v465_v14 = vpop.permute.xlu1 %464  ;;  %v455_v15 = vpop.permute.xlu0 %454 }
  0x7f   : > { %v466_v17 = vunpack.i.l.bf16 %v465_v14  ;;  %v456_v18 = vunpack.i.l.bf16 %v455_v15  ;;  %v457_v30 = vunpack.i.h.bf16 %v455_v15  ;;  %v467_v57 = vunpack.i.h.bf16 %v465_v14 }
  0x81   : > { %v53_v23 = vsel %vm31_vm1, %v461_v16, %v466_v17  ;;  %v39_v26 = vsel %vm31_vm1, %v451_v21, %v456_v18  ;;  %v73_v49 = vsel %vm31_vm1, %v452_v40, %v457_v30  ;;  %v87_v11 = vsel %vm31_vm1, %v462_v56, %v467_v57 }
  0x82   : > { %v475_v19 = vpop.permute.xlu1 %474  ;;  %v470_v20 = vpop.permute.xlu0 %469  ;;  %v198_v33 = vrot.slane %v53_v23, 4  ;;  %v195_v37 = vrot.slane %v39_v26, 4 }
  0x83   : > { %v471_v22 = vunpack.i.l.bf16 %v470_v20  ;;  %v477_v24 = vunpack.i.h.bf16 %v475_v19  ;;  %v476_v25 = vunpack.i.l.bf16 %v475_v19  ;;  %v472_v27 = vunpack.i.h.bf16 %v470_v20 }
  0x85   : > { %v32_v36 = vsel %vm31_vm1, %v591_v2, %v471_v22  ;;  %v66_v41 = vsel %vm31_vm1, %v594_v3, %v472_v27 }
  0x86   : > { %v485_v28 = vpop.permute.xlu1 %484  ;;  %v480_v29 = vpop.permute.xlu0 %479  ;;  %v219_v48 = vsel %vm218_vm2, %v32_v36, %v195_v37  ;;  %v201_v53 = vrot.slane %v66_v41, 4 }
  0x87   : > { %v482_v31 = vunpack.i.h.bf16 %v480_v29  ;;  %v481_v32 = vunpack.i.l.bf16 %v480_v29  ;;  %v487_v34 = vunpack.i.h.bf16 %v485_v28  ;;  %v486_v35 = vunpack.i.l.bf16 %v485_v28 }
  0x89   : > { %v80_v38 = vsel %vm31_vm1, %v477_v24, %v482_v31  ;;  %v46_v39 = vsel %vm31_vm1, %v476_v25, %v481_v32  ;;  %v57_v50 = vsel %vm31_vm1, %v471_v22, %v486_v35  ;;  %v91_v51 = vsel %vm31_vm1, %v472_v27, %v487_v34 }
  0x8a   : > { %v204_v42 = vrot.slane %v80_v38, 4  ;;  %v631_v43 = vpop.permute.xlu1 %494  ;;  %v633_v44 = vpop.permute.xlu0 %489  ;;  %v220_v45 = vsel %vm218_vm2, %v46_v39, %v198_v33  ;;  %v207_v60 = vrot.slane %v91_v51, 4  ;;  %v221_v62 = vsel %vm218_vm2, %v57_v50, %v201_v53 }
  0x8b   : > { %v496_v46 = vunpack.i.l.bf16 %v631_v43  ;;  %v491_v47 = vunpack.i.l.bf16 %v633_v44  ;;  %v411_v52 = vpack.c.bf16 %v220_v45, %v219_v48  ;;  %v497_v21 = vunpack.i.h.bf16 %v631_v43 }
  0x8c   : > { %v222_v55 = vsel %vm218_vm2, %v73_v49, %v204_v42  ;;  %v223_v16 = vsel %vm218_vm2, %v87_v11, %v207_v60  ;;  %v492_v22 = vunpack.i.h.bf16 %v633_v44 }
  0x8d   : > { %v107_v54 = vsel %vm31_vm1, %v491_v47, %v496_v46  ;;  %412 = vmatpush3.bf16.msra.mxu0 %v411_v52  ;;  %v414_v2 = vpack.c.bf16 %v222_v55, %v221_v62 }
  0x8e   : > { %v505_v58 = vpop.permute.xlu1 %504  ;;  %v500_v59 = vpop.permute.xlu0 %499  ;;  %413 = vmatprep.subr.bf16.mxu0 %v541_v5  ;;  %v210_v63 = vrot.slane %v107_v54, 4  ;;  %v141_v42 = vsel %vm31_vm1, %v492_v22, %v497_v21 }
  0x8f   : > { %v501_v61 = vunpack.i.l.bf16 %v500_v59  ;;  %v506_v3 = vunpack.i.l.bf16 %v505_v58  ;;  %v502_v4 = vunpack.i.h.bf16 %v500_v59  ;;  %v507_v23 = vunpack.i.h.bf16 %v505_v58 }
  0x91   : > { %v100_v8 = vsel %vm31_vm1, %v601_v6, %v501_v61  ;;  %415 = vmatpush3.bf16.msra.mxu0 %v414_v2  ;;  %v134_v18 = vsel %vm31_vm1, %v604_v7, %v502_v4 }
  0x92   : > { %v515_v12 = vpop.permute.xlu1 %514  ;;  %v510_v13 = vpop.permute.xlu0 %509  ;;  %v224_v14 = vsel %vm218_vm2, %v100_v8, %v210_v63  ;;  %416 = vmatprep.subr.bf16.mxu0 %v541_v5  ;;  %v216_v7 = vrot.slane %v134_v18, 4 }
  0x93   : > { %v511_v15 = vunpack.i.l.bf16 %v510_v13  ;;  %v417_v17 = vpack.c.bf16 %v224_v14, %v223_v16  ;;  %v517_v19 = vunpack.i.h.bf16 %v515_v12  ;;  %v516_v20 = vunpack.i.l.bf16 %v515_v12 }
  0x94   : > { %v512_v24 = vunpack.i.h.bf16 %v510_v13 }
  0x95   : > { %v121_v6 = vsel %vm31_vm1, %v506_v3, %v511_v15  ;;  %418 = vmatpush3.bf16.msra.mxu0 %v417_v17 }
  0x96   : > { %v525_v25 = vpop.permute.xlu1 %524  ;;  %v520_v26 = vpop.permute.xlu0 %519  ;;  %419 = vmatprep.subr.bf16.mxu0 %v541_v5  ;;  %v213_v31 = vrot.slane %v121_v6, 4  ;;  %v155_v43 = vsel %vm31_vm1, %v507_v23, %v512_v24 }
  0x97   : > { %v527_v27 = vunpack.i.h.bf16 %v525_v25  ;;  %v526_v28 = vunpack.i.l.bf16 %v525_v25  ;;  %v522_v29 = vunpack.i.h.bf16 %v520_v26  ;;  %v521_v30 = vunpack.i.l.bf16 %v520_v26 }
  0x99   : > { %v125_v32 = vsel %vm31_vm1, %v501_v61, %v526_v28  ;;  %v159_v33 = vsel %vm31_vm1, %v502_v4, %v527_v27  ;;  %v148_v34 = vsel %vm31_vm1, %v517_v19, %v522_v29  ;;  %v114_v35 = vsel %vm31_vm1, %v516_v20, %v521_v30 }
  0x9a   : > { %v231_v36 = vrot.slane %v159_v33, 4  ;;  %v228_v37 = vrot.slane %v148_v34, 4  ;;  %v173_v38 = vpop.permute.xlu1 %172  ;;  %v170_v39 = vpop.permute.xlu0 %169  ;;  %v225_v40 = vsel %vm218_vm2, %v114_v35, %v213_v31  ;;  %v226_v41 = vsel %vm218_vm2, %v125_v32, %v216_v7 }
  0x9b   : > { %v420_v44 = vpack.c.bf16 %v226_v41, %v225_v40  ;;  %v175_v51 = vsel %vm31_vm1, %v170_v39, %v173_v38 }
  0x9c   : > { %v239_v45 = vsel %vm218_vm2, %v141_v42, %v228_v37  ;;  %v240_v46 = vsel %vm218_vm2, %v155_v43, %v231_v36  ;;  %v234_v55 = vrot.slane %v175_v51, 4 }
  0x9d   : > { %421 = vmatpush3.bf16.msra.mxu0 %v420_v44  ;;  %v423_v49 = vpack.c.bf16 %v240_v46, %v239_v45 }
  0x9e   : > { %v184_v47 = vpop.permute.xlu0 %183  ;;  %422 = vmatprep.subr.bf16.mxu0 %v541_v5  ;;  %v187_v48 = vpop.permute.xlu1 %186 }
  0x9f   : > { %v189_v52 = vsel %vm31_vm1, %v184_v47, %v187_v48 }
  0xa0   : > { %v237_v56 = vrot.slane %v189_v52, 4 }
  0xa1   : > { %424 = vmatpush3.bf16.msra.mxu0 %v423_v49 }
  0xa2   : > { %v166_v50 = vpop.permute.xlu0 %165  ;;  %425 = vmatprep.subr.bf16.mxu0 %v541_v5  ;;  %v177_v53 = vpop.permute.xlu1 %176 }
  0xa3   : > { %v168_v54 = vsel %vm31_vm1, %v610_v9, %v166_v50 }
  0xa4   : > { %v241_v59 = vsel %vm218_vm2, %v168_v54, %v234_v55 }
  0xa6   : > { %v180_v57 = vpop.permute.xlu0 %179  ;;  %v191_v5 = vpop.permute.xlu1 %190 }
  0xa7   : > { %v182_v58 = vsel %vm31_vm1, %v177_v53, %v180_v57  ;;  %v193_v62 = vsel %vm31_vm1, %v166_v50, %v191_v5 }
  0xa8   : > { %v242_v60 = vsel %vm218_vm2, %v182_v58, %v237_v56 }
  0xa9   : > { %v426_v61 = vpack.c.bf16 %v242_v60, %v241_v59 }
  0xab   : > { %427 = vmatpush3.bf16.msra.mxu0 %v426_v61 }
  0xac   : > { %405 = vmatprep.subr.mxu0 %v547_v10 }
  0xaf   : > { %406 = vmatpush3.msk.msra.mxu0 %vm218_vm2, %v193_v62 }
  0xb0   : > { %408 = vmatmul.mubr.msk.f32.vlgmr.msra.gmra.mrb[0].mxu0 %vm248_vm3, %v577_v1 }
  0xb7   : > { %v246_v9 = vpop.permute.xlu0 %245 }
 0x182   :  { %21 = sbr.rel (!%p19_p0) target bundleno = 3 (0x3), region = 45 }
 0x183   : > { %v321_v63 = vpop.f32.mrb[0].mxu0 }
 0x184   : > { %v322_v2 = vadd.f32 %v321_v63, %v246_v9  ;;  %v409_v3 = vpop.f32.mrb[1].mxu0 }
 0x186   : > { %v325_v4 = vmax.f32 %v322_v2, 0.0 }
 0x188   : > { %329 = vst.msk [vmem:[%s327_s30] sm:$0xff] %vm328_vm4, %v325_v4 }

// kernel: decoder_forward.7
= control target key start
LH: loop header
LB: loop body
LE: loop exit
PB: predicated region body
PF: predicated region fallthrough
CT: control target
= control target key end

     0   :  { %s924_s12 = smov 0   ;;  %s1162_s0 = inlined_call_operand.vmem [shape: f32[67,8,134], index: 0, kind: input, shape index: {}]   ;;  %s1163_s1 = inlined_call_operand.vmem [shape: f32[16,200], index: 1, kind: input, shape index: {}]   ;;  %s1164_s2 = inlined_call_operand.vmem [shape: f32[16,1], index: 2, kind: input, shape index: {}]   ;;  %s1165_s3 = inlined_call_operand.vmem [shape: f32[63,16,126], index: 3, kind: output, shape index: {}]  }
   0x1 LB: > { %s614_s13 = sadd.s32 4294967295, %s887_s12   ;;  %p617_p0 = scmp.ge.s32.totalorder %s887_s12, 1  ;;  %s887_s12 = sphi %s924_s12, %s13_s12  }
   0x2   : > { %p127_p1 = scmp.lt.s32.totalorder %s887_s12, 4 }
   0x4   : > { %p128_p2 = pnand %p617_p0, %p127_p1 }
   0x5   : > { %s932_s14 = smul.u32 (!%p128_p2), 21, %s614_s13  ;;  %v937_v0 = vld [vmem:[%s1164_s2] sm:$0xff] (!%p128_p2)  ;;  %v942_v1 = vld [vmem:[%s1164_s2 + $0x8] sm:$0xff] (!%p128_p2)  ;;  %v957_v4 = vld [vmem:[%s1163_s1 + $0x10] sm:$0xff] (!%p128_p2)  ;;  %s971_s5 = smov (!%p128_p2), 0  }
   0x6   : > { %131 = sbr.rel (%p128_p2) target bundleno = 427 (0x1ab), region = 32  ;;  %v947_v2 = vld [vmem:[%s1163_s1] sm:$0xff] (!%p128_p2)  ;;  %v952_v3 = vld [vmem:[%s1163_s1 + $0x8] sm:$0xff] (!%p128_p2)  ;;  %v962_v5 = vld [vmem:[%s1163_s1 + $0x18] sm:$0xff] (!%p128_p2) }
   0x7   : > { %p148_p3 = scmp.lt.s32.totalorder (!%p128_p2), %s932_s14, 62 }
   0xd   : > { %s149_s27 = scalar_select %p148_p3, %s932_s14, 62 }
   0xf   : > { %s639_s28 = sshll.u32 %s149_s27, 4 }
  0x10   : > { %s969_s4 = scalar_lea.vmem %s1165_s3, %s639_s28 }
  0x11 LB: >> { %s167_s6 = sadd.s32 %s891_s5, %s932_s14  ;;  %v893_v6 = vmov 0.0|0.0   ;;  %s894_s11 = smov 127   ;;  %vm448_vm0 = vcmask 588800   ;;  %v902_v24 = vmov 0   ;;  %vm179_vm1 = vcmask 1014784   ;;  %s891_s5 = sphi %s971_s5, %s166_s5  }
  0x12   : >> { %s640_s7 = sshll.u32 %s167_s6, 4  ;;  %641 = vmatprep.subr.bf16.mxu0 %v893_v6  ;;  %677 = vmatprep.subr.bf16.mxu1 %v893_v6  ;;  %s895_s13 = smov 124   ;;  %vm191_vm2 = vcmask 1006592   ;;  %vm182_vm3 = vcmask 515072   ;;  %vm202_vm4 = vcmask 998400   ;;  %vm213_vm5 = vcmask 990208  }
  0x13   : >> { %s981_s10 = scalar_lea.vmem %s1162_s0, %s640_s7  ;;  %s896_s15 = smov 122   ;;  %634 = vmatprep.mubr.msk.f32.mxu0 %vm448_vm0, %v952_v3  ;;  %635 = vmatprep.mubr.msk.f32.mxu1 %vm448_vm0, %v962_v5  ;;  %vm222_vm6 = vcmask 982016   ;;  %vm534_vm7 = vcmask 1031168  }
  0x14   : >> { %v986_v7 = vld [vmem:[%s981_s10] sm:$0xff]  ;;  %v989_v8 = vld [vmem:[%s981_s10 + $0x10] sm:$0xff]  ;;  %v172_v9 = vld [vmem:[%s981_s10 + $0x8] sm:$0xff]  ;;  %s897_s16 = smov 123   ;;  %s898_s17 = smov 126   ;;  %876 = vset.pattern.permute.xlu1 %v902_v24  ;;  %875 = vset.pattern.permute.xlu0 %v902_v24 }
  0x15   : >> { %v740_v10 = vpack.i.bf16 %v989_v8, %v986_v7  ;;  %v730_v11 = vpack.i.bf16 %v172_v9, %v986_v7  ;;  %s899_s18 = smov 121   ;;  %v624_v12 = vld [vmem:[%s981_s10 + $0x18] sm:$0xff]  ;;  %s900_s19 = smov 120   ;;  %v1008_v14 = vld [vmem:[%s981_s10 + $0x20] sm:$0xff]  ;;  %v627_v15 = vld [vmem:[%s981_s10 + $0x28] sm:$0xff] }
  0x16   : >> { %s901_s20 = smov 125   ;;  %v775_v13 = vpack.i.bf16 %v624_v12, %v989_v8  ;;  %v795_v16 = vpack.i.bf16 %v627_v15, %v1008_v14  ;;  %v1015_v17 = vld [vmem:[%s981_s10 + $0x30] sm:$0xff]  ;;  %v630_v19 = vld [vmem:[%s981_s10 + $0x38] sm:$0xff]  ;;  %v633_v21 = vld [vmem:[%s981_s10 + $0x48] sm:$0xff]  ;;  %s636_s21 = sshll.u32 %s891_s5, 4 }
  0x17   : >> { %741 = vrot.lane.b32.xlu1 %v740_v10, %s894_s11  ;;  %731 = vrot.lane.b32.xlu0 %v730_v11, %s895_s13  ;;  %v805_v18 = vpack.i.bf16 %v1015_v17, %v1008_v14  ;;  %v835_v20 = vpack.i.bf16 %v630_v19, %v1015_v17  ;;  %v1037_v22 = vld [vmem:[%s981_s10 + $0x40] sm:$0xff]  ;;  %s533_s22 = scalar_lea.vmem %s969_s4, %s636_s21  ;;  %s166_s5 = sadd.s32 1, %s891_s5  }
  0x18   : >> { %v860_v23 = vpack.i.bf16 %v633_v21, %v1037_v22  ;;  %p163_p4 = scmp.ge.s32.totalorder %s166_s5, 21  }
  0x1b   : >> { %746 = vrot.lane.b32.xlu1 %v730_v11, %s896_s15  ;;  %736 = vrot.lane.b32.xlu0 %v730_v11, %s897_s16 }
  0x1f   : >> { %756 = vrot.lane.b32.xlu1 %v740_v10, %s898_s17  ;;  %751 = vrot.lane.b32.xlu0 %v730_v11, %s899_s18 }
  0x23   : >> { %766 = vrot.lane.b32.xlu1 %v730_v11, %s900_s19  ;;  %761 = vrot.lane.b32.xlu0 %v740_v10, %s901_s20 }
  0x27   : >> { %776 = vrot.lane.b32.xlu1 %v775_v13, %s897_s16  ;;  %771 = vrot.lane.b32.xlu0 %v775_v13, %s895_s13 }
  0x2b   : >> { %786 = vrot.lane.b32.xlu1 %v775_v13, %s899_s18  ;;  %781 = vrot.lane.b32.xlu0 %v775_v13, %s896_s15 }
  0x2f   : >> { %796 = vrot.lane.b32.xlu1 %v795_v16, %s895_s13  ;;  %791 = vrot.lane.b32.xlu0 %v775_v13, %s900_s19 }
  0x33   : >> { %806 = vrot.lane.b32.xlu1 %v805_v18, %s894_s11  ;;  %801 = vrot.lane.b32.xlu0 %v795_v16, %s897_s16 }
  0x37   : >> { %816 = vrot.lane.b32.xlu1 %v795_v16, %s899_s18  ;;  %811 = vrot.lane.b32.xlu0 %v795_v16, %s896_s15 }
  0x3b   : >> { %826 = vrot.lane.b32.xlu1 %v805_v18, %s901_s20  ;;  %821 = vrot.lane.b32.xlu0 %v805_v18, %s898_s17 }
  0x3f   : >> { %836 = vrot.lane.b32.xlu1 %v835_v20, %s895_s13  ;;  %831 = vrot.lane.b32.xlu0 %v795_v16, %s900_s19 }
  0x43   : >> { %846 = vrot.lane.b32.xlu1 %v835_v20, %s896_s15  ;;  %841 = vrot.lane.b32.xlu0 %v835_v20, %s897_s16 }
  0x47   : >> { %856 = vrot.lane.b32.xlu1 %v835_v20, %s900_s19  ;;  %851 = vrot.lane.b32.xlu0 %v835_v20, %s899_s18 }
  0x4b   : >> { %395 = vrot.lane.b32.xlu1 %v633_v21, %s895_s13  ;;  %393 = vrot.lane.b32.xlu0 %v1037_v22, %s895_s13 }
  0x4f   : >> { %400 = vrot.lane.b32.xlu1 %v1037_v22, %s894_s11  ;;  %861 = vrot.lane.b32.xlu0 %v860_v23, %s897_s16 }
  0x53   : >> { %871 = vrot.lane.b32.xlu1 %v860_v23, %s899_s18  ;;  %866 = vrot.lane.b32.xlu0 %v860_v23, %s896_s15 }
  0x57   : >> { %420 = vrot.lane.b32.xlu1 %v1037_v22, %s901_s20  ;;  %410 = vrot.lane.b32.xlu0 %v1037_v22, %s898_s17 }
  0x5b   : >> { %433 = vrot.lane.b32.xlu1 %v633_v21, %s900_s19  ;;  %431 = vrot.lane.b32.xlu0 %v1037_v22, %s900_s19 }
  0x5f   : >> { %445 = vperm.xlu1 %876, %v942_v1   ;;  %440 = vperm.xlu0 %875, %v937_v0  }
  0x89   : >> { %v1059_v25 = vpop.permute.xlu1 %741  ;;  %v732_v26 = vpop.permute.xlu0 %731 }
  0x8a   : >> { %v734_v27 = vunpack.i.h.bf16 %v732_v26  ;;  %v733_v28 = vunpack.i.l.bf16 %v732_v26  ;;  %v743_v33 = vunpack.i.l.bf16 %v1059_v25  ;;  %v744_v21 = vunpack.i.h.bf16 %v1059_v25 }
  0x8c   : >> { %v180_v34 = vsel %vm179_vm1, %v733_v28, %v734_v27 }
  0x8d   : >> { %v747_v29 = vpop.permute.xlu1 %746  ;;  %v737_v30 = vpop.permute.xlu0 %736  ;;  %v183_v40 = vsel %vm182_vm3, %v986_v7, %v180_v34 }
  0x8e   : >> { %v739_v31 = vunpack.i.h.bf16 %v737_v30  ;;  %v738_v32 = vunpack.i.l.bf16 %v737_v30  ;;  %v749_v39 = vunpack.i.h.bf16 %v747_v29  ;;  %v748_v41 = vunpack.i.l.bf16 %v747_v29 }
  0x90   : >> { %v192_v35 = vsel %vm191_vm2, %v738_v32, %v739_v31  ;;  %v203_v49 = vsel %vm202_vm4, %v748_v41, %v749_v39 }
  0x91   : >> { %v757_v36 = vpop.permute.xlu1 %756  ;;  %v752_v37 = vpop.permute.xlu0 %751  ;;  %v194_v38 = vsel %vm182_vm3, %v743_v33, %v192_v35 }
  0x92   : >> { %v754_v42 = vunpack.i.h.bf16 %v752_v37  ;;  %v753_v43 = vunpack.i.l.bf16 %v752_v37  ;;  %v642_v44 = vpack.c.bf16 %v194_v38, %v183_v40  ;;  %v758_v45 = vunpack.i.l.bf16 %v757_v36 }
  0x93   : >> { %v759_v11 = vunpack.i.h.bf16 %v757_v36 }
  0x94   : >> { %643 = vmatpush1.bf16.msra.mxu0 %v642_v44  ;;  %690 = vmatpush1.bf16.msra.mxu1 %v642_v44  ;;  %v214_v50 = vsel %vm213_vm5, %v753_v43, %v754_v42  ;;  %v205_v53 = vsel %vm182_vm3, %v758_v45, %v203_v49 }
  0x95   : >> { %v767_v46 = vpop.permute.xlu1 %766  ;;  %v1067_v47 = vpop.permute.xlu0 %761  ;;  %644 = vmatprep.subr.bf16.mxu0 %v893_v6  ;;  %678 = vmatprep.subr.bf16.mxu1 %v893_v6 }
  0x96   : >> { %v763_v48 = vunpack.i.l.bf16 %v1067_v47  ;;  %v769_v51 = vunpack.i.h.bf16 %v767_v46  ;;  %v768_v52 = vunpack.i.l.bf16 %v767_v46  ;;  %v764_v33 = vunpack.i.h.bf16 %v1067_v47 }
  0x98   : >> { %v216_v54 = vsel %vm182_vm3, %v763_v48, %v214_v50  ;;  %v223_v60 = vsel %vm222_vm6, %v768_v52, %v769_v51 }
  0x99   : >> { %v777_v55 = vpop.permute.xlu1 %776  ;;  %v772_v56 = vpop.permute.xlu0 %771  ;;  %v645_v57 = vpack.c.bf16 %v216_v54, %v205_v53  ;;  %v225_v15 = vsel %vm182_vm3, %v733_v28, %v223_v60 }
  0x9a   : >> { %v774_v58 = vunpack.i.h.bf16 %v772_v56  ;;  %v773_v59 = vunpack.i.l.bf16 %v772_v56  ;;  %v779_v61 = vunpack.i.h.bf16 %v777_v55  ;;  %v778_v62 = vunpack.i.l.bf16 %v777_v55 }
  0x9b   : >> { %646 = vmatpush1.bf16.msra.mxu0 %v645_v57  ;;  %691 = vmatpush1.bf16.msra.mxu1 %v645_v57 }
  0x9c   : >> { %v238_v63 = vsel %vm179_vm1, %v773_v59, %v774_v58  ;;  %647 = vmatprep.subr.bf16.mxu0 %v893_v6  ;;  %679 = vmatprep.subr.bf16.mxu1 %v893_v6  ;;  %v248_v16 = vsel %vm191_vm2, %v778_v62, %v779_v61 }
  0x9d   : >> { %v787_v7 = vpop.permute.xlu1 %786  ;;  %v782_v9 = vpop.permute.xlu0 %781  ;;  %v240_v10 = vsel %vm182_vm3, %v989_v8, %v238_v63  ;;  %v250_v28 = vsel %vm182_vm3, %v744_v21, %v248_v16 }
  0x9e   : >> { %v784_v12 = vunpack.i.h.bf16 %v782_v9  ;;  %v783_v13 = vunpack.i.l.bf16 %v782_v9  ;;  %v789_v18 = vunpack.i.h.bf16 %v787_v7  ;;  %v788_v19 = vunpack.i.l.bf16 %v787_v7 }
  0x9f   : >> { %v648_v20 = vpack.c.bf16 %v240_v10, %v225_v15 }
  0xa0   : >> { %v258_v23 = vsel %vm202_vm4, %v783_v13, %v784_v12  ;;  %v268_v30 = vsel %vm213_vm5, %v788_v19, %v789_v18 }
  0xa1   : >> { %649 = vmatpush1.bf16.msra.mxu0 %v648_v20  ;;  %692 = vmatpush1.bf16.msra.mxu1 %v648_v20  ;;  %v1086_v24 = vpop.permute.xlu1 %796  ;;  %v792_v26 = vpop.permute.xlu0 %791  ;;  %v260_v8 = vsel %vm182_vm3, %v759_v11, %v258_v23  ;;  %v270_v41 = vsel %vm182_vm3, %v764_v33, %v268_v30 }
  0xa2   : >> { %v794_v27 = vunpack.i.h.bf16 %v792_v26  ;;  %v793_v29 = vunpack.i.l.bf16 %v792_v26  ;;  %650 = vmatprep.subr.bf16.mxu0 %v893_v6  ;;  %680 = vmatprep.subr.bf16.mxu1 %v893_v6  ;;  %v799_v25 = vunpack.i.h.bf16 %v1086_v24  ;;  %v798_v31 = vunpack.i.l.bf16 %v1086_v24 }
  0xa3   : >> { %v651_v32 = vpack.c.bf16 %v260_v8, %v250_v28 }
  0xa4   : >> { %v276_v34 = vsel %vm222_vm6, %v793_v29, %v794_v27  ;;  %v291_v42 = vsel %vm179_vm1, %v798_v31, %v799_v25 }
  0xa5   : >> { %652 = vmatpush1.bf16.msra.mxu0 %v651_v32  ;;  %693 = vmatpush1.bf16.msra.mxu1 %v651_v32  ;;  %v1097_v35 = vpop.permute.xlu1 %806  ;;  %v802_v36 = vpop.permute.xlu0 %801  ;;  %v278_v37 = vsel %vm182_vm3, %v773_v59, %v276_v34  ;;  %v293_v49 = vsel %vm182_vm3, %v1008_v14, %v291_v42 }
  0xa6   : >> { %v808_v38 = vunpack.i.l.bf16 %v1097_v35  ;;  %v804_v39 = vunpack.i.h.bf16 %v802_v36  ;;  %v803_v40 = vunpack.i.l.bf16 %v802_v36  ;;  %653 = vmatprep.subr.bf16.mxu0 %v893_v6  ;;  %681 = vmatprep.subr.bf16.mxu1 %v893_v6  ;;  %v654_v43 = vpack.c.bf16 %v278_v37, %v270_v41 }
  0xa7   : >> { %v809_v26 = vunpack.i.h.bf16 %v1097_v35 }
  0xa8   : >> { %v301_v44 = vsel %vm191_vm2, %v803_v40, %v804_v39 }
  0xa9   : >> { %655 = vmatpush1.bf16.msra.mxu0 %v654_v43  ;;  %694 = vmatpush1.bf16.msra.mxu1 %v654_v43  ;;  %v817_v45 = vpop.permute.xlu1 %816  ;;  %v812_v46 = vpop.permute.xlu0 %811  ;;  %v303_v47 = vsel %vm182_vm3, %v808_v38, %v301_v44 }
  0xaa   : >> { %v819_v48 = vunpack.i.h.bf16 %v817_v45  ;;  %656 = vmatprep.subr.bf16.mxu0 %v893_v6  ;;  %682 = vmatprep.subr.bf16.mxu1 %v893_v6  ;;  %v818_v50 = vunpack.i.l.bf16 %v817_v45  ;;  %v814_v51 = vunpack.i.h.bf16 %v812_v46  ;;  %v813_v52 = vunpack.i.l.bf16 %v812_v46 }
  0xab   : >> { %v657_v53 = vpack.c.bf16 %v303_v47, %v293_v49 }
  0xac   : >> { %v321_v58 = vsel %vm213_vm5, %v818_v50, %v819_v48  ;;  %v311_v59 = vsel %vm202_vm4, %v813_v52, %v814_v51 }
  0xad   : >> { %658 = vmatpush1.bf16.msra.mxu0 %v657_v53  ;;  %695 = vmatpush1.bf16.msra.mxu1 %v657_v53  ;;  %v827_v54 = vpop.permute.xlu1 %826  ;;  %v822_v55 = vpop.permute.xlu0 %821 }
  0xae   : >> { %v828_v56 = vunpack.i.l.bf16 %v827_v54  ;;  %v823_v57 = vunpack.i.l.bf16 %v822_v55  ;;  %659 = vmatprep.subr.bf16.mxu0 %v893_v6  ;;  %683 = vmatprep.subr.bf16.mxu1 %v893_v6  ;;  %v824_v8 = vunpack.i.h.bf16 %v822_v55  ;;  %v829_v35 = vunpack.i.h.bf16 %v827_v54 }
  0xb0   : >> { %v313_v14 = vsel %vm182_vm3, %v823_v57, %v311_v59  ;;  %v323_v60 = vsel %vm182_vm3, %v828_v56, %v321_v58 }
  0xb1   : >> { %v837_v61 = vpop.permute.xlu1 %836  ;;  %v832_v62 = vpop.permute.xlu0 %831  ;;  %v660_v63 = vpack.c.bf16 %v323_v60, %v313_v14 }
  0xb2   : >> { %v839_v7 = vunpack.i.h.bf16 %v837_v61  ;;  %v838_v9 = vunpack.i.l.bf16 %v837_v61  ;;  %v834_v10 = vunpack.i.h.bf16 %v832_v62  ;;  %v833_v11 = vunpack.i.l.bf16 %v832_v62 }
  0xb3   : >> { %661 = vmatpush1.bf16.msra.mxu0 %v660_v63  ;;  %696 = vmatpush1.bf16.msra.mxu1 %v660_v63 }
  0xb4   : >> { %v344_v12 = vsel %vm179_vm1, %v838_v9, %v839_v7  ;;  %v329_v13 = vsel %vm222_vm6, %v833_v11, %v834_v10  ;;  %662 = vmatprep.subr.bf16.mxu0 %v893_v6  ;;  %684 = vmatprep.subr.bf16.mxu1 %v893_v6 }
  0xb5   : >> { %v847_v15 = vpop.permute.xlu1 %846  ;;  %v842_v16 = vpop.permute.xlu0 %841  ;;  %v331_v18 = vsel %vm182_vm3, %v798_v31, %v329_v13  ;;  %v346_v19 = vsel %vm182_vm3, %v1015_v17, %v344_v12  ;;  %v903_v12 = vmov 0.0  }
  0xb6   : >> { %v849_v20 = vunpack.i.h.bf16 %v847_v15  ;;  %v848_v21 = vunpack.i.l.bf16 %v847_v15  ;;  %v844_v23 = vunpack.i.h.bf16 %v842_v16  ;;  %v843_v24 = vunpack.i.l.bf16 %v842_v16 }
  0xb7   : >> { %v663_v27 = vpack.c.bf16 %v346_v19, %v331_v18 }
  0xb8   : >> { %v364_v29 = vsel %vm202_vm4, %v848_v21, %v849_v20  ;;  %v354_v28 = vsel %vm191_vm2, %v843_v24, %v844_v23 }
  0xb9   : >> { %664 = vmatpush1.bf16.msra.mxu0 %v663_v27  ;;  %697 = vmatpush1.bf16.msra.mxu1 %v663_v27  ;;  %v857_v30 = vpop.permute.xlu1 %856  ;;  %v852_v25 = vpop.permute.xlu0 %851  ;;  %v356_v31 = vsel %vm182_vm3, %v809_v26, %v354_v28  ;;  %v366_v17 = vsel %vm182_vm3, %v824_v8, %v364_v29 }
  0xba   : >> { %v859_v32 = vunpack.i.h.bf16 %v857_v30  ;;  %v858_v33 = vunpack.i.l.bf16 %v857_v30  ;;  %v854_v34 = vunpack.i.h.bf16 %v852_v25  ;;  %v853_v36 = vunpack.i.l.bf16 %v852_v25  ;;  %665 = vmatprep.subr.bf16.mxu0 %v893_v6  ;;  %685 = vmatprep.subr.bf16.mxu1 %v893_v6 }
  0xbb   : >> { %v666_v37 = vpack.c.bf16 %v366_v17, %v356_v31 }
  0xbc   : >> { %v382_v38 = vsel %vm222_vm6, %v858_v33, %v859_v32  ;;  %v374_v39 = vsel %vm213_vm5, %v853_v36, %v854_v34 }
  0xbd   : >> { %667 = vmatpush1.bf16.msra.mxu0 %v666_v37  ;;  %698 = vmatpush1.bf16.msra.mxu1 %v666_v37  ;;  %v396_v40 = vpop.permute.xlu1 %395  ;;  %v394_v41 = vpop.permute.xlu0 %393  ;;  %v376_v42 = vsel %vm182_vm3, %v829_v35, %v374_v39  ;;  %v384_v43 = vsel %vm182_vm3, %v838_v9, %v382_v38 }
  0xbe   : >> { %668 = vmatprep.subr.bf16.mxu0 %v893_v6  ;;  %686 = vmatprep.subr.bf16.mxu1 %v893_v6  ;;  %v669_v44 = vpack.c.bf16 %v384_v43, %v376_v42  ;;  %v397_v47 = vsel %vm179_vm1, %v394_v41, %v396_v40 }
  0xbf   : >> { %v399_v51 = vsel %vm182_vm3, %v1037_v22, %v397_v47 }
  0xc1   : >> { %670 = vmatpush1.bf16.msra.mxu0 %v669_v44  ;;  %699 = vmatpush1.bf16.msra.mxu1 %v669_v44  ;;  %v401_v45 = vpop.permute.xlu1 %400  ;;  %v862_v46 = vpop.permute.xlu0 %861 }
  0xc2   : >> { %v864_v48 = vunpack.i.h.bf16 %v862_v46  ;;  %v863_v49 = vunpack.i.l.bf16 %v862_v46  ;;  %671 = vmatprep.subr.bf16.mxu0 %v893_v6  ;;  %687 = vmatprep.subr.bf16.mxu1 %v893_v6 }
  0xc4   : >> { %v407_v50 = vsel %vm191_vm2, %v863_v49, %v864_v48 }
  0xc5   : >> { %v872_v52 = vpop.permute.xlu1 %871  ;;  %v867_v53 = vpop.permute.xlu0 %866  ;;  %v409_v54 = vsel %vm182_vm3, %v401_v45, %v407_v50 }
  0xc6   : >> { %v874_v55 = vunpack.i.h.bf16 %v872_v52  ;;  %v873_v56 = vunpack.i.l.bf16 %v872_v52  ;;  %v869_v57 = vunpack.i.h.bf16 %v867_v53  ;;  %v868_v58 = vunpack.i.l.bf16 %v867_v53 }
  0xc7   : >> { %v672_v59 = vpack.c.bf16 %v409_v54, %v399_v51 }
  0xc8   : >> { %v427_v14 = vsel %vm213_vm5, %v873_v56, %v874_v55  ;;  %v417_v60 = vsel %vm202_vm4, %v868_v58, %v869_v57 }
  0xc9   : >> { %673 = vmatpush1.bf16.msra.mxu0 %v672_v59  ;;  %700 = vmatpush1.bf16.msra.mxu1 %v672_v59  ;;  %v421_v61 = vpop.permute.xlu1 %420  ;;  %v411_v62 = vpop.permute.xlu0 %410 }
  0xca   : >> { %v429_v63 = vsel %vm182_vm3, %v421_v61, %v427_v14  ;;  %v419_v22 = vsel %vm182_vm3, %v411_v62, %v417_v60  ;;  %674 = vmatprep.subr.bf16.mxu0 %v893_v6  ;;  %688 = vmatprep.subr.bf16.mxu1 %v893_v6 }
  0xcb   : >> { %v675_v7 = vpack.c.bf16 %v429_v63, %v419_v22 }
  0xcd   : >> { %v434_v9 = vpop.permute.xlu1 %433  ;;  %v432_v10 = vpop.permute.xlu0 %431  ;;  %676 = vmatpush1.bf16.msra.mxu0 %v675_v7  ;;  %701 = vmatpush1.bf16.msra.mxu1 %v675_v7 }
  0xce   : >> { %v435_v11 = vsel %vm222_vm6, %v432_v10, %v434_v9  ;;  %503 = vmatprep.subr.mxu0 %v903_v12  ;;  %689 = vmatprep.subr.mxu1 %v903_v12 }
  0xcf   : >> { %v437_v13 = vsel %vm182_vm3, %v394_v41, %v435_v11 }
  0xd1   : >> { %504 = vmatpush1.msra.mxu0 %v437_v13  ;;  %702 = vmatpush1.msra.mxu1 %v437_v13 }
  0xd2   : >> { %520 = vmatmul.mubr.f32.vlgmr.msra.gmra.mrb[0].mxu0 %v947_v2  ;;  %525 = vmatmul.mubr.f32.vlgmr.msra.gmra.mrb[0].mxu1 %v957_v4 }
  0xde   : >> { %v446_v6 = vpop.permute.xlu1 %445  ;;  %v441_v15 = vpop.permute.xlu0 %440 }
 0x1a4   : > { %165 = sbr.rel (!%p163_p4) target bundleno = 17 (0x11), region = 72 }
 0x1a5   : >> { %v521_v16 = vpop.f32.mrb[0].mxu0  ;;  %v526_v18 = vpop.f32.mrb[0].mxu1 }
 0x1a6   : >> { %v522_v19 = vadd.f32 %v521_v16, %v441_v15  ;;  %v527_v20 = vadd.f32 %v526_v18, %v446_v6  ;;  %v523_v21 = vpop.f32.mrb[1].mxu0  ;;  %v528_v23 = vpop.f32.mrb[1].mxu1 }
 0x1a8   : >> { %v530_v24 = vmax.f32 %v522_v19, 0.0  ;;  %v531_v26 = vmax.f32 %v527_v20, 0.0 }
 0x1aa   : >> { %535 = vst.msk [vmem:[%s533_s22] sm:$0xff] %vm534_vm7, %v530_v24  ;;  %536 = vst.msk [vmem:[%s533_s22 + $0x8] sm:$0xff] %vm534_vm7, %v531_v26 }
 0x1ab PF: > { %s13_s12 = sadd.s32 1, %s887_s12  }
 0x1ac   : > { %p10_p5 = scmp.ge.s32.totalorder %s13_s12, 5  }
 0x1ae   :  { %12 = sbr.rel (!%p10_p5) target bundleno = 1 (0x1), region = 83 }

// kernel: decoder_forward.8
= control target key start
LH: loop header
LB: loop body
LE: loop exit
PB: predicated region body
PF: predicated region fallthrough
CT: control target
= control target key end

     0   :  { %s1258_s12 = smov 0   ;;  %s1585_s0 = inlined_call_operand.vmem [shape: f32[129,16,258], index: 0, kind: input, shape index: {}]   ;;  %s1586_s1 = inlined_call_operand.vmem [shape: f32[32,256], index: 1, kind: input, shape index: {}]   ;;  %s1587_s2 = inlined_call_operand.vmem [shape: f32[32,1], index: 2, kind: input, shape index: {}]   ;;  %s1588_s3 = inlined_call_operand.vmem [shape: f32[126,32,252], index: 3, kind: output, shape index: {}]  }
   0x1 LB: > { %s874_s13 = sadd.s32 4294967295, %s1223_s12   ;;  %p877_p0 = scmp.ge.s32.totalorder %s1223_s12, 1  ;;  %s1223_s12 = sphi %s1258_s12, %s13_s12  }
   0x2   : > { %p127_p1 = scmp.lt.s32.totalorder %s1223_s12, 4 }
   0x4   : > { %p128_p2 = pnand %p877_p0, %p127_p1 }
   0x5   : > { %v160_v0 = vld [vmem:[%s1586_s1 + $0x8] sm:$0xff] (!%p128_p2)  ;;  %v162_v1 = vld [vmem:[%s1586_s1 + $0x18] sm:$0xff] (!%p128_p2)  ;;  %v159_v2 = vld [vmem:[%s1586_s1] sm:$0xff] (!%p128_p2)  ;;  %s1275_s20 = smul.u32 (!%p128_p2), 42, %s874_s13  ;;  %s1229_s6 = smov (!%p128_p2), 64   ;;  %vm183_vm0 = vcmask (!%p128_p2), 523264  }
   0x6   : > { %131 = sbr.rel (%p128_p2) target bundleno = 562 (0x232), region = 32  ;;  %v1011_v3 = vpack.i.bf16 (!%p128_p2), %v162_v1, %v160_v0  ;;  %v161_v4 = vld [vmem:[%s1586_s1 + $0x10] sm:$0xff] (!%p128_p2)  ;;  %v164_v5 = vld [vmem:[%s1586_s1 + $0x28] sm:$0xff] (!%p128_p2)  ;;  %v166_v6 = vld [vmem:[%s1586_s1 + $0x38] sm:$0xff] (!%p128_p2)  ;;  %s1343_s19 = smov (!%p128_p2), 0  }
   0x7   : > { %v1021_v7 = vpack.i.bf16 (!%p128_p2), %v161_v4, %v159_v2  ;;  %v163_v8 = vld [vmem:[%s1586_s1 + $0x20] sm:$0xff] (!%p128_p2)  ;;  %v165_v9 = vld [vmem:[%s1586_s1 + $0x30] sm:$0xff] (!%p128_p2)  ;;  %p148_p3 = scmp.lt.s32.totalorder (!%p128_p2), %s1275_s20, 125  ;;  %v1016_v11 = vpack.i.bf16 (!%p128_p2), %v166_v6, %v164_v5  ;;  %v1301_v12 = vld [vmem:[%s1587_s2 + $0x8] sm:$0xff] (!%p128_p2) }
   0x8   : > { %v1296_v10 = vld [vmem:[%s1587_s2] sm:$0xff] (!%p128_p2)  ;;  %1012 = vrot.lane.b32.xlu0 (!%p128_p2), %v1011_v3, %s1229_s6  ;;  %v1306_v13 = vld [vmem:[%s1587_s2 + $0x10] sm:$0xff] (!%p128_p2)  ;;  %v1311_v14 = vld [vmem:[%s1587_s2 + $0x18] sm:$0xff] (!%p128_p2)  ;;  %v1026_v15 = vpack.i.bf16 (!%p128_p2), %v165_v9, %v163_v8 }
   0x9   : > { %1022 = vrot.lane.b32.xlu1 (!%p128_p2), %v1021_v7, %s1229_s6 }
   0xc   : > { %1017 = vrot.lane.b32.xlu0 (!%p128_p2), %v1016_v11, %s1229_s6 }
   0xd   : > { %s149_s14 = scalar_select %p148_p3, %s1275_s20, 125  ;;  %1027 = vrot.lane.b32.xlu1 %v1026_v15, %s1229_s6 }
   0xf   : > { %s917_s15 = sshll.u32 %s149_s14, 6 }
  0x10   : > { %s1317_s18 = scalar_lea.vmem %s1588_s3, %s917_s15 }
  0x7a   : > { %v1013_v16 = vpop.permute.xlu0 %1012 }
  0x7b   : > { %v1015_v17 = vunpack.i.h.bf16 %v1013_v16  ;;  %v1014_v18 = vunpack.i.l.bf16 %v1013_v16  ;;  %v1023_v19 = vpop.permute.xlu1 %1022 }
  0x7c   : > { %v1025_v20 = vunpack.i.h.bf16 %v1023_v19  ;;  %v1024_v21 = vunpack.i.l.bf16 %v1023_v19 }
  0x7d   : > { %v1320_v22 = vsel %vm183_vm0, %v161_v4, %v1015_v17  ;;  %v1323_v23 = vsel %vm183_vm0, %v159_v2, %v1014_v18 }
  0x7e   : > { %v1326_v24 = vsel %vm183_vm0, %v1025_v20, %v162_v1  ;;  %v1329_v25 = vsel %vm183_vm0, %v1024_v21, %v160_v0  ;;  %v1018_v26 = vpop.permute.xlu0 %1017 }
  0x7f   : > { %v1020_v27 = vunpack.i.h.bf16 %v1018_v26  ;;  %v1019_v28 = vunpack.i.l.bf16 %v1018_v26  ;;  %v1028_v29 = vpop.permute.xlu1 %1027 }
  0x80   : > { %v1030_v30 = vunpack.i.h.bf16 %v1028_v29  ;;  %v1029_v31 = vunpack.i.l.bf16 %v1028_v29 }
  0x81   : > { %v1332_v32 = vsel %vm183_vm0, %v165_v9, %v1020_v27  ;;  %v1335_v33 = vsel %vm183_vm0, %v163_v8, %v1019_v28 }
  0x82   : > { %v1338_v34 = vsel %vm183_vm0, %v1030_v30, %v166_v6  ;;  %v1341_v35 = vsel %vm183_vm0, %v1029_v31, %v164_v5 }
  0x83 LB: >> { %s880_s21 = sshll.u32 %s1227_s19, 1  ;;  %s1230_s27 = smov 125   ;;  %v1236_v2 = vmov 0.0   ;;  %v1237_v3 = vmov 0   ;;  %vm233_vm1 = vcmask 1031168   ;;  %vm268_vm2 = vcmask 1006592   ;;  %s1227_s19 = sphi %s1343_s19, %s213_s19  }
  0x84   : >> { %s215_s22 = sadd.s32 %s880_s21, %s1275_s20  ;;  %s1231_s28 = smov 127   ;;  %471 = vmatprep.mubr.f32.mxu0 %v1236_v2  ;;  %750 = vmatprep.mubr.f32.mxu1 %v1236_v2  ;;  %vm281_vm3 = vcmask 1022976   ;;  %vm294_vm4 = vcmask 998400   ;;  %vm508_vm5 = vcmask 1014784  }
  0x85   : >> { %s918_s23 = smul.u32 48, %s215_s22  ;;  %s1232_s29 = smov 124   ;;  %1211 = vset.pattern.permute.xlu0 %v1237_v3  ;;  %1212 = vset.pattern.permute.xlu1 %v1237_v3 }
  0x86   : >> { %s1233_s30 = smov 123   ;;  %s1234_s4 = smov 126  }
  0x87   : >> { %s1353_s26 = scalar_lea.vmem %s1585_s0, %s918_s23  ;;  %s1235_s5 = smov 122  }
  0x88   : >> { %v220_v36 = vld [vmem:[%s1353_s26 + $0x8] sm:$0xff]  ;;  %v223_v37 = vld [vmem:[%s1353_s26 + $0x20] sm:$0xff]  ;;  %v1361_v40 = vld [vmem:[%s1353_s26 + $0x18] sm:$0xff]  ;;  %s920_s6 = sshll.u32 %s1227_s19, 7  ;;  %s213_s19 = sadd.s32 1, %s1227_s19  }
  0x89   : >> { %v1358_v38 = vld [vmem:[%s1353_s26] sm:$0xff]  ;;  %v1031_v39 = vpack.i.bf16 %v223_v37, %v220_v36  ;;  %v893_v41 = vld [vmem:[%s1353_s26 + $0x68] sm:$0xff]  ;;  %v1373_v46 = vld [vmem:[%s1353_s26 + $0x78] sm:$0xff]  ;;  %s1553_s7 = scalar_lea.vmem %s1317_s18, %s920_s6  ;;  %p210_p4 = scmp.ge.s32.totalorder %s213_s19, 21  }
  0x8a   : >> { %v896_v42 = vld [vmem:[%s1353_s26 + $0x80] sm:$0xff]  ;;  %v1041_v43 = vpack.i.bf16 %v1361_v40, %v1358_v38  ;;  %v221_v48 = vld [vmem:[%s1353_s26 + $0x10] sm:$0xff]  ;;  %v224_v49 = vld [vmem:[%s1353_s26 + $0x28] sm:$0xff] }
  0x8b   : >> { %1032 = vrot.lane.b32.xlu0 %v1031_v39, %s1230_s27  ;;  %v1036_v44 = vpack.i.bf16 %v896_v42, %v893_v41  ;;  %v1370_v45 = vld [vmem:[%s1353_s26 + $0x60] sm:$0xff]  ;;  %v1061_v50 = vpack.i.bf16 %v221_v48, %v220_v36  ;;  %v1066_v51 = vpack.i.bf16 %v224_v49, %v223_v37  ;;  %v894_v52 = vld [vmem:[%s1353_s26 + $0x70] sm:$0xff]  ;;  %v897_v53 = vld [vmem:[%s1353_s26 + $0x88] sm:$0xff] }
  0x8c   : >> { %1042 = vrot.lane.b32.xlu1 %v1041_v43, %s1231_s28  ;;  %v1051_v47 = vpack.i.bf16 %v1373_v46, %v1370_v45  ;;  %v1071_v54 = vpack.i.bf16 %v894_v52, %v893_v41  ;;  %v1076_v55 = vpack.i.bf16 %v897_v53, %v896_v42  ;;  %v900_v56 = vld [vmem:[%s1353_s26 + $0xc8] sm:$0xff]  ;;  %v903_v57 = vld [vmem:[%s1353_s26 + $0xe0] sm:$0xff]  ;;  %v1405_v60 = vld [vmem:[%s1353_s26 + $0xd8] sm:$0xff] }
  0x8d   : >> { %v1126_v58 = vpack.i.bf16 %v903_v57, %v900_v56  ;;  %v1402_v59 = vld [vmem:[%s1353_s26 + $0xc0] sm:$0xff]  ;;  %v901_v62 = vld [vmem:[%s1353_s26 + $0xd0] sm:$0xff]  ;;  %v904_v63 = vld [vmem:[%s1353_s26 + $0xe8] sm:$0xff] }
  0x8e   : >> { %v1141_v61 = vpack.i.bf16 %v1405_v60, %v1402_v59  ;;  %v1161_v0 = vpack.i.bf16 %v901_v62, %v900_v56  ;;  %v1166_v1 = vpack.i.bf16 %v904_v63, %v903_v57 }
  0x8f   : >> { %1037 = vrot.lane.b32.xlu0 %v1036_v44, %s1230_s27 }
  0x90   : >> { %1047 = vrot.lane.b32.xlu1 %v1031_v39, %s1232_s29 }
  0x93   : >> { %1052 = vrot.lane.b32.xlu0 %v1051_v47, %s1231_s28 }
  0x94   : >> { %1057 = vrot.lane.b32.xlu1 %v1036_v44, %s1232_s29 }
  0x97   : >> { %1062 = vrot.lane.b32.xlu0 %v1061_v50, %s1233_s30 }
  0x98   : >> { %1067 = vrot.lane.b32.xlu1 %v1066_v51, %s1233_s30 }
  0x9b   : >> { %1072 = vrot.lane.b32.xlu0 %v1071_v54, %s1233_s30 }
  0x9c   : >> { %1077 = vrot.lane.b32.xlu1 %v1076_v55, %s1233_s30 }
  0x9f   : >> { %1082 = vrot.lane.b32.xlu0 %v1041_v43, %s1234_s4 }
  0xa0   : >> { %1087 = vrot.lane.b32.xlu1 %v1051_v47, %s1234_s4 }
  0xa3   : >> { %1092 = vrot.lane.b32.xlu0 %v1041_v43, %s1230_s27 }
  0xa4   : >> { %1097 = vrot.lane.b32.xlu1 %v1061_v50, %s1235_s5 }
  0xa7   : >> { %1102 = vrot.lane.b32.xlu0 %v1066_v51, %s1235_s5 }
  0xa8   : >> { %1107 = vrot.lane.b32.xlu1 %v1051_v47, %s1230_s27 }
  0xab   : >> { %1112 = vrot.lane.b32.xlu0 %v1071_v54, %s1235_s5 }
  0xac   : >> { %1117 = vrot.lane.b32.xlu1 %v1076_v55, %s1235_s5 }
  0xaf   : >> { %1122 = vrot.lane.b32.xlu0 %v1036_v44, %s1230_s27 }
  0xb0   : >> { %1127 = vrot.lane.b32.xlu1 %v1126_v58, %s1230_s27 }
  0xb3   : >> { %1132 = vrot.lane.b32.xlu0 %v1051_v47, %s1231_s28 }
  0xb4   : >> { %1137 = vrot.lane.b32.xlu1 %v1036_v44, %s1232_s29 }
  0xb7   : >> { %1142 = vrot.lane.b32.xlu0 %v1141_v61, %s1231_s28 }
  0xb8   : >> { %1147 = vrot.lane.b32.xlu1 %v1126_v58, %s1232_s29 }
  0xbb   : >> { %1152 = vrot.lane.b32.xlu0 %v1071_v54, %s1233_s30 }
  0xbc   : >> { %1157 = vrot.lane.b32.xlu1 %v1076_v55, %s1233_s30 }
  0xbf   : >> { %1162 = vrot.lane.b32.xlu0 %v1161_v0, %s1233_s30 }
  0xc0   : >> { %1167 = vrot.lane.b32.xlu1 %v1166_v1, %s1233_s30 }
  0xc3   : >> { %1172 = vrot.lane.b32.xlu0 %v1051_v47, %s1234_s4 }
  0xc4   : >> { %1177 = vrot.lane.b32.xlu1 %v1141_v61, %s1234_s4 }
  0xc7   : >> { %1182 = vrot.lane.b32.xlu0 %v1051_v47, %s1230_s27 }
  0xc8   : >> { %1187 = vrot.lane.b32.xlu1 %v1071_v54, %s1235_s5 }
  0xcb   : >> { %1192 = vrot.lane.b32.xlu0 %v1076_v55, %s1235_s5 }
  0xcc   : >> { %1197 = vrot.lane.b32.xlu1 %v1141_v61, %s1230_s27 }
  0xcf   : >> { %1202 = vrot.lane.b32.xlu0 %v1161_v0, %s1235_s5 }
  0xd0   : >> { %1207 = vrot.lane.b32.xlu1 %v1166_v1, %s1235_s5 }
  0xd3   : >> { %389 = vperm.xlu0 %1211, %v1296_v10  }
  0xd4   : >> { %394 = vperm.xlu1 %1212, %v1301_v12  }
  0xd7   : >> { %404 = vperm.xlu0 %1211, %v1311_v14  }
  0xd8   : >> { %399 = vperm.xlu1 %1212, %v1306_v13  }
  0xfd   : >> { %v1033_v4 = vpop.permute.xlu0 %1032 }
  0xfe   : >> { %v1433_v5 = vunpack.i.h.bf16 %v1033_v4  ;;  %v1435_v6 = vunpack.i.l.bf16 %v1033_v4  ;;  %v1043_v7 = vpop.permute.xlu1 %1042 }
  0xff   : >> { %v1045_v20 = vunpack.i.h.bf16 %v1043_v7  ;;  %v1044_v21 = vunpack.i.l.bf16 %v1043_v7 }
 0x100   : >> { %v922_v8 = vpack.c.bf16 %v1433_v5, %v1435_v6  ;;  %v234_v9 = vsel %vm233_vm1, %v1358_v38, %v1435_v6  ;;  %v235_v11 = vsel %vm233_vm1, %v1361_v40, %v1433_v5 }
 0x101   : >> { %v1038_v15 = vpop.permute.xlu0 %1037  ;;  %v924_v16 = vpack.c.bf16 %v235_v11, %v234_v9 }
 0x102   : >> { %v1445_v17 = vunpack.i.h.bf16 %v1038_v15  ;;  %v1447_v18 = vunpack.i.l.bf16 %v1038_v15  ;;  %v1048_v19 = vpop.permute.xlu1 %1047  ;;  %923 = vmatprep.subr.bf16.mxu0 %v922_v8 }
 0x103   : >> { %v1050_v26 = vunpack.i.h.bf16 %v1048_v19  ;;  %v1049_v27 = vunpack.i.l.bf16 %v1048_v19  ;;  %925 = vmatpush1.bf16.msra.mxu0 %v924_v16 }
 0x104   : >> { %v954_v28 = vpack.c.bf16 %v1445_v17, %v1447_v18  ;;  %v536_v29 = vsel %vm233_vm1, %v1370_v45, %v1447_v18  ;;  %v537_v30 = vsel %vm233_vm1, %v1373_v46, %v1445_v17 }
 0x105   : >> { %v926_v31 = vpack.c.bf16 %v1050_v26, %v1049_v27  ;;  %v1053_v36 = vpop.permute.xlu0 %1052  ;;  %v250_v37 = vsel %vm233_vm1, %v1044_v21, %v1049_v27  ;;  %v251_v38 = vsel %vm233_vm1, %v1045_v20, %v1050_v26  ;;  %v956_v39 = vpack.c.bf16 %v537_v30, %v536_v29 }
 0x106   : >> { %v1055_v40 = vunpack.i.h.bf16 %v1053_v36  ;;  %v1054_v41 = vunpack.i.l.bf16 %v1053_v36  ;;  %v1058_v42 = vpop.permute.xlu1 %1057  ;;  %955 = vmatprep.subr.bf16.mxu1 %v954_v28  ;;  %v928_v43 = vpack.c.bf16 %v251_v38, %v250_v37 }
 0x107   : >> { %v1060_v44 = vunpack.i.h.bf16 %v1058_v42  ;;  %v1059_v47 = vunpack.i.l.bf16 %v1058_v42  ;;  %927 = vmatprep.subr.bf16.mxu0 %v926_v31  ;;  %957 = vmatpush1.bf16.msra.mxu1 %v956_v39 }
 0x108   : >> { %929 = vmatpush1.bf16.msra.mxu0 %v928_v43 }
 0x109   : >> { %v958_v48 = vpack.c.bf16 %v1060_v44, %v1059_v47  ;;  %v1063_v49 = vpop.permute.xlu0 %1062  ;;  %v552_v50 = vsel %vm233_vm1, %v1054_v41, %v1059_v47  ;;  %v553_v51 = vsel %vm233_vm1, %v1055_v40, %v1060_v44 }
 0x10a   : >> { %v1065_v52 = vunpack.i.h.bf16 %v1063_v49  ;;  %v1064_v53 = vunpack.i.l.bf16 %v1063_v49  ;;  %v1068_v54 = vpop.permute.xlu1 %1067  ;;  %v960_v55 = vpack.c.bf16 %v553_v51, %v552_v50 }
 0x10b   : >> { %v1070_v56 = vunpack.i.h.bf16 %v1068_v54  ;;  %v1069_v57 = vunpack.i.l.bf16 %v1068_v54  ;;  %959 = vmatprep.subr.bf16.mxu1 %v958_v48 }
 0x10c   : >> { %961 = vmatpush1.bf16.msra.mxu1 %v960_v55  ;;  %v269_v58 = vsel %vm268_vm2, %v1064_v53, %v1065_v52 }
 0x10d   : >> { %v1073_v61 = vpop.permute.xlu0 %1072  ;;  %v270_v62 = vsel %vm268_vm2, %v1069_v57, %v1070_v56 }
 0x10e   : >> { %v1075_v63 = vunpack.i.h.bf16 %v1073_v61  ;;  %v1074_v0 = vunpack.i.l.bf16 %v1073_v61  ;;  %v1078_v1 = vpop.permute.xlu1 %1077  ;;  %v930_v3 = vpack.c.bf16 %v270_v62, %v269_v58 }
 0x10f   : >> { %v1080_v4 = vunpack.i.h.bf16 %v1078_v1  ;;  %v1079_v7 = vunpack.i.l.bf16 %v1078_v1 }
 0x110   : >> { %931 = vmatprep.subr.bf16.mxu0 %v930_v3  ;;  %v570_v8 = vsel %vm268_vm2, %v1074_v0, %v1075_v63 }
 0x111   : >> { %v1083_v9 = vpop.permute.xlu0 %1082  ;;  %v571_v11 = vsel %vm268_vm2, %v1079_v7, %v1080_v4 }
 0x112   : >> { %v1085_v15 = vunpack.i.h.bf16 %v1083_v9  ;;  %v1084_v16 = vunpack.i.l.bf16 %v1083_v9  ;;  %v1088_v19 = vpop.permute.xlu1 %1087  ;;  %v962_v20 = vpack.c.bf16 %v571_v11, %v570_v8 }
 0x113   : >> { %v1090_v21 = vunpack.i.h.bf16 %v1088_v19  ;;  %v1089_v26 = vunpack.i.l.bf16 %v1088_v19 }
 0x114   : >> { %963 = vmatprep.subr.bf16.mxu1 %v962_v20  ;;  %v275_v27 = vsel %vm233_vm1, %v1084_v16, %v1064_v53  ;;  %v276_v28 = vsel %vm233_vm1, %v1085_v15, %v1069_v57 }
 0x115   : >> { %v1093_v29 = vpop.permute.xlu0 %1092  ;;  %v932_v30 = vpack.c.bf16 %v276_v28, %v275_v27  ;;  %v576_v31 = vsel %vm233_vm1, %v1089_v26, %v1074_v0  ;;  %v577_v36 = vsel %vm233_vm1, %v1090_v21, %v1079_v7 }
 0x116   : >> { %v1094_v37 = vunpack.i.l.bf16 %v1093_v29  ;;  %v1098_v38 = vpop.permute.xlu1 %1097  ;;  %v964_v39 = vpack.c.bf16 %v577_v36, %v576_v31  ;;  %v1095_v40 = vunpack.i.h.bf16 %v1093_v29 }
 0x117   : >> { %v1100_v41 = vunpack.i.h.bf16 %v1098_v38  ;;  %v1099_v42 = vunpack.i.l.bf16 %v1098_v38  ;;  %933 = vmatpush1.bf16.msra.mxu0 %v932_v30 }
 0x118   : >> { %965 = vmatpush1.bf16.msra.mxu1 %v964_v39  ;;  %v282_v43 = vsel %vm281_vm3, %v1094_v37, %v1435_v6  ;;  %v283_v50 = vsel %vm281_vm3, %v1095_v40, %v1433_v5 }
 0x119   : >> { %v1103_v44 = vpop.permute.xlu0 %1102  ;;  %v295_v52 = vsel %vm294_vm4, %v1099_v42, %v1100_v41  ;;  %v301_v55 = vsel %vm233_vm1, %v282_v43, %v1099_v42 }
 0x11a   : >> { %v1105_v47 = vunpack.i.h.bf16 %v1103_v44  ;;  %v1104_v48 = vunpack.i.l.bf16 %v1103_v44  ;;  %v1108_v49 = vpop.permute.xlu1 %1107 }
 0x11b   : >> { %v1109_v51 = vunpack.i.l.bf16 %v1108_v49  ;;  %v1110_v53 = vunpack.i.h.bf16 %v1108_v49 }
 0x11c   : >> { %v296_v54 = vsel %vm294_vm4, %v1104_v48, %v1105_v47  ;;  %v302_v56 = vsel %vm233_vm1, %v283_v50, %v1104_v48 }
 0x11d   : >> { %v1113_v57 = vpop.permute.xlu0 %1112  ;;  %v934_v58 = vpack.c.bf16 %v296_v54, %v295_v52  ;;  %v936_v6 = vpack.c.bf16 %v302_v56, %v301_v55  ;;  %v582_v0 = vsel %vm281_vm3, %v1109_v51, %v1447_v18  ;;  %v583_v3 = vsel %vm281_vm3, %v1110_v53, %v1445_v17 }
 0x11e   : >> { %v1115_v61 = vunpack.i.h.bf16 %v1113_v57  ;;  %v1114_v62 = vunpack.i.l.bf16 %v1113_v57  ;;  %v1118_v63 = vpop.permute.xlu1 %1117 }
 0x11f   : >> { %v1120_v5 = vunpack.i.h.bf16 %v1118_v63  ;;  %v1119_v1 = vunpack.i.l.bf16 %v1118_v63  ;;  %935 = vmatprep.subr.bf16.mxu0 %v934_v58 }
 0x120   : >> { %937 = vmatpush1.bf16.msra.mxu0 %v936_v6  ;;  %v594_v4 = vsel %vm294_vm4, %v1114_v62, %v1115_v61  ;;  %v600_v7 = vsel %vm233_vm1, %v582_v0, %v1114_v62 }
 0x121   : >> { %v1123_v8 = vpop.permute.xlu0 %1122  ;;  %v595_v9 = vsel %vm294_vm4, %v1119_v1, %v1120_v5  ;;  %v601_v11 = vsel %vm233_vm1, %v583_v3, %v1119_v1 }
 0x122   : >> { %v1485_v15 = vunpack.i.h.bf16 %v1123_v8  ;;  %v1487_v16 = vunpack.i.l.bf16 %v1123_v8  ;;  %v1128_v18 = vpop.permute.xlu1 %1127  ;;  %v966_v19 = vpack.c.bf16 %v595_v9, %v594_v4  ;;  %v968_v20 = vpack.c.bf16 %v601_v11, %v600_v7 }
 0x123   : >> { %v1489_v21 = vunpack.i.h.bf16 %v1128_v18  ;;  %v1491_v17 = vunpack.i.l.bf16 %v1128_v18 }
 0x124   : >> { %967 = vmatprep.subr.bf16.mxu1 %v966_v19  ;;  %v938_v26 = vpack.c.bf16 %v1485_v15, %v1487_v16  ;;  %v321_v27 = vsel %vm233_vm1, %v1370_v45, %v1487_v16  ;;  %v322_v28 = vsel %vm233_vm1, %v1373_v46, %v1485_v15 }
 0x125   : >> { %969 = vmatpush1.bf16.msra.mxu1 %v968_v20  ;;  %v1133_v29 = vpop.permute.xlu0 %1132  ;;  %v970_v30 = vpack.c.bf16 %v1489_v21, %v1491_v17  ;;  %v940_v31 = vpack.c.bf16 %v322_v28, %v321_v27  ;;  %v620_v36 = vsel %vm233_vm1, %v1402_v59, %v1491_v17  ;;  %v621_v37 = vsel %vm233_vm1, %v1405_v60, %v1489_v21 }
 0x126   : >> { %v1135_v38 = vunpack.i.h.bf16 %v1133_v29  ;;  %v1134_v45 = vunpack.i.l.bf16 %v1133_v29  ;;  %v1138_v39 = vpop.permute.xlu1 %1137  ;;  %939 = vmatprep.subr.bf16.mxu0 %v938_v26  ;;  %v972_v40 = vpack.c.bf16 %v621_v37, %v620_v36 }
 0x127   : >> { %v1140_v46 = vunpack.i.h.bf16 %v1138_v39  ;;  %v1139_v41 = vunpack.i.l.bf16 %v1138_v39  ;;  %971 = vmatprep.subr.bf16.mxu1 %v970_v30  ;;  %941 = vmatpush1.bf16.msra.mxu0 %v940_v31 }
 0x129   : >> { %v942_v42 = vpack.c.bf16 %v1140_v46, %v1139_v41  ;;  %973 = vmatpush1.bf16.msra.mxu1 %v972_v40  ;;  %v1143_v43 = vpop.permute.xlu0 %1142  ;;  %v337_v44 = vsel %vm233_vm1, %v1134_v45, %v1139_v41  ;;  %v338_v59 = vsel %vm233_vm1, %v1135_v38, %v1140_v46 }
 0x12a   : >> { %v1145_v47 = vunpack.i.h.bf16 %v1143_v43  ;;  %v1144_v48 = vunpack.i.l.bf16 %v1143_v43  ;;  %v1148_v49 = vpop.permute.xlu1 %1147  ;;  %v944_v60 = vpack.c.bf16 %v338_v59, %v337_v44 }
 0x12b   : >> { %v1150_v50 = vunpack.i.h.bf16 %v1148_v49  ;;  %v1149_v51 = vunpack.i.l.bf16 %v1148_v49  ;;  %943 = vmatprep.subr.bf16.mxu0 %v942_v42 }
 0x12c   : >> { %945 = vmatpush1.bf16.msra.mxu0 %v944_v60 }
 0x12d   : >> { %v974_v52 = vpack.c.bf16 %v1150_v50, %v1149_v51  ;;  %v1153_v53 = vpop.permute.xlu0 %1152  ;;  %v636_v54 = vsel %vm233_vm1, %v1144_v48, %v1149_v51  ;;  %v637_v55 = vsel %vm233_vm1, %v1145_v47, %v1150_v50 }
 0x12e   : >> { %v1155_v56 = vunpack.i.h.bf16 %v1153_v53  ;;  %v1154_v57 = vunpack.i.l.bf16 %v1153_v53  ;;  %v1158_v58 = vpop.permute.xlu1 %1157  ;;  %v976_v6 = vpack.c.bf16 %v637_v55, %v636_v54 }
 0x12f   : >> { %v1160_v61 = vunpack.i.h.bf16 %v1158_v58  ;;  %v1159_v62 = vunpack.i.l.bf16 %v1158_v58  ;;  %975 = vmatprep.subr.bf16.mxu1 %v974_v52 }
 0x130   : >> { %977 = vmatpush1.bf16.msra.mxu1 %v976_v6  ;;  %v355_v63 = vsel %vm268_vm2, %v1154_v57, %v1155_v56 }
 0x131   : >> { %v1163_v0 = vpop.permute.xlu0 %1162  ;;  %v356_v5 = vsel %vm268_vm2, %v1159_v62, %v1160_v61 }
 0x132   : >> { %v1165_v1 = vunpack.i.h.bf16 %v1163_v0  ;;  %v1164_v3 = vunpack.i.l.bf16 %v1163_v0  ;;  %v1168_v4 = vpop.permute.xlu1 %1167  ;;  %v946_v7 = vpack.c.bf16 %v356_v5, %v355_v63 }
 0x133   : >> { %v1170_v8 = vunpack.i.h.bf16 %v1168_v4  ;;  %v1169_v9 = vunpack.i.l.bf16 %v1168_v4 }
 0x134   : >> { %947 = vmatprep.subr.bf16.mxu0 %v946_v7  ;;  %v654_v11 = vsel %vm268_vm2, %v1164_v3, %v1165_v1 }
 0x135   : >> { %v1173_v18 = vpop.permute.xlu0 %1172  ;;  %v655_v19 = vsel %vm268_vm2, %v1169_v9, %v1170_v8 }
 0x136   : >> { %v1175_v20 = vunpack.i.h.bf16 %v1173_v18  ;;  %v1174_v26 = vunpack.i.l.bf16 %v1173_v18  ;;  %v1178_v27 = vpop.permute.xlu1 %1177  ;;  %v978_v28 = vpack.c.bf16 %v655_v19, %v654_v11 }
 0x137   : >> { %v1180_v29 = vunpack.i.h.bf16 %v1178_v27  ;;  %v1179_v30 = vunpack.i.l.bf16 %v1178_v27 }
 0x138   : >> { %979 = vmatprep.subr.bf16.mxu1 %v978_v28  ;;  %v361_v31 = vsel %vm233_vm1, %v1174_v26, %v1154_v57  ;;  %v362_v36 = vsel %vm233_vm1, %v1175_v20, %v1159_v62 }
 0x139   : >> { %v1183_v37 = vpop.permute.xlu0 %1182  ;;  %v948_v38 = vpack.c.bf16 %v362_v36, %v361_v31  ;;  %v660_v45 = vsel %vm233_vm1, %v1179_v30, %v1164_v3  ;;  %v661_v39 = vsel %vm233_vm1, %v1180_v29, %v1169_v9 }
 0x13a   : >> { %v1184_v40 = vunpack.i.l.bf16 %v1183_v37  ;;  %v1188_v46 = vpop.permute.xlu1 %1187  ;;  %v980_v41 = vpack.c.bf16 %v661_v39, %v660_v45  ;;  %v1185_v42 = vunpack.i.h.bf16 %v1183_v37 }
 0x13b   : >> { %v1190_v43 = vunpack.i.h.bf16 %v1188_v46  ;;  %v1189_v44 = vunpack.i.l.bf16 %v1188_v46  ;;  %949 = vmatpush1.bf16.msra.mxu0 %v948_v38 }
 0x13c   : >> { %981 = vmatpush1.bf16.msra.mxu1 %v980_v41  ;;  %v367_v59 = vsel %vm281_vm3, %v1184_v40, %v1487_v16  ;;  %v368_v50 = vsel %vm281_vm3, %v1185_v42, %v1485_v15 }
 0x13d   : >> { %v1193_v47 = vpop.permute.xlu0 %1192  ;;  %v379_v52 = vsel %vm294_vm4, %v1189_v44, %v1190_v43  ;;  %v385_v55 = vsel %vm233_vm1, %v367_v59, %v1189_v44 }
 0x13e   : >> { %v1195_v48 = vunpack.i.h.bf16 %v1193_v47  ;;  %v1194_v49 = vunpack.i.l.bf16 %v1193_v47  ;;  %v1198_v60 = vpop.permute.xlu1 %1197 }
 0x13f   : >> { %v1199_v51 = vunpack.i.l.bf16 %v1198_v60  ;;  %v1200_v53 = vunpack.i.h.bf16 %v1198_v60 }
 0x140   : >> { %v380_v54 = vsel %vm294_vm4, %v1194_v49, %v1195_v48  ;;  %v386_v56 = vsel %vm233_vm1, %v368_v50, %v1194_v49 }
 0x141   : >> { %v1203_v57 = vpop.permute.xlu0 %1202  ;;  %v950_v58 = vpack.c.bf16 %v380_v54, %v379_v52  ;;  %v952_v16 = vpack.c.bf16 %v386_v56, %v385_v55  ;;  %v666_v63 = vsel %vm281_vm3, %v1199_v51, %v1491_v17  ;;  %v667_v5 = vsel %vm281_vm3, %v1200_v53, %v1489_v21 }
 0x142   : >> { %v1205_v6 = vunpack.i.h.bf16 %v1203_v57  ;;  %v1204_v61 = vunpack.i.l.bf16 %v1203_v57  ;;  %v1208_v62 = vpop.permute.xlu1 %1207 }
 0x143   : >> { %v1210_v15 = vunpack.i.h.bf16 %v1208_v62  ;;  %v1209_v0 = vunpack.i.l.bf16 %v1208_v62  ;;  %951 = vmatprep.subr.bf16.mxu0 %v950_v58 }
 0x144   : >> { %953 = vmatpush1.bf16.msra.mxu0 %v952_v16  ;;  %v678_v1 = vsel %vm294_vm4, %v1204_v61, %v1205_v6  ;;  %v684_v3 = vsel %vm233_vm1, %v666_v63, %v1204_v61 }
 0x145   : >> { %v679_v4 = vsel %vm294_vm4, %v1209_v0, %v1210_v15  ;;  %v685_v7 = vsel %vm233_vm1, %v667_v5, %v1209_v0 }
 0x146   : >> { %v982_v8 = vpack.c.bf16 %v679_v4, %v678_v1  ;;  %v984_v9 = vpack.c.bf16 %v685_v7, %v684_v3 }
 0x147   : >> { %472 = vmatmul.mubr.f32.vlgmr.msra.gmra.mrb[0].mxu0 %v1323_v23 }
 0x148   : >> { %983 = vmatprep.subr.bf16.mxu1 %v982_v8  ;;  %477 = vmatprep.mubr.f32.mxu0 %v1236_v2 }
 0x149   : >> { %985 = vmatpush1.bf16.msra.mxu1 %v984_v9 }
 0x14b   : >> { %478 = vmatmul.mubr.f32.gmra.mrb[2].mxu0 %v1320_v22 }
 0x14c   : >> { %751 = vmatmul.mubr.f32.vlgmr.msra.gmra.mrb[0].mxu1 %v1329_v25  ;;  %483 = vmatprep.mubr.f32.mxu0 %v1236_v2 }
 0x14d   : >> { %756 = vmatprep.mubr.f32.mxu1 %v1236_v2 }
 0x14f   : >> { %484 = vmatmul.mubr.f32.gmra.mrb[4].mxu0 %v1335_v33 }
 0x150   : >> { %757 = vmatmul.mubr.f32.gmra.mrb[2].mxu1 %v1326_v24  ;;  %489 = vmatprep.mubr.f32.mxu0 %v1236_v2 }
 0x151   : >> { %762 = vmatprep.mubr.f32.mxu1 %v1236_v2 }
 0x152   : >> { %v390_v21 = vpop.permute.xlu0 %389 }
 0x153   : >> { %490 = vmatmul.mubr.f32.gmra.mrb[6].mxu0 %v1332_v32  ;;  %v395_v11 = vpop.permute.xlu1 %394 }
 0x154   : >> { %763 = vmatmul.mubr.f32.gmra.mrb[4].mxu1 %v1341_v35 }
 0x155   : >> { %768 = vmatprep.mubr.f32.mxu1 %v1236_v2 }
 0x156   : >> { %v405_v60 = vpop.permute.xlu0 %404 }
 0x157   : >> { %v400_v38 = vpop.permute.xlu1 %399 }
 0x158   : >> { %769 = vmatmul.mubr.f32.gmra.mrb[6].mxu1 %v1338_v34 }
 0x21a   : >> { %v473_v17 = vpop.f32.mrb[0].mxu0 }
 0x21b   : >> { %v474_v18 = vadd.f32 %v473_v17, %v390_v21  ;;  %v475_v19 = vpop.f32.mrb[1].mxu0 }
 0x21c   : >> { %v476_v20 = vadd.f32 %v475_v19, %v390_v21 }
 0x21d   : >> { %v496_v26 = vmax.f32 %v474_v18, 0.0 }
 0x21e   : >> { %v497_v27 = vmax.f32 %v476_v20, 0.0  ;;  %v479_v28 = vpop.f32.mrb[2].mxu0 }
 0x21f   : >> { %507 = vst [vmem:[%s1553_s7] sm:$0xff] %v496_v26  ;;  %v752_v2 = vpop.f32.mrb[0].mxu1  ;;  %v480_v29 = vadd.f32 %v479_v28, %v395_v11  ;;  %v481_v30 = vpop.f32.mrb[3].mxu0 }
 0x220   : >> { %509 = vst.msk [vmem:[%s1553_s7 + $0x8] sm:$0xff] %vm508_vm5, %v497_v27  ;;  %v753_v31 = vadd.f32 %v752_v2, %v390_v21  ;;  %v754_v36 = vpop.f32.mrb[1].mxu1  ;;  %v482_v37 = vadd.f32 %v481_v30, %v395_v11 }
 0x221   : >> { %v755_v45 = vadd.f32 %v754_v36, %v390_v21  ;;  %v498_v39 = vmax.f32 %v480_v29, 0.0 }
 0x222   : >> { %v775_v40 = vmax.f32 %v753_v31, 0.0  ;;  %v499_v46 = vmax.f32 %v482_v37, 0.0  ;;  %v485_v41 = vpop.f32.mrb[4].mxu0 }
 0x223   : >> { %v776_v42 = vmax.f32 %v755_v45, 0.0  ;;  %510 = vst [vmem:[%s1553_s7 + $0x10] sm:$0xff] %v498_v39  ;;  %v758_v43 = vpop.f32.mrb[2].mxu1  ;;  %v487_v44 = vpop.f32.mrb[5].mxu0  ;;  %v486_v59 = vadd.f32 %v485_v41, %v400_v38 }
 0x224   : >> { %907 = vst [vmem:[%s1553_s7 + $0x40] sm:$0xff] %v775_v40  ;;  %511 = vst.msk [vmem:[%s1553_s7 + $0x18] sm:$0xff] %vm508_vm5, %v499_v46  ;;  %v759_v47 = vadd.f32 %v758_v43, %v395_v11  ;;  %v760_v48 = vpop.f32.mrb[3].mxu1  ;;  %v488_v49 = vadd.f32 %v487_v44, %v400_v38 }
 0x225   : >> { %908 = vst.msk [vmem:[%s1553_s7 + $0x48] sm:$0xff] %vm508_vm5, %v776_v42  ;;  %v761_v50 = vadd.f32 %v760_v48, %v395_v11  ;;  %v500_v51 = vmax.f32 %v486_v59, 0.0 }
 0x226   : >> { %v777_v52 = vmax.f32 %v759_v47, 0.0  ;;  %v501_v53 = vmax.f32 %v488_v49, 0.0  ;;  %v491_v54 = vpop.f32.mrb[6].mxu0 }
 0x227   : >> { %v778_v55 = vmax.f32 %v761_v50, 0.0  ;;  %512 = vst [vmem:[%s1553_s7 + $0x20] sm:$0xff] %v500_v51  ;;  %v764_v56 = vpop.f32.mrb[4].mxu1  ;;  %v492_v57 = vadd.f32 %v491_v54, %v405_v60  ;;  %v493_v58 = vpop.f32.mrb[7].mxu0 }
 0x228   : >> { %909 = vst [vmem:[%s1553_s7 + $0x50] sm:$0xff] %v777_v52  ;;  %513 = vst.msk [vmem:[%s1553_s7 + $0x28] sm:$0xff] %vm508_vm5, %v501_v53  ;;  %v765_v16 = vadd.f32 %v764_v56, %v400_v38  ;;  %v494_v6 = vadd.f32 %v493_v58, %v405_v60  ;;  %v766_v61 = vpop.f32.mrb[5].mxu1 }
 0x229   : >> { %910 = vst.msk [vmem:[%s1553_s7 + $0x58] sm:$0xff] %vm508_vm5, %v778_v55  ;;  %v502_v62 = vmax.f32 %v492_v57, 0.0  ;;  %v767_v63 = vadd.f32 %v766_v61, %v400_v38 }
 0x22a   : >> { %v779_v15 = vmax.f32 %v765_v16, 0.0  ;;  %v503_v0 = vmax.f32 %v494_v6, 0.0 }
 0x22b   : >> { %514 = vst [vmem:[%s1553_s7 + $0x30] sm:$0xff] %v502_v62  ;;  %v780_v5 = vmax.f32 %v767_v63, 0.0  ;;  %v770_v1 = vpop.f32.mrb[6].mxu1  ;;  %212 = sbr.rel (!%p210_p4) target bundleno = 131 (0x83), region = 72 }
 0x22c   : >> { %911 = vst [vmem:[%s1553_s7 + $0x60] sm:$0xff] %v779_v15  ;;  %515 = vst.msk [vmem:[%s1553_s7 + $0x38] sm:$0xff] %vm508_vm5, %v503_v0  ;;  %v771_v3 = vadd.f32 %v770_v1, %v405_v60  ;;  %v772_v4 = vpop.f32.mrb[7].mxu1 }
 0x22d   : >> { %912 = vst.msk [vmem:[%s1553_s7 + $0x68] sm:$0xff] %vm508_vm5, %v780_v5  ;;  %v773_v7 = vadd.f32 %v772_v4, %v405_v60 }
 0x22e   : >> { %v781_v8 = vmax.f32 %v771_v3, 0.0 }
 0x22f   : >> { %v782_v9 = vmax.f32 %v773_v7, 0.0 }
 0x230   : >> { %913 = vst [vmem:[%s1553_s7 + $0x70] sm:$0xff] %v781_v8 }
 0x231   : >> { %914 = vst.msk [vmem:[%s1553_s7 + $0x78] sm:$0xff] %vm508_vm5, %v782_v9 }
 0x232 PF: > { %s13_s12 = sadd.s32 1, %s1223_s12  }
 0x233   : > { %p10_p5 = scmp.ge.s32.totalorder %s13_s12, 5  }
 0x235   :  { %12 = sbr.rel (!%p10_p5) target bundleno = 1 (0x1), region = 83 }

// kernel: decoder_forward.9
= control target key start
LH: loop header
LB: loop body
LE: loop exit
PB: predicated region body
PF: predicated region fallthrough
CT: control target
= control target key end

     0   :  { %s1273_s12 = smov 0   ;;  %s1642_s0 = inlined_call_operand.vmem [shape: f32[130,32,260], index: 0, kind: input, shape index: {}]   ;;  %s1643_s1 = inlined_call_operand.vmem [shape: f32[3,288], index: 1, kind: input, shape index: {}]   ;;  %s1644_s2 = inlined_call_operand.vmem [shape: f32[3,1], index: 2, kind: input, shape index: {}]   ;;  %s1645_s3 = inlined_call_operand.vmem [shape: f32[128,3,256], index: 3, kind: output, shape index: {}]  }
   0x1 LB: > { %s819_s13 = sadd.s32 4294967295, %s1241_s12   ;;  %p822_p0 = scmp.ge.s32.totalorder %s1241_s12, 1  ;;  %s1241_s12 = sphi %s1273_s12, %s13_s12  }
   0x2   : > { %p127_p1 = scmp.lt.s32.totalorder %s1241_s12, 5 }
   0x4   : > { %p128_p2 = pnand %p822_p0, %p127_p1 }
   0x5   : > { %s1281_s14 = sshll.u32 (!%p128_p2), %s819_s13, 5  ;;  %v1286_v0 = vld [vmem:[%s1644_s2] sm:$0x7] (!%p128_p2)  ;;  %v1297_v2 = vld [vmem:[%s1643_s1 + $0x8] sm:$0x7] (!%p128_p2)  ;;  %s1305_s26 = smov (!%p128_p2), 0  }
   0x6   : > { %131 = sbr.rel (%p128_p2) target bundleno = 473 (0x1d9), region = 32  ;;  %v1291_v1 = vld [vmem:[%s1643_s1] sm:$0x77] (!%p128_p2)  ;;  %p148_p3 = scmp.lt.s32.totalorder (!%p128_p2), %s1281_s14, 127 }
   0xd   : > { %s149_s21 = scalar_select %p148_p3, %s1281_s14, 127 }
   0xf   : > { %s859_s22 = sshll.u32 %s149_s21, 3 }
  0x10   : > { %s1303_s25 = scalar_lea.vmem %s1645_s3, %s859_s22 }
  0x11 LB: >> { %s164_s27 = sadd.s32 %s1245_s26, %s1281_s14  ;;  %s1247_s5 = smov 126   ;;  %vm204_vm0 = vcmask 1031168   ;;  %vm258_vm1 = vcmask 1022976   ;;  %vm233_vm2 = vcmask 1039360   ;;  %vm299_vm3 = vcmask 1014784   ;;  %s1245_s26 = sphi %s1305_s26, %s163_s26  }
  0x12   : >> { %s860_s28 = smul.u32 96, %s164_s27  ;;  %s1248_s6 = smov 125   ;;  %vm597_vm4 = vcmask 261120  }
  0x13   : >> { %s1249_s7 = smov 127   ;;  %s1250_s8 = smov 124  }
  0x14   : >> { %s1315_s4 = scalar_lea.vmem %s1642_s0, %s860_s28  ;;  %s861_s9 = sshll.u32 %s1245_s26, 3 }
  0x15   : >> { %v175_v3 = vld [vmem:[%s1315_s4 + $0x38] sm:$0xff]  ;;  %v176_v4 = vld [vmem:[%s1315_s4 + $0x40] sm:$0xff]  ;;  %v169_v5 = vld [vmem:[%s1315_s4 + $0x8] sm:$0xff]  ;;  %s750_s10 = scalar_lea.vmem %s1303_s25, %s861_s9  ;;  %s163_s26 = sadd.s32 1, %s1245_s26  }
  0x16   : >> { %v970_v6 = vpack.i.bf16 %v176_v4, %v175_v3  ;;  %v170_v7 = vld [vmem:[%s1315_s4 + $0x10] sm:$0xff]  ;;  %v179_v9 = vld [vmem:[%s1315_s4 + $0x58] sm:$0xff]  ;;  %v172_v11 = vld [vmem:[%s1315_s4 + $0x20] sm:$0xff]  ;;  %p160_p4 = scmp.ge.s32.totalorder %s163_s26, 32  }
  0x17   : >> { %v178_v8 = vld [vmem:[%s1315_s4 + $0x50] sm:$0xff]  ;;  %v960_v10 = vpack.i.bf16 %v170_v7, %v169_v5  ;;  %v173_v12 = vld [vmem:[%s1315_s4 + $0x28] sm:$0xff]  ;;  %v1330_v15 = vld [vmem:[%s1315_s4 + $0x18] sm:$0xff] }
  0x18   : >> { %971 = vrot.lane.b32.xlu1 %v970_v6, %s1247_s5  ;;  %v975_v13 = vpack.i.bf16 %v179_v9, %v178_v8  ;;  %v965_v14 = vpack.i.bf16 %v173_v12, %v172_v11  ;;  %v1333_v16 = vld [vmem:[%s1315_s4] sm:$0xff]  ;;  %v995_v17 = vpack.i.bf16 %v172_v11, %v1330_v15  ;;  %v1340_v19 = vld [vmem:[%s1315_s4 + $0x48] sm:$0xff]  ;;  %v1343_v20 = vld [vmem:[%s1315_s4 + $0x30] sm:$0xff]  ;;  %v595_v12 = vcombine.high %v1291_v1, %v1291_v1 }
  0x19   : >> { %961 = vrot.lane.b32.xlu0 %v960_v10, %s1247_s5  ;;  %v990_v18 = vpack.i.bf16 %v169_v5, %v1333_v16  ;;  %v864_v21 = vpack.c.bf16 %v1330_v15, %v1333_v16  ;;  %v868_v22 = vpack.c.bf16 %v1340_v19, %v1343_v20  ;;  %v1015_v23 = vpack.i.bf16 %v178_v8, %v1340_v19  ;;  %v833_v27 = vld [vmem:[%s1315_s4 + $0x80] sm:$0xff]  ;;  %v834_v28 = vld [vmem:[%s1315_s4 + $0x88] sm:$0xff]  ;;  %v1368_v29 = vld [vmem:[%s1315_s4 + $0x78] sm:$0xff] }
  0x1a   : >> { %v1010_v24 = vpack.i.bf16 %v175_v3, %v1343_v20  ;;  %v1030_v25 = vpack.i.bf16 %v1330_v15, %v1333_v16  ;;  %v1045_v26 = vpack.i.bf16 %v1340_v19, %v1343_v20  ;;  %v1371_v30 = vld [vmem:[%s1315_s4 + $0x60] sm:$0xff]  ;;  %v830_v31 = vld [vmem:[%s1315_s4 + $0x68] sm:$0xff]  ;;  %v831_v32 = vld [vmem:[%s1315_s4 + $0x70] sm:$0xff]  ;;  %v1055_v34 = vpack.i.bf16 %v834_v28, %v833_v27  ;;  %664 = vmatprep.mubr.f32.mxu1 %v595_v12 }
  0x1b   : >> { %v888_v33 = vpack.c.bf16 %v1368_v29, %v1371_v30  ;;  %v839_v35 = vld [vmem:[%s1315_s4 + $0xb0] sm:$0xff]  ;;  %v1050_v36 = vpack.i.bf16 %v831_v32, %v830_v31  ;;  %v840_v37 = vld [vmem:[%s1315_s4 + $0xb8] sm:$0xff]  ;;  %v1382_v38 = vld [vmem:[%s1315_s4 + $0xa8] sm:$0xff]  ;;  %v1085_v45 = vpack.i.bf16 %v833_v27, %v1368_v29  ;;  %v1080_v46 = vpack.i.bf16 %v830_v31, %v1371_v30 }
  0x1c   : >> { %976 = vrot.lane.b32.xlu1 %v975_v13, %s1247_s5  ;;  %v1385_v39 = vld [vmem:[%s1315_s4 + $0x90] sm:$0xff]  ;;  %v836_v40 = vld [vmem:[%s1315_s4 + $0x98] sm:$0xff]  ;;  %v837_v41 = vld [vmem:[%s1315_s4 + $0xa0] sm:$0xff]  ;;  %v1065_v43 = vpack.i.bf16 %v840_v37, %v839_v35  ;;  %v1105_v47 = vpack.i.bf16 %v839_v35, %v1382_v38  ;;  %v1120_v49 = vpack.i.bf16 %v1368_v29, %v1371_v30 }
  0x1d   : >> { %966 = vrot.lane.b32.xlu0 %v965_v14, %s1247_s5  ;;  %v892_v42 = vpack.c.bf16 %v1382_v38, %v1385_v39  ;;  %v1060_v44 = vpack.i.bf16 %v837_v41, %v836_v40  ;;  %v1100_v48 = vpack.i.bf16 %v836_v40, %v1385_v39  ;;  %v1135_v50 = vpack.i.bf16 %v1382_v38, %v1385_v39  ;;  %v846_v51 = vld [vmem:[%s1315_s4 + $0xe0] sm:$0xff]  ;;  %v847_v52 = vld [vmem:[%s1315_s4 + $0xe8] sm:$0xff]  ;;  %v1418_v53 = vld [vmem:[%s1315_s4 + $0xd8] sm:$0xff] }
  0x1e   : >> { %v1421_v54 = vld [vmem:[%s1315_s4 + $0xc0] sm:$0xff]  ;;  %v843_v55 = vld [vmem:[%s1315_s4 + $0xc8] sm:$0xff]  ;;  %v844_v56 = vld [vmem:[%s1315_s4 + $0xd0] sm:$0xff]  ;;  %v1145_v58 = vpack.i.bf16 %v847_v52, %v846_v51  ;;  %v1175_v8 = vpack.i.bf16 %v846_v51, %v1418_v53 }
  0x1f   : >> { %v912_v57 = vpack.c.bf16 %v1418_v53, %v1421_v54  ;;  %v852_v59 = vld [vmem:[%s1315_s4 + $0x110] sm:$0xff]  ;;  %v1140_v60 = vpack.i.bf16 %v844_v56, %v843_v55  ;;  %v853_v61 = vld [vmem:[%s1315_s4 + $0x118] sm:$0xff]  ;;  %v1435_v63 = vld [vmem:[%s1315_s4 + $0x108] sm:$0xff]  ;;  %v1170_v9 = vpack.i.bf16 %v843_v55, %v1421_v54 }
  0x20   : >> { %986 = vrot.lane.b32.xlu1 %v965_v14, %s1248_s6  ;;  %v1432_v62 = vld [vmem:[%s1315_s4 + $0xf0] sm:$0xff]  ;;  %v849_v3 = vld [vmem:[%s1315_s4 + $0xf8] sm:$0xff]  ;;  %v850_v4 = vld [vmem:[%s1315_s4 + $0x100] sm:$0xff] }
  0x21   : >> { %981 = vrot.lane.b32.xlu0 %v960_v10, %s1248_s6  ;;  %v916_v5 = vpack.c.bf16 %v1435_v63, %v1432_v62  ;;  %v1150_v7 = vpack.i.bf16 %v850_v4, %v849_v3  ;;  %v1205_v11 = vpack.i.bf16 %v849_v3, %v1432_v62 }
  0x24   : >> { %996 = vrot.lane.b32.xlu1 %v995_v17, %s1249_s7  ;;  %v1225_v17 = vpack.i.bf16 %v1435_v63, %v1432_v62 }
  0x25   : >> { %991 = vrot.lane.b32.xlu0 %v990_v18, %s1249_s7  ;;  %v1252_v18 = vmov 0  }
  0x26   : >> { %1230 = vset.pattern.permute.xlu0 %v1252_v18 }
  0x28   : >> { %1006 = vrot.lane.b32.xlu1 %v975_v13, %s1248_s6 }
  0x29   : >> { %1001 = vrot.lane.b32.xlu0 %v970_v6, %s1248_s6 }
  0x2c   : >> { %1016 = vrot.lane.b32.xlu1 %v1015_v23, %s1249_s7 }
  0x2d   : >> { %1011 = vrot.lane.b32.xlu0 %v1010_v24, %s1249_s7 }
  0x30   : >> { %1026 = vrot.lane.b32.xlu1 %v965_v14, %s1250_s8  ;;  %v1251_v14 = vmov 0.0  }
  0x31   : >> { %1021 = vrot.lane.b32.xlu0 %v960_v10, %s1250_s8  ;;  %v1190_v10 = vpack.i.bf16 %v1418_v53, %v1421_v54  ;;  %735 = vmatprep.mubr.f32.mxu0 %v1251_v14 }
  0x34   : >> { %1036 = vrot.lane.b32.xlu1 %v970_v6, %s1250_s8  ;;  %v1155_v6 = vpack.i.bf16 %v853_v61, %v852_v59 }
  0x35   : >> { %1031 = vrot.lane.b32.xlu0 %v1030_v25, %s1247_s5 }
  0x38   : >> { %1046 = vrot.lane.b32.xlu1 %v1045_v26, %s1247_s5 }
  0x39   : >> { %1041 = vrot.lane.b32.xlu0 %v975_v13, %s1250_s8  ;;  %v1210_v13 = vpack.i.bf16 %v852_v59, %v1435_v63 }
  0x3c   : >> { %1056 = vrot.lane.b32.xlu1 %v1055_v34, %s1247_s5 }
  0x3d   : >> { %1051 = vrot.lane.b32.xlu0 %v1050_v36, %s1247_s5 }
  0x40   : >> { %1066 = vrot.lane.b32.xlu1 %v1065_v43, %s1247_s5 }
  0x41   : >> { %1061 = vrot.lane.b32.xlu0 %v1060_v44, %s1247_s5 }
  0x44   : >> { %1076 = vrot.lane.b32.xlu1 %v1055_v34, %s1248_s6 }
  0x45   : >> { %1071 = vrot.lane.b32.xlu0 %v1050_v36, %s1248_s6 }
  0x48   : >> { %1086 = vrot.lane.b32.xlu1 %v1085_v45, %s1249_s7 }
  0x49   : >> { %1081 = vrot.lane.b32.xlu0 %v1080_v46, %s1249_s7 }
  0x4c   : >> { %1096 = vrot.lane.b32.xlu1 %v1065_v43, %s1248_s6 }
  0x4d   : >> { %1091 = vrot.lane.b32.xlu0 %v1060_v44, %s1248_s6 }
  0x50   : >> { %1106 = vrot.lane.b32.xlu1 %v1105_v47, %s1249_s7 }
  0x51   : >> { %1101 = vrot.lane.b32.xlu0 %v1100_v48, %s1249_s7 }
  0x54   : >> { %1116 = vrot.lane.b32.xlu1 %v1055_v34, %s1250_s8 }
  0x55   : >> { %1111 = vrot.lane.b32.xlu0 %v1050_v36, %s1250_s8 }
  0x58   : >> { %1126 = vrot.lane.b32.xlu1 %v1060_v44, %s1250_s8 }
  0x59   : >> { %1121 = vrot.lane.b32.xlu0 %v1120_v49, %s1247_s5 }
  0x5c   : >> { %1136 = vrot.lane.b32.xlu1 %v1135_v50, %s1247_s5 }
  0x5d   : >> { %1131 = vrot.lane.b32.xlu0 %v1065_v43, %s1250_s8 }
  0x60   : >> { %1146 = vrot.lane.b32.xlu1 %v1145_v58, %s1247_s5 }
  0x61   : >> { %1141 = vrot.lane.b32.xlu0 %v1140_v60, %s1247_s5 }
  0x64   : >> { %1156 = vrot.lane.b32.xlu1 %v1155_v6, %s1247_s5 }
  0x65   : >> { %1151 = vrot.lane.b32.xlu0 %v1150_v7, %s1247_s5 }
  0x68   : >> { %1166 = vrot.lane.b32.xlu1 %v1145_v58, %s1248_s6 }
  0x69   : >> { %1161 = vrot.lane.b32.xlu0 %v1140_v60, %s1248_s6 }
  0x6c   : >> { %1176 = vrot.lane.b32.xlu1 %v1175_v8, %s1249_s7 }
  0x6d   : >> { %1171 = vrot.lane.b32.xlu0 %v1170_v9, %s1249_s7 }
  0x70   : >> { %1186 = vrot.lane.b32.xlu1 %v1145_v58, %s1250_s8 }
  0x71   : >> { %1181 = vrot.lane.b32.xlu0 %v1140_v60, %s1250_s8 }
  0x74   : >> { %1196 = vrot.lane.b32.xlu1 %v1150_v7, %s1248_s6 }
  0x75   : >> { %1191 = vrot.lane.b32.xlu0 %v1190_v10, %s1247_s5 }
  0x78   : >> { %1206 = vrot.lane.b32.xlu1 %v1205_v11, %s1249_s7 }
  0x79   : >> { %1201 = vrot.lane.b32.xlu0 %v1155_v6, %s1248_s6 }
  0x7c   : >> { %1216 = vrot.lane.b32.xlu1 %v1150_v7, %s1250_s8 }
  0x7d   : >> { %1211 = vrot.lane.b32.xlu0 %v1210_v13, %s1249_s7 }
  0x80   : >> { %1226 = vrot.lane.b32.xlu1 %v1225_v17, %s1247_s5 }
  0x81   : >> { %1221 = vrot.lane.b32.xlu0 %v1155_v6, %s1250_s8 }
  0x85   : >> { %590 = vperm.xlu0 %1230, %v1286_v0  }
  0x8a   : >> { %v1470_v23 = vpop.permute.xlu1 %971 }
  0x8b   : >> { %v1472_v24 = vpop.permute.xlu0 %961  ;;  %v974_v34 = vunpack.i.h.bf16 %v1470_v23  ;;  %v973_v35 = vunpack.i.l.bf16 %v1470_v23 }
  0x8c   : >> { %v964_v25 = vunpack.i.h.bf16 %v1472_v24  ;;  %v963_v26 = vunpack.i.l.bf16 %v1472_v24 }
  0x8d   : >> { %v207_v51 = vsel %vm204_vm0, %v973_v35, %v974_v34 }
  0x8e   : >> { %v1476_v27 = vpop.permute.xlu1 %976  ;;  %v205_v41 = vsel %vm204_vm0, %v963_v26, %v964_v25 }
  0x8f   : >> { %v979_v28 = vunpack.i.h.bf16 %v1476_v27  ;;  %v978_v31 = vunpack.i.l.bf16 %v1476_v27  ;;  %v1480_v32 = vpop.permute.xlu0 %966 }
  0x90   : >> { %v969_v36 = vunpack.i.h.bf16 %v1480_v32  ;;  %v968_v37 = vunpack.i.l.bf16 %v1480_v32 }
  0x91   : >> { %v208_v44 = vsel %vm204_vm0, %v978_v31, %v979_v28 }
  0x92   : >> { %v987_v40 = vpop.permute.xlu1 %986  ;;  %v206_v43 = vsel %vm204_vm0, %v968_v37, %v969_v36  ;;  %v866_v52 = vpack.c.bf16 %v208_v44, %v207_v51 }
  0x93   : >> { %v989_v45 = vunpack.i.h.bf16 %v987_v40  ;;  %v988_v46 = vunpack.i.l.bf16 %v987_v40  ;;  %v982_v47 = vpop.permute.xlu0 %981  ;;  %v862_v48 = vpack.c.bf16 %v206_v43, %v205_v41 }
  0x94   : >> { %v984_v49 = vunpack.i.h.bf16 %v982_v47  ;;  %v983_v50 = vunpack.i.l.bf16 %v982_v47 }
  0x95   : >> { %863 = vmatprep.subr.bf16.mxu1 %v862_v48  ;;  %v260_v58 = vsel %vm258_vm1, %v988_v46, %v989_v45 }
  0x96   : >> { %865 = vmatpush1.bf16.msra.mxu1 %v864_v21  ;;  %v997_v55 = vpop.permute.xlu1 %996  ;;  %v259_v56 = vsel %vm258_vm1, %v983_v50, %v984_v49 }
  0x97   : >> { %v999_v59 = vunpack.i.h.bf16 %v997_v55  ;;  %v998_v60 = vunpack.i.l.bf16 %v997_v55  ;;  %v992_v61 = vpop.permute.xlu0 %991  ;;  %867 = vmatprep.subr.bf16.mxu1 %v866_v52  ;;  %v870_v6 = vpack.c.bf16 %v260_v58, %v259_v56 }
  0x98   : >> { %v994_v3 = vunpack.i.h.bf16 %v992_v61  ;;  %v993_v4 = vunpack.i.l.bf16 %v992_v61 }
  0x99   : >> { %v235_v7 = vsel %vm233_vm2, %v998_v60, %v999_v59 }
  0x9a   : >> { %869 = vmatpush1.bf16.msra.mxu1 %v868_v22  ;;  %v1007_v15 = vpop.permute.xlu1 %1006  ;;  %v234_v16 = vsel %vm233_vm2, %v993_v4, %v994_v3 }
  0x9b   : >> { %v1009_v21 = vunpack.i.h.bf16 %v1007_v15  ;;  %v1008_v8 = vunpack.i.l.bf16 %v1007_v15  ;;  %v1002_v9 = vpop.permute.xlu0 %1001  ;;  %871 = vmatprep.subr.bf16.mxu1 %v870_v6  ;;  %v872_v10 = vpack.c.bf16 %v235_v7, %v234_v16 }
  0x9c   : >> { %v1004_v11 = vunpack.i.h.bf16 %v1002_v9  ;;  %v1003_v12 = vunpack.i.l.bf16 %v1002_v9 }
  0x9d   : >> { %v262_v13 = vsel %vm258_vm1, %v1008_v8, %v1009_v21 }
  0x9e   : >> { %873 = vmatpush1.bf16.msra.mxu1 %v872_v10  ;;  %v1017_v14 = vpop.permute.xlu1 %1016  ;;  %v261_v17 = vsel %vm258_vm1, %v1003_v12, %v1004_v11 }
  0x9f   : >> { %v1019_v18 = vunpack.i.h.bf16 %v1017_v14  ;;  %v1018_v25 = vunpack.i.l.bf16 %v1017_v14  ;;  %v1012_v19 = vpop.permute.xlu0 %1011  ;;  %v874_v20 = vpack.c.bf16 %v262_v13, %v261_v17 }
  0xa0   : >> { %v1014_v22 = vunpack.i.h.bf16 %v1012_v19  ;;  %v1013_v28 = vunpack.i.l.bf16 %v1012_v19 }
  0xa1   : >> { %875 = vmatprep.subr.bf16.mxu1 %v874_v20  ;;  %v237_v34 = vsel %vm233_vm2, %v1018_v25, %v1019_v18 }
  0xa2   : >> { %v1027_v36 = vpop.permute.xlu1 %1026  ;;  %v236_v40 = vsel %vm233_vm2, %v1013_v28, %v1014_v22 }
  0xa3   : >> { %v1029_v41 = vunpack.i.h.bf16 %v1027_v36  ;;  %v1028_v43 = vunpack.i.l.bf16 %v1027_v36  ;;  %v1022_v44 = vpop.permute.xlu0 %1021  ;;  %v876_v45 = vpack.c.bf16 %v237_v34, %v236_v40 }
  0xa4   : >> { %v1024_v46 = vunpack.i.h.bf16 %v1022_v44  ;;  %v1023_v47 = vunpack.i.l.bf16 %v1022_v44 }
  0xa5   : >> { %877 = vmatpush1.bf16.msra.mxu1 %v876_v45  ;;  %v301_v48 = vsel %vm299_vm3, %v1028_v43, %v1029_v41 }
  0xa6   : >> { %v1037_v49 = vpop.permute.xlu1 %1036  ;;  %v300_v50 = vsel %vm299_vm3, %v1023_v47, %v1024_v46 }
  0xa7   : >> { %v1032_v51 = vpop.permute.xlu0 %1031  ;;  %v878_v52 = vpack.c.bf16 %v301_v48, %v300_v50  ;;  %v1039_v58 = vunpack.i.h.bf16 %v1037_v49  ;;  %v1038_v59 = vunpack.i.l.bf16 %v1037_v49 }
  0xa8   : >> { %v1034_v55 = vunpack.i.h.bf16 %v1032_v51  ;;  %v1033_v56 = vunpack.i.l.bf16 %v1032_v51 }
  0xa9   : >> { %879 = vmatprep.subr.bf16.mxu1 %v878_v52  ;;  %v302_v32 = vsel %vm299_vm3, %v1038_v59, %v1039_v58 }
  0xaa   : >> { %v1047_v60 = vpop.permute.xlu1 %1046  ;;  %v275_v61 = vsel %vm204_vm0, %v1033_v56, %v963_v26  ;;  %v276_v3 = vsel %vm204_vm0, %v1034_v55, %v968_v37 }
  0xab   : >> { %v1049_v4 = vunpack.i.h.bf16 %v1047_v60  ;;  %v1048_v6 = vunpack.i.l.bf16 %v1047_v60  ;;  %v1042_v7 = vpop.permute.xlu0 %1041  ;;  %v880_v15 = vpack.c.bf16 %v276_v3, %v275_v61 }
  0xac   : >> { %v1044_v16 = vunpack.i.h.bf16 %v1042_v7  ;;  %v1043_v21 = vunpack.i.l.bf16 %v1042_v7 }
  0xad   : >> { %881 = vmatpush1.bf16.msra.mxu1 %v880_v15  ;;  %v277_v8 = vsel %vm204_vm0, %v1048_v6, %v973_v35  ;;  %v278_v24 = vsel %vm204_vm0, %v1049_v4, %v978_v31 }
  0xae   : >> { %v1526_v26 = vpop.permute.xlu1 %1056  ;;  %v303_v37 = vsel %vm299_vm3, %v1043_v21, %v1044_v16  ;;  %v884_v9 = vpack.c.bf16 %v278_v24, %v277_v8 }
  0xaf   : >> { %v1059_v10 = vunpack.i.h.bf16 %v1526_v26  ;;  %v1058_v11 = vunpack.i.l.bf16 %v1526_v26  ;;  %v1532_v12 = vpop.permute.xlu0 %1051  ;;  %v882_v23 = vpack.c.bf16 %v303_v37, %v302_v32 }
  0xb0   : >> { %v1054_v35 = vunpack.i.h.bf16 %v1532_v12  ;;  %v1053_v27 = vunpack.i.l.bf16 %v1532_v12 }
  0xb1   : >> { %883 = vmatprep.subr.bf16.mxu1 %v882_v23  ;;  %v349_v31 = vsel %vm204_vm0, %v1058_v11, %v1059_v10 }
  0xb2   : >> { %885 = vmatpush1.bf16.msra.mxu1 %v884_v9  ;;  %v1539_v13 = vpop.permute.xlu1 %1066  ;;  %v348_v14 = vsel %vm204_vm0, %v1053_v27, %v1054_v35 }
  0xb3   : >> { %v1069_v17 = vunpack.i.h.bf16 %v1539_v13  ;;  %v1068_v18 = vunpack.i.l.bf16 %v1539_v13  ;;  %v1546_v25 = vpop.permute.xlu0 %1061  ;;  %v886_v19 = vpack.c.bf16 %v349_v31, %v348_v14 }
  0xb4   : >> { %v1064_v20 = vunpack.i.h.bf16 %v1546_v25  ;;  %v1063_v22 = vunpack.i.l.bf16 %v1546_v25 }
  0xb5   : >> { %887 = vmatprep.subr.bf16.mxu1 %v886_v19  ;;  %v351_v28 = vsel %vm204_vm0, %v1068_v18, %v1069_v17 }
  0xb6   : >> { %v1077_v34 = vpop.permute.xlu1 %1076  ;;  %889 = vmatpush1.bf16.msra.mxu1 %v888_v33  ;;  %v350_v36 = vsel %vm204_vm0, %v1063_v22, %v1064_v20 }
  0xb7   : >> { %v1079_v40 = vunpack.i.h.bf16 %v1077_v34  ;;  %v1078_v41 = vunpack.i.l.bf16 %v1077_v34  ;;  %v1072_v43 = vpop.permute.xlu0 %1071  ;;  %v890_v44 = vpack.c.bf16 %v351_v28, %v350_v36 }
  0xb8   : >> { %v1074_v45 = vunpack.i.h.bf16 %v1072_v43  ;;  %v1073_v46 = vunpack.i.l.bf16 %v1072_v43 }
  0xb9   : >> { %891 = vmatprep.subr.bf16.mxu1 %v890_v44  ;;  %v401_v47 = vsel %vm258_vm1, %v1078_v41, %v1079_v40 }
  0xba   : >> { %v1087_v48 = vpop.permute.xlu1 %1086  ;;  %893 = vmatpush1.bf16.msra.mxu1 %v892_v42  ;;  %v400_v29 = vsel %vm258_vm1, %v1073_v46, %v1074_v45 }
  0xbb   : >> { %v1089_v30 = vunpack.i.h.bf16 %v1087_v48  ;;  %v1088_v33 = vunpack.i.l.bf16 %v1087_v48  ;;  %v1082_v49 = vpop.permute.xlu0 %1081  ;;  %v894_v50 = vpack.c.bf16 %v401_v47, %v400_v29 }
  0xbc   : >> { %v1084_v51 = vunpack.i.h.bf16 %v1082_v49  ;;  %v1083_v52 = vunpack.i.l.bf16 %v1082_v49 }
  0xbd   : >> { %895 = vmatprep.subr.bf16.mxu1 %v894_v50  ;;  %v377_v55 = vsel %vm233_vm2, %v1088_v33, %v1089_v30 }
  0xbe   : >> { %v1097_v56 = vpop.permute.xlu1 %1096  ;;  %v376_v58 = vsel %vm233_vm2, %v1083_v52, %v1084_v51 }
  0xbf   : >> { %v1099_v59 = vunpack.i.h.bf16 %v1097_v56  ;;  %v1098_v60 = vunpack.i.l.bf16 %v1097_v56  ;;  %v1092_v61 = vpop.permute.xlu0 %1091  ;;  %v896_v3 = vpack.c.bf16 %v377_v55, %v376_v58 }
  0xc0   : >> { %v1094_v38 = vunpack.i.h.bf16 %v1092_v61  ;;  %v1093_v39 = vunpack.i.l.bf16 %v1092_v61 }
  0xc1   : >> { %897 = vmatpush1.bf16.msra.mxu1 %v896_v3  ;;  %v403_v42 = vsel %vm258_vm1, %v1098_v60, %v1099_v59 }
  0xc2   : >> { %v1107_v4 = vpop.permute.xlu1 %1106  ;;  %v402_v6 = vsel %vm258_vm1, %v1093_v39, %v1094_v38 }
  0xc3   : >> { %v1109_v7 = vunpack.i.h.bf16 %v1107_v4  ;;  %v1108_v15 = vunpack.i.l.bf16 %v1107_v4  ;;  %v1102_v16 = vpop.permute.xlu0 %1101  ;;  %v898_v21 = vpack.c.bf16 %v403_v42, %v402_v6 }
  0xc4   : >> { %v1104_v8 = vunpack.i.h.bf16 %v1102_v16  ;;  %v1103_v24 = vunpack.i.l.bf16 %v1102_v16 }
  0xc5   : >> { %899 = vmatprep.subr.bf16.mxu1 %v898_v21  ;;  %v379_v32 = vsel %vm233_vm2, %v1108_v15, %v1109_v7 }
  0xc6   : >> { %v1117_v37 = vpop.permute.xlu1 %1116  ;;  %v378_v9 = vsel %vm233_vm2, %v1103_v24, %v1104_v8 }
  0xc7   : >> { %v1119_v10 = vunpack.i.h.bf16 %v1117_v37  ;;  %v1118_v23 = vunpack.i.l.bf16 %v1117_v37  ;;  %v1112_v35 = vpop.permute.xlu0 %1111  ;;  %v900_v31 = vpack.c.bf16 %v379_v32, %v378_v9 }
  0xc8   : >> { %v1114_v14 = vunpack.i.h.bf16 %v1112_v35  ;;  %v1113_v17 = vunpack.i.l.bf16 %v1112_v35 }
  0xc9   : >> { %901 = vmatpush1.bf16.msra.mxu1 %v900_v31  ;;  %v441_v19 = vsel %vm299_vm3, %v1118_v23, %v1119_v10 }
  0xca   : >> { %v1127_v20 = vpop.permute.xlu1 %1126  ;;  %v440_v28 = vsel %vm299_vm3, %v1113_v17, %v1114_v14 }
  0xcb   : >> { %v1122_v34 = vpop.permute.xlu0 %1121  ;;  %v902_v36 = vpack.c.bf16 %v441_v19, %v440_v28  ;;  %v1129_v43 = vunpack.i.h.bf16 %v1127_v20  ;;  %v1128_v44 = vunpack.i.l.bf16 %v1127_v20 }
  0xcc   : >> { %v1124_v40 = vunpack.i.h.bf16 %v1122_v34  ;;  %v1123_v41 = vunpack.i.l.bf16 %v1122_v34 }
  0xcd   : >> { %903 = vmatprep.subr.bf16.mxu1 %v902_v36  ;;  %v442_v26 = vsel %vm299_vm3, %v1128_v44, %v1129_v43 }
  0xce   : >> { %v1137_v45 = vpop.permute.xlu1 %1136  ;;  %v416_v46 = vsel %vm204_vm0, %v1123_v41, %v1053_v27  ;;  %v417_v47 = vsel %vm204_vm0, %v1124_v40, %v1058_v11 }
  0xcf   : >> { %v1139_v48 = vunpack.i.h.bf16 %v1137_v45  ;;  %v1138_v29 = vunpack.i.l.bf16 %v1137_v45  ;;  %v1132_v30 = vpop.permute.xlu0 %1131  ;;  %v904_v33 = vpack.c.bf16 %v417_v47, %v416_v46 }
  0xd0   : >> { %v1134_v49 = vunpack.i.h.bf16 %v1132_v30  ;;  %v1133_v50 = vunpack.i.l.bf16 %v1132_v30 }
  0xd1   : >> { %905 = vmatpush1.bf16.msra.mxu1 %v904_v33  ;;  %v418_v51 = vsel %vm204_vm0, %v1138_v29, %v1063_v22  ;;  %v419_v12 = vsel %vm204_vm0, %v1139_v48, %v1068_v18 }
  0xd2   : >> { %v1584_v27 = vpop.permute.xlu1 %1146  ;;  %v443_v11 = vsel %vm299_vm3, %v1133_v50, %v1134_v49  ;;  %v908_v52 = vpack.c.bf16 %v419_v12, %v418_v51 }
  0xd3   : >> { %v1149_v55 = vunpack.i.h.bf16 %v1584_v27  ;;  %v1148_v56 = vunpack.i.l.bf16 %v1584_v27  ;;  %v1142_v58 = vpop.permute.xlu0 %1141  ;;  %v906_v59 = vpack.c.bf16 %v443_v11, %v442_v26 }
  0xd4   : >> { %v1144_v25 = vunpack.i.h.bf16 %v1142_v58  ;;  %v1143_v60 = vunpack.i.l.bf16 %v1142_v58 }
  0xd5   : >> { %907 = vmatprep.subr.bf16.mxu1 %v906_v59  ;;  %v489_v13 = vsel %vm204_vm0, %v1148_v56, %v1149_v55 }
  0xd6   : >> { %909 = vmatpush1.bf16.msra.mxu1 %v908_v52  ;;  %v1591_v18 = vpop.permute.xlu1 %1156  ;;  %v488_v22 = vsel %vm204_vm0, %v1143_v60, %v1144_v25 }
  0xd7   : >> { %v1159_v61 = vunpack.i.h.bf16 %v1591_v18  ;;  %v1158_v3 = vunpack.i.l.bf16 %v1591_v18  ;;  %v1596_v38 = vpop.permute.xlu0 %1151  ;;  %v910_v39 = vpack.c.bf16 %v489_v13, %v488_v22 }
  0xd8   : >> { %v1154_v42 = vunpack.i.h.bf16 %v1596_v38  ;;  %v1153_v4 = vunpack.i.l.bf16 %v1596_v38 }
  0xd9   : >> { %911 = vmatprep.subr.bf16.mxu1 %v910_v39  ;;  %v491_v6 = vsel %vm204_vm0, %v1158_v3, %v1159_v61 }
  0xda   : >> { %v1167_v7 = vpop.permute.xlu1 %1166  ;;  %913 = vmatpush1.bf16.msra.mxu1 %v912_v57  ;;  %v490_v15 = vsel %vm204_vm0, %v1153_v4, %v1154_v42 }
  0xdb   : >> { %v1169_v16 = vunpack.i.h.bf16 %v1167_v7  ;;  %v1168_v21 = vunpack.i.l.bf16 %v1167_v7  ;;  %v1162_v8 = vpop.permute.xlu0 %1161  ;;  %v914_v24 = vpack.c.bf16 %v491_v6, %v490_v15 }
  0xdc   : >> { %v1164_v32 = vunpack.i.h.bf16 %v1162_v8  ;;  %v1163_v37 = vunpack.i.l.bf16 %v1162_v8 }
  0xdd   : >> { %915 = vmatprep.subr.bf16.mxu1 %v914_v24  ;;  %v541_v9 = vsel %vm258_vm1, %v1168_v21, %v1169_v16 }
  0xde   : >> { %v1177_v10 = vpop.permute.xlu1 %1176  ;;  %917 = vmatpush1.bf16.msra.mxu1 %v916_v5  ;;  %v540_v53 = vsel %vm258_vm1, %v1163_v37, %v1164_v32 }
  0xdf   : >> { %v1179_v54 = vunpack.i.h.bf16 %v1177_v10  ;;  %v1178_v57 = vunpack.i.l.bf16 %v1177_v10  ;;  %v1172_v23 = vpop.permute.xlu0 %1171  ;;  %v918_v35 = vpack.c.bf16 %v541_v9, %v540_v53 }
  0xe0   : >> { %v1174_v31 = vunpack.i.h.bf16 %v1172_v23  ;;  %v1173_v14 = vunpack.i.l.bf16 %v1172_v23 }
  0xe1   : >> { %919 = vmatprep.subr.bf16.mxu1 %v918_v35  ;;  %v517_v17 = vsel %vm233_vm2, %v1178_v57, %v1179_v54 }
  0xe2   : >> { %v1187_v19 = vpop.permute.xlu1 %1186  ;;  %v516_v20 = vsel %vm233_vm2, %v1173_v14, %v1174_v31 }
  0xe3   : >> { %v1189_v28 = vunpack.i.h.bf16 %v1187_v19  ;;  %v1188_v34 = vunpack.i.l.bf16 %v1187_v19  ;;  %v1182_v36 = vpop.permute.xlu0 %1181  ;;  %v920_v40 = vpack.c.bf16 %v517_v17, %v516_v20 }
  0xe4   : >> { %v1184_v62 = vunpack.i.h.bf16 %v1182_v36  ;;  %v1183_v63 = vunpack.i.l.bf16 %v1182_v36 }
  0xe5   : >> { %921 = vmatpush1.bf16.msra.mxu1 %v920_v40  ;;  %v581_v5 = vsel %vm299_vm3, %v1188_v34, %v1189_v28 }
  0xe6   : >> { %v1197_v41 = vpop.permute.xlu1 %1196  ;;  %v580_v43 = vsel %vm299_vm3, %v1183_v63, %v1184_v62 }
  0xe7   : >> { %v1192_v44 = vpop.permute.xlu0 %1191  ;;  %v926_v45 = vpack.c.bf16 %v581_v5, %v580_v43  ;;  %v1199_v48 = vunpack.i.h.bf16 %v1197_v41  ;;  %v1198_v29 = vunpack.i.l.bf16 %v1197_v41 }
  0xe8   : >> { %v1194_v46 = vunpack.i.h.bf16 %v1192_v44  ;;  %v1193_v47 = vunpack.i.l.bf16 %v1192_v44 }
  0xe9   : >> { %927 = vmatprep.subr.bf16.mxu0 %v926_v45  ;;  %v542_v55 = vsel %vm258_vm1, %v1198_v29, %v1199_v48 }
  0xea   : >> { %v1207_v30 = vpop.permute.xlu1 %1206  ;;  %v556_v33 = vsel %vm204_vm0, %v1193_v47, %v1143_v60  ;;  %v557_v49 = vsel %vm204_vm0, %v1194_v46, %v1148_v56 }
  0xeb   : >> { %v1202_v50 = vpop.permute.xlu0 %1201  ;;  %v928_v51 = vpack.c.bf16 %v557_v49, %v556_v33  ;;  %v1209_v26 = vunpack.i.h.bf16 %v1207_v30  ;;  %v1208_v11 = vunpack.i.l.bf16 %v1207_v30 }
  0xec   : >> { %v1204_v12 = vunpack.i.h.bf16 %v1202_v50  ;;  %v1203_v27 = vunpack.i.l.bf16 %v1202_v50 }
  0xed   : >> { %929 = vmatpush1.bf16.msra.mxu0 %v928_v51  ;;  %v518_v39 = vsel %vm233_vm2, %v1208_v11, %v1209_v26 }
  0xee   : >> { %v1217_v52 = vpop.permute.xlu1 %1216  ;;  %v543_v58 = vsel %vm258_vm1, %v1203_v27, %v1204_v12 }
  0xef   : >> { %v1212_v59 = vpop.permute.xlu0 %1211  ;;  %v922_v25 = vpack.c.bf16 %v543_v58, %v542_v55  ;;  %v1219_v60 = vunpack.i.h.bf16 %v1217_v52  ;;  %v1218_v61 = vunpack.i.l.bf16 %v1217_v52 }
  0xf0   : >> { %v1214_v13 = vunpack.i.h.bf16 %v1212_v59  ;;  %v1213_v22 = vunpack.i.l.bf16 %v1212_v59 }
  0xf1   : >> { %923 = vmatprep.subr.bf16.mxu1 %v922_v25  ;;  %v582_v37 = vsel %vm299_vm3, %v1218_v61, %v1219_v60 }
  0xf2   : >> { %v1227_v56 = vpop.permute.xlu1 %1226  ;;  %v519_v42 = vsel %vm233_vm2, %v1213_v22, %v1214_v13 }
  0xf3   : >> { %v1229_v6 = vunpack.i.h.bf16 %v1227_v56  ;;  %v1228_v7 = vunpack.i.l.bf16 %v1227_v56  ;;  %v1222_v15 = vpop.permute.xlu0 %1221  ;;  %v924_v16 = vpack.c.bf16 %v519_v42, %v518_v39 }
  0xf4   : >> { %v1224_v21 = vunpack.i.h.bf16 %v1222_v15  ;;  %v1223_v8 = vunpack.i.l.bf16 %v1222_v15 }
  0xf5   : >> { %925 = vmatpush1.bf16.msra.mxu1 %v924_v16  ;;  %v558_v24 = vsel %vm204_vm0, %v1228_v7, %v1153_v4  ;;  %v559_v32 = vsel %vm204_vm0, %v1229_v6, %v1158_v3 }
  0xf6   : >> { %v583_v9 = vsel %vm299_vm3, %v1223_v8, %v1224_v21  ;;  %v932_v10 = vpack.c.bf16 %v559_v32, %v558_v24 }
  0xf7   : >> { %v930_v53 = vpack.c.bf16 %v583_v9, %v582_v37 }
  0xf8   : >> { %665 = vmatmul.mubr.f32.vlgmr.msra.gmra.mrb[0].mxu1 %v1291_v1 }
  0xf9   : >> { %931 = vmatprep.subr.bf16.mxu0 %v930_v53 }
  0xfa   : >> { %933 = vmatpush1.bf16.msra.mxu0 %v932_v10 }
  0xfd   : >> { %854 = vmatmul.mubr.msk.f32.vlgmr.msra.gmra.mrb[0].mxu0 %vm597_vm4, %v1297_v2 }
 0x104   : >> { %v591_v38 = vpop.permute.xlu0 %590 }
 0x1cb   : >> { %v666_v4 = vpop.f32.mrb[0].mxu1 }
 0x1cc   : >> { %v668_v18 = vpop.f32.mrb[1].mxu1  ;;  %v667_v54 = vadd.f32 %v666_v4, %v591_v38 }
 0x1cd   : >> { %v669_v3 = vadd.f32 %v668_v18, %v591_v38 }
 0x1d0   : >> { %v737_v57 = vpop.f32.mrb[0].mxu0 }
 0x1d1   : >> { %v738_v23 = vadd.f32 %v737_v57, %v667_v54  ;;  %v739_v35 = vpop.f32.mrb[1].mxu0 }
 0x1d2   : >> { %v740_v31 = vadd.f32 %v739_v35, %v669_v3  ;;  %162 = sbr.rel (!%p160_p4) target bundleno = 17 (0x11), region = 70 }
 0x1d3   : >> { %v742_v14 = vmax.f32 %v738_v23, 0.0 }
 0x1d4   : >> { %v743_v17 = vmax.f32 %v740_v31, 0.0 }
 0x1d6   : >> { %v746_v19 = vcombine.low %v742_v14, %v743_v17 }
 0x1d8   : >> { %751 = vst [vmem:[%s750_s10] sm:$0x77] %v746_v19 }
 0x1d9 PF: > { %s13_s12 = sadd.s32 1, %s1241_s12  }
 0x1da   : > { %p10_p5 = scmp.ge.s32.totalorder %s13_s12, 6  }
 0x1dc   :  { %12 = sbr.rel (!%p10_p5) target bundleno = 1 (0x1), region = 81 }

</bundles_post_ra>
